<compile_context>
chip_gen: v7x
topology: tpu7x:2x2x1
jax: 0.10.0
libtpu: 0.0.40
codegen_flags: <defaults>
</compile_context>

<pallas_src>
import functools

import jax
import jax.numpy as jnp
from jax.experimental import pallas as pl
from jax.experimental.pallas import tpu as pltpu


def routing_kernel(x_ref, w_ref, e_ref, et_ref, v_ref, *, num_caps, dim_caps,
                   num_routing):
    # x_ref : (in_caps, B_tile, in_dim)            VMEM, bf16
    # w_ref : (in_caps, in_dim, num_caps*dim_caps) VMEM, bf16, resident
    # e_ref : (num_caps, num_caps*dim_caps)        VMEM, bf16, resident
    # et_ref: (num_caps*dim_caps, num_caps)        VMEM, bf16, resident
    # v_ref : (B_tile, num_caps*dim_caps)          VMEM, lane-dense output
    in_caps, b_tile, _ = x_ref.shape
    nd = num_caps * dim_caps
    ib = in_caps * b_tile

    x = x_ref[...]
    w = w_ref[...]
    E = e_ref[...]
    ET = et_ref[...]
    mxu_dtype = E.dtype

    # ---- u_hat on the MXU (bf16 operands, f32 accumulation) ---------------
    # Batched over in_caps with leading batch dims on both operands:
    # u_hat3[i, b, m] = sum_k x[i, b, k] * w[i, k, m],  m = n*dim_caps + d
    u_hat3 = jnp.einsum("ibk,ikm->ibm", x, w, preferred_element_type=jnp.float32)

    def softmax_caps(logits):            # softmax over num_caps (last axis), f32
        m = jnp.max(logits, axis=-1, keepdims=True)
        e = jnp.exp(logits - m)
        return e * pl.reciprocal(jnp.sum(e, axis=-1, keepdims=True), approx=True)

    def squash(s):                       # s: (B_tile, nd) f32
        sq = jnp.dot((s * s).astype(mxu_dtype), ET,
                     preferred_element_type=jnp.float32)             # (Bt, N)
        scale = sq * pl.reciprocal((1.0 + sq) * (jnp.sqrt(sq) + 1e-8), approx=True)
        return jnp.dot(scale.astype(mxu_dtype), E,
                       preferred_element_type=jnp.float32) * s       # (Bt, nd)

    def weighted_sum(c):                 # c: (ib, N) f32 -> s: (B_tile, nd)
        c_exp = jnp.dot(c.astype(mxu_dtype), E,
                        preferred_element_type=jnp.float32)          # (ib, nd)
        # in_caps reduction as a sum over the leading axis (VPU add tree);
        # the leading-dim split is tile-aligned (b_tile multiple of 8).
        return jnp.sum(c_exp.reshape(in_caps, b_tile, nd) * u_hat3, axis=0)

    def uv_update(v):                    # v: (B_tile, nd) -> logits delta (ib, N)
        prod = u_hat3 * v[None, :, :]    # broadcast v over in_caps, no FT matmul
        return jnp.dot(prod.reshape(ib, nd).astype(mxu_dtype), ET,
                       preferred_element_type=jnp.float32)

    def uniform_s():
        # Iteration 0: softmax of the zero-initialized logits is uniform 1/N.
        return jnp.sum(u_hat3, axis=0) * jnp.float32(1.0 / num_caps)

    # ---- routing iterations (num_routing is small & static -> unrolled) ----
    # detach() is a forward no-op, so u_hat is reused everywhere.
    if num_routing <= 1:
        s = uniform_s()
    else:
        b_logits = uv_update(squash(uniform_s()))     # b was zero -> b = uv
        # TODO(synk): for large num_routing move this into lax.fori_loop with
        # b_logits as the carry to bound live ranges at big batch tiles.
        for _ in range(num_routing - 2):
            v = squash(weighted_sum(softmax_caps(b_logits)))
            b_logits = b_logits + uv_update(v)
        s = weighted_sum(softmax_caps(b_logits))

    v_ref[...] = squash(s).astype(v_ref.dtype)


def _pick_batch_tile(batch, in_caps, nd, vmem_budget_bytes=40 * 1024 * 1024):
    # Largest tile whose live f32 routing intermediates (~5 copies of the
    # (in_caps, B_tile, nd) u_hat working set) fit in ~40 MiB, leaving room for
    # double-buffered input/output blocks and the resident W even on v7x
    # (64 MiB VMEM per TC).  Whole batch in one step when it fits (best on
    # v5e/v6e: single TensorCore, no per-step overhead); otherwise the largest
    # multiple-of-8 divisor of batch under the cap.
    per_row = 5 * in_caps * nd * 4
    cap = max(8, min(512, (vmem_budget_bytes // per_row) // 8 * 8))
    if batch <= cap:
        return batch
    for t in range(cap, 7, -8):
        if batch % t == 0:
            return t
    for t in range(cap, 0, -1):          # fallback: any divisor (unaligned but valid)
        if batch % t == 0:
            return t
    return batch


def routing_capsules(x, W, num_routing=3, batch_tile=None):
    """x: (batch, in_caps, in_dim); W: (num_caps, in_caps, dim_caps, in_dim)."""
    batch, in_caps, in_dim = x.shape
    num_caps, in_caps_w, dim_caps, in_dim_w = W.shape
    assert in_caps_w == in_caps and in_dim_w == in_dim
    nd = num_caps * dim_caps

    if batch_tile is None:
        batch_tile = _pick_batch_tile(batch, in_caps, nd)
    assert batch % batch_tile == 0
    assert batch_tile % 8 == 0 or batch_tile == batch
    grid = batch // batch_tile

    # (in_caps, batch, in_dim) bf16: the transpose fuses with the bf16 cast
    # into a single XLA copy/convert pass (half-width write), so it costs no
    # extra HBM round trip; leading in_caps keeps the in-kernel batched matmul
    # transpose-free.
    x_ib = jnp.transpose(x, (1, 0, 2)).astype(jnp.bfloat16)
    # (in_caps, in_dim, num_caps*dim_caps) bf16: lane-dense RHS for the MXU.
    w_r = jnp.transpose(W, (1, 3, 0, 2)).reshape(in_caps, in_dim, nd)
    w_r = w_r.astype(jnp.bfloat16)
    # Constant capsule-segment selection matrices, built once, resident in VMEM.
    lane_cap = jnp.arange(nd, dtype=jnp.int32) // dim_caps
    E = (lane_cap[None, :] ==
         jnp.arange(num_caps, dtype=jnp.int32)[:, None]).astype(jnp.bfloat16)
    ET = jnp.transpose(E)

    kernel = functools.partial(
        routing_kernel, num_caps=num_caps, dim_caps=dim_caps,
        num_routing=num_routing)

    flops = (2 * batch * in_caps * in_dim * nd
             + num_routing * 2 * batch * in_caps * nd * (num_caps + 3))
    cost = pl.CostEstimate(
        flops=flops,
        transcendentals=num_routing * batch * (in_caps * num_caps + 2 * num_caps),
        bytes_accessed=2 * (x.size + W.size)
        + batch * nd * jnp.dtype(x.dtype).itemsize,
    )

    v_flat = pl.pallas_call(
        kernel,
        out_shape=jax.ShapeDtypeStruct((batch, nd), x.dtype),
        grid=(grid,),
        in_specs=[
            pl.BlockSpec((in_caps, batch_tile, in_dim), lambda g: (0, g, 0)),
            # Constant index_maps: W / E / ET are DMA'd once and stay resident.
            pl.BlockSpec((in_caps, in_dim, nd), lambda g: (0, 0, 0)),
            pl.BlockSpec((num_caps, nd), lambda g: (0, 0)),
            pl.BlockSpec((nd, num_caps), lambda g: (0, 0)),
        ],
        out_specs=pl.BlockSpec((batch_tile, nd), lambda g: (g, 0)),
        compiler_params=pltpu.CompilerParams(
            dimension_semantics=("parallel",),
            vmem_limit_bytes=48 * 1024 * 1024,  # <= 64 MiB physical on v7x
        ),
        cost_estimate=cost,
    )(x_ib, w_r, E, ET)

    # Lane-dense (batch, num_caps*dim_caps) -> (batch, num_caps, dim_caps)
    return v_flat.reshape(batch, num_caps, dim_caps)


def routing_capsules_ref(x, W, num_routing=3):
    """Pure-JAX f32 reference mirroring the PyTorch forward."""
    u_hat = jnp.einsum("nidk,bik->bnid", W, x)  # (B, num_caps, in_caps, dim_caps)
    B, n, i, d = u_hat.shape
    b = jnp.zeros((B, n, i, 1), jnp.float32)

    def softmax1(b):
        return jax.nn.softmax(b, axis=1)

    def squash(s):
        sq = jnp.sum(s * s, axis=-1, keepdims=True)
        return sq / (1.0 + sq) * s / (jnp.sqrt(sq) + 1e-8)

    for _ in range(num_routing - 1):
        c = softmax1(b)
        s = jnp.sum(c * u_hat, axis=2)
        v = squash(s)
        uv = jnp.einsum("bnid,bnd->bni", u_hat, v)[..., None]
        b = b + uv
    c = softmax1(b)
    s = jnp.sum(c * u_hat, axis=2)
    return squash(s)


if __name__ == "__main__":
    # Small shapes consistent with the module: in_dim=8, dim_caps=16;
    # num_caps*dim_caps = 128 (lane-dense).  batch=16 -> single grid step.
    batch = 16
    in_dim = 8
    in_caps = 32
    num_caps = 8
    dim_caps = 16
    num_routing = 3

    key = jax.random.PRNGKey(0)
    kx, kw = jax.random.split(key)
    x = jax.random.normal(kx, (batch, in_caps, in_dim), dtype=jnp.float32)
    # nn.Parameter(0.01 * randn(1, num_caps, in_caps, dim_caps, in_dim)) -> drop leading 1
    W = 0.01 * jax.random.normal(
        kw, (num_caps, in_caps, dim_caps, in_dim), dtype=jnp.float32
    )

    v = routing_capsules(x, W, num_routing=num_routing)
    v = jax.block_until_ready(v)

    v_ref = routing_capsules_ref(x, W, num_routing=num_routing)
    assert v.shape == (batch, num_caps, dim_caps)
    # Tolerance covers bf16 MXU operands (x, W and the matmul-lhs casts) and the
    # EUP approximate reciprocals; routing is iterative so errors compound mildly.
    assert jnp.allclose(v, v_ref, atol=1e-4, rtol=3e-2), float(
        jnp.max(jnp.abs(v - v_ref))
    )

    print("KERNEL_OK")
</pallas_src>

<mosaic_0001>
module attributes {stable_mosaic.version = 11 : i64} {
  func.func @routing_kernel(%arg0: i32, %arg1: memref<32x16x8xbf16, #tpu.memory_space<vmem>>, %arg2: memref<32x8x128xbf16, #tpu.memory_space<vmem>>, %arg3: memref<8x128xbf16, #tpu.memory_space<vmem>>, %arg4: memref<128x8xbf16, #tpu.memory_space<vmem>>, %arg5: memref<16x128xf32, #tpu.memory_space<vmem>>) attributes {dimension_semantics = [#tpu.dimension_semantics<parallel>], iteration_bounds = array<i64: 1>, scalar_prefetch = 0 : i64, scratch_operands = 0 : i64, tpu.core_type = #tpu.core_type<tc>, window_params = [{transform_indices = @transform_0, window_bounds = array<i64: 32, 16, 8>}, {pipeline_mode = #tpu.pipeline_mode<synchronous>, transform_indices = @transform_1, window_bounds = array<i64: 32, 8, 128>}, {pipeline_mode = #tpu.pipeline_mode<synchronous>, transform_indices = @transform_2, window_bounds = array<i64: 8, 128>}, {pipeline_mode = #tpu.pipeline_mode<synchronous>, transform_indices = @transform_3, window_bounds = array<i64: 128, 8>}, {transform_indices = @transform_4, window_bounds = array<i64: 16, 128>}]} {
    %c0 = arith.constant 0 : index
    %c0_0 = arith.constant 0 : index
    %c0_1 = arith.constant 0 : index
    %0 = vector.load %arg1[%c0, %c0_0, %c0_1] : memref<32x16x8xbf16, #tpu.memory_space<vmem>>, vector<32x16x8xbf16>
    %c0_2 = arith.constant 0 : index
    %c0_3 = arith.constant 0 : index
    %c0_4 = arith.constant 0 : index
    %1 = vector.load %arg2[%c0_2, %c0_3, %c0_4] : memref<32x8x128xbf16, #tpu.memory_space<vmem>>, vector<32x8x128xbf16>
    %c0_5 = arith.constant 0 : index
    %c0_6 = arith.constant 0 : index
    %2 = vector.load %arg3[%c0_5, %c0_6] : memref<8x128xbf16, #tpu.memory_space<vmem>>, vector<8x128xbf16>
    %c0_7 = arith.constant 0 : index
    %c0_8 = arith.constant 0 : index
    %3 = vector.load %arg4[%c0_7, %c0_8] : memref<128x8xbf16, #tpu.memory_space<vmem>>, vector<128x8xbf16>
    "tpu.trace_start"() <{level = 10 : i32, message = "ibk,ikm->ibm"}> : () -> ()
    %cst = arith.constant dense<0.000000e+00> : vector<32x16x128xf32>
    %4 = tpu.matmul %0, %1, %cst {dimension_numbers = #tpu.dot_dimension_numbers<[2], [1], [1], [2], [0, 0, 0, 1, 1, 2], [0], [0]>} : vector<32x16x8xbf16>, vector<32x8x128xbf16>, vector<32x16x128xf32> -> vector<32x16x128xf32>
    "tpu.trace_stop"() : () -> ()
    %cst_9 = arith.constant dense<0.000000e+00> : vector<16x128xf32>
    %5 = vector.multi_reduction <add>, %4, %cst_9 [0] : vector<32x16x128xf32> to vector<16x128xf32>
    %cst_10 = arith.constant 1.250000e-01 : f32
    %6 = vector.broadcast %cst_10 : f32 to vector<16x128xf32>
    %7 = arith.mulf %5, %6 : vector<16x128xf32>
    %8 = arith.mulf %7, %7 : vector<16x128xf32>
    %9 = arith.truncf %8 : vector<16x128xf32> to vector<16x128xbf16>
    %cst_11 = arith.constant dense<0.000000e+00> : vector<16x8xf32>
    %10 = tpu.matmul %9, %3, %cst_11 {dimension_numbers = #tpu.dot_dimension_numbers<[1], [0], [0], [1], [0, 0, 1, 1], [], []>} : vector<16x128xbf16>, vector<128x8xbf16>, vector<16x8xf32> -> vector<16x8xf32>
    %cst_12 = arith.constant 1.000000e+00 : f32
    %11 = vector.broadcast %cst_12 : f32 to vector<16x8xf32>
    %12 = arith.addf %11, %10 : vector<16x8xf32>
    %13 = math.sqrt %10 : vector<16x8xf32>
    %cst_13 = arith.constant 9.99999993E-9 : f32
    %14 = vector.broadcast %cst_13 : f32 to vector<16x8xf32>
    %15 = arith.addf %13, %14 : vector<16x8xf32>
    %16 = arith.mulf %12, %15 : vector<16x8xf32>
    %17 = tpu.reciprocal %16 {approx = true} : vector<16x8xf32> -> vector<16x8xf32>
    %18 = arith.mulf %10, %17 : vector<16x8xf32>
    %19 = arith.truncf %18 : vector<16x8xf32> to vector<16x8xbf16>
    %cst_14 = arith.constant dense<0.000000e+00> : vector<16x128xf32>
    %20 = tpu.matmul %19, %2, %cst_14 {dimension_numbers = #tpu.dot_dimension_numbers<[1], [0], [0], [1], [0, 0, 1, 1], [], []>} : vector<16x8xbf16>, vector<8x128xbf16>, vector<16x128xf32> -> vector<16x128xf32>
    %21 = arith.mulf %20, %7 : vector<16x128xf32>
    %22 = vector.shape_cast %21 : vector<16x128xf32> to vector<1x16x128xf32>
    %23 = vector.broadcast %22 : vector<1x16x128xf32> to vector<32x16x128xf32>
    %24 = arith.mulf %4, %23 : vector<32x16x128xf32>
    %25 = vector.shape_cast %24 : vector<32x16x128xf32> to vector<512x128xf32>
    %26 = arith.truncf %25 : vector<512x128xf32> to vector<512x128xbf16>
    %cst_15 = arith.constant dense<0.000000e+00> : vector<512x8xf32>
    %27 = tpu.matmul %26, %3, %cst_15 {dimension_numbers = #tpu.dot_dimension_numbers<[1], [0], [0], [1], [0, 0, 1, 1], [], []>} : vector<512x128xbf16>, vector<128x8xbf16>, vector<512x8xf32> -> vector<512x8xf32>
    %cst_16 = arith.constant dense<0xFF800000> : vector<512xf32>
    %28 = vector.multi_reduction <maximumf>, %27, %cst_16 [1] : vector<512x8xf32> to vector<512xf32>
    %29 = vector.shape_cast %28 : vector<512xf32> to vector<512x1xf32>
    %30 = vector.broadcast %29 : vector<512x1xf32> to vector<512x8xf32>
    %31 = arith.subf %27, %30 : vector<512x8xf32>
    %32 = math.exp %31 : vector<512x8xf32>
    %cst_17 = arith.constant dense<0.000000e+00> : vector<512xf32>
    %33 = vector.multi_reduction <add>, %32, %cst_17 [1] : vector<512x8xf32> to vector<512xf32>
    %34 = vector.shape_cast %33 : vector<512xf32> to vector<512x1xf32>
    %35 = tpu.reciprocal %34 {approx = true} : vector<512x1xf32> -> vector<512x1xf32>
    %36 = vector.broadcast %35 : vector<512x1xf32> to vector<512x8xf32>
    %37 = arith.mulf %32, %36 : vector<512x8xf32>
    %38 = arith.truncf %37 : vector<512x8xf32> to vector<512x8xbf16>
    %cst_18 = arith.constant dense<0.000000e+00> : vector<512x128xf32>
    %39 = tpu.matmul %38, %2, %cst_18 {dimension_numbers = #tpu.dot_dimension_numbers<[1], [0], [0], [1], [0, 0, 1, 1], [], []>} : vector<512x8xbf16>, vector<8x128xbf16>, vector<512x128xf32> -> vector<512x128xf32>
    %40 = vector.shape_cast %39 : vector<512x128xf32> to vector<32x16x128xf32>
    %41 = arith.mulf %40, %4 : vector<32x16x128xf32>
    %cst_19 = arith.constant dense<0.000000e+00> : vector<16x128xf32>
    %42 = vector.multi_reduction <add>, %41, %cst_19 [0] : vector<32x16x128xf32> to vector<16x128xf32>
    %43 = arith.mulf %42, %42 : vector<16x128xf32>
    %44 = arith.truncf %43 : vector<16x128xf32> to vector<16x128xbf16>
    %cst_20 = arith.constant dense<0.000000e+00> : vector<16x8xf32>
    %45 = tpu.matmul %44, %3, %cst_20 {dimension_numbers = #tpu.dot_dimension_numbers<[1], [0], [0], [1], [0, 0, 1, 1], [], []>} : vector<16x128xbf16>, vector<128x8xbf16>, vector<16x8xf32> -> vector<16x8xf32>
    %cst_21 = arith.constant 1.000000e+00 : f32
    %46 = vector.broadcast %cst_21 : f32 to vector<16x8xf32>
    %47 = arith.addf %46, %45 : vector<16x8xf32>
    %48 = math.sqrt %45 : vector<16x8xf32>
    %cst_22 = arith.constant 9.99999993E-9 : f32
    %49 = vector.broadcast %cst_22 : f32 to vector<16x8xf32>
    %50 = arith.addf %48, %49 : vector<16x8xf32>
    %51 = arith.mulf %47, %50 : vector<16x8xf32>
    %52 = tpu.reciprocal %51 {approx = true} : vector<16x8xf32> -> vector<16x8xf32>
    %53 = arith.mulf %45, %52 : vector<16x8xf32>
    %54 = arith.truncf %53 : vector<16x8xf32> to vector<16x8xbf16>
    %cst_23 = arith.constant dense<0.000000e+00> : vector<16x128xf32>
    %55 = tpu.matmul %54, %2, %cst_23 {dimension_numbers = #tpu.dot_dimension_numbers<[1], [0], [0], [1], [0, 0, 1, 1], [], []>} : vector<16x8xbf16>, vector<8x128xbf16>, vector<16x128xf32> -> vector<16x128xf32>
    %56 = arith.mulf %55, %42 : vector<16x128xf32>
    %57 = vector.shape_cast %56 : vector<16x128xf32> to vector<1x16x128xf32>
    %58 = vector.broadcast %57 : vector<1x16x128xf32> to vector<32x16x128xf32>
    %59 = arith.mulf %4, %58 : vector<32x16x128xf32>
    %60 = vector.shape_cast %59 : vector<32x16x128xf32> to vector<512x128xf32>
    %61 = arith.truncf %60 : vector<512x128xf32> to vector<512x128xbf16>
    %cst_24 = arith.constant dense<0.000000e+00> : vector<512x8xf32>
    %62 = tpu.matmul %61, %3, %cst_24 {dimension_numbers = #tpu.dot_dimension_numbers<[1], [0], [0], [1], [0, 0, 1, 1], [], []>} : vector<512x128xbf16>, vector<128x8xbf16>, vector<512x8xf32> -> vector<512x8xf32>
    %63 = arith.addf %27, %62 : vector<512x8xf32>
    %cst_25 = arith.constant dense<0xFF800000> : vector<512xf32>
    %64 = vector.multi_reduction <maximumf>, %63, %cst_25 [1] : vector<512x8xf32> to vector<512xf32>
    %65 = vector.shape_cast %64 : vector<512xf32> to vector<512x1xf32>
    %66 = vector.broadcast %65 : vector<512x1xf32> to vector<512x8xf32>
    %67 = arith.subf %63, %66 : vector<512x8xf32>
    %68 = math.exp %67 : vector<512x8xf32>
    %cst_26 = arith.constant dense<0.000000e+00> : vector<512xf32>
    %69 = vector.multi_reduction <add>, %68, %cst_26 [1] : vector<512x8xf32> to vector<512xf32>
    %70 = vector.shape_cast %69 : vector<512xf32> to vector<512x1xf32>
    %71 = tpu.reciprocal %70 {approx = true} : vector<512x1xf32> -> vector<512x1xf32>
    %72 = vector.broadcast %71 : vector<512x1xf32> to vector<512x8xf32>
    %73 = arith.mulf %68, %72 : vector<512x8xf32>
    %74 = arith.truncf %73 : vector<512x8xf32> to vector<512x8xbf16>
    %cst_27 = arith.constant dense<0.000000e+00> : vector<512x128xf32>
    %75 = tpu.matmul %74, %2, %cst_27 {dimension_numbers = #tpu.dot_dimension_numbers<[1], [0], [0], [1], [0, 0, 1, 1], [], []>} : vector<512x8xbf16>, vector<8x128xbf16>, vector<512x128xf32> -> vector<512x128xf32>
    %76 = vector.shape_cast %75 : vector<512x128xf32> to vector<32x16x128xf32>
    %77 = arith.mulf %76, %4 : vector<32x16x128xf32>
    %cst_28 = arith.constant dense<0.000000e+00> : vector<16x128xf32>
    %78 = vector.multi_reduction <add>, %77, %cst_28 [0] : vector<32x16x128xf32> to vector<16x128xf32>
    %79 = arith.mulf %78, %78 : vector<16x128xf32>
    %80 = arith.truncf %79 : vector<16x128xf32> to vector<16x128xbf16>
    %cst_29 = arith.constant dense<0.000000e+00> : vector<16x8xf32>
    %81 = tpu.matmul %80, %3, %cst_29 {dimension_numbers = #tpu.dot_dimension_numbers<[1], [0], [0], [1], [0, 0, 1, 1], [], []>} : vector<16x128xbf16>, vector<128x8xbf16>, vector<16x8xf32> -> vector<16x8xf32>
    %cst_30 = arith.constant 1.000000e+00 : f32
    %82 = vector.broadcast %cst_30 : f32 to vector<16x8xf32>
    %83 = arith.addf %82, %81 : vector<16x8xf32>
    %84 = math.sqrt %81 : vector<16x8xf32>
    %cst_31 = arith.constant 9.99999993E-9 : f32
    %85 = vector.broadcast %cst_31 : f32 to vector<16x8xf32>
    %86 = arith.addf %84, %85 : vector<16x8xf32>
    %87 = arith.mulf %83, %86 : vector<16x8xf32>
    %88 = tpu.reciprocal %87 {approx = true} : vector<16x8xf32> -> vector<16x8xf32>
    %89 = arith.mulf %81, %88 : vector<16x8xf32>
    %90 = arith.truncf %89 : vector<16x8xf32> to vector<16x8xbf16>
    %cst_32 = arith.constant dense<0.000000e+00> : vector<16x128xf32>
    %91 = tpu.matmul %90, %2, %cst_32 {dimension_numbers = #tpu.dot_dimension_numbers<[1], [0], [0], [1], [0, 0, 1, 1], [], []>} : vector<16x8xbf16>, vector<8x128xbf16>, vector<16x128xf32> -> vector<16x128xf32>
    %92 = arith.mulf %91, %78 : vector<16x128xf32>
    %c0_33 = arith.constant 0 : index
    %c0_34 = arith.constant 0 : index
    %93 = vector.load %arg5[%c0_33, %c0_34] : memref<16x128xf32, #tpu.memory_space<vmem>>, vector<16x128xf32>
    tpu.vector_store %arg5[%c0_33, %c0_34], %92 {strides = array<i32>} : memref<16x128xf32, #tpu.memory_space<vmem>>, vector<16x128xf32>,
    return
  }
  func.func @transform_0(%arg0: i32) -> (i32, i32, i32) {
    %c0_i32 = arith.constant 0 : i32
    %c0_i32_0 = arith.constant 0 : i32
    %c0_i32_1 = arith.constant 0 : i32
    return %c0_i32, %arg0, %c0_i32_0 : i32, i32, i32
  }
  func.func @transform_1(%arg0: i32) -> (i32, i32, i32) {
    %c0_i32 = arith.constant 0 : i32
    %c0_i32_0 = arith.constant 0 : i32
    %c0_i32_1 = arith.constant 0 : i32
    %c0_i32_2 = arith.constant 0 : i32
    return %c0_i32, %c0_i32_0, %c0_i32_1 : i32, i32, i32
  }
  func.func @transform_2(%arg0: i32) -> (i32, i32) {
    %c0_i32 = arith.constant 0 : i32
    %c0_i32_0 = arith.constant 0 : i32
    %c0_i32_1 = arith.constant 0 : i32
    return %c0_i32, %c0_i32_0 : i32, i32
  }
  func.func @transform_3(%arg0: i32) -> (i32, i32) {
    %c0_i32 = arith.constant 0 : i32
    %c0_i32_0 = arith.constant 0 : i32
    %c0_i32_1 = arith.constant 0 : i32
    return %c0_i32, %c0_i32_0 : i32, i32
  }
  func.func @transform_4(%arg0: i32) -> (i32, i32) {
    %c0_i32 = arith.constant 0 : i32
    %c0_i32_0 = arith.constant 0 : i32
    return %arg0, %c0_i32 : i32, i32
  }
}

</mosaic_0001>

<bundles_post_ra>
// kernel: tpu_custom_call.1
= control target key start
LH: loop header
LB: loop body
LE: loop exit
PB: predicated region body
PF: predicated region fallthrough
CT: control target
= control target key end

     0   :  { %vm141_vm0 = vcmask 1043456   ;;  %v9970_v2 = vmov 0.0   ;;  %vm137_vm1 = vcmask 64512   ;;  %vm7172_vm2 = vmmov 0   ;;  %s9965_s0 = inlined_call_operand.vmem [shape: bf16[32,16,8], index: 0, kind: input, shape index: {}]   ;;  %s9966_s1 = inlined_call_operand.vmem [shape: bf16[32,8,128], index: 1, kind: input, shape index: {}]   ;;  %s9967_s2 = inlined_call_operand.vmem [shape: bf16[8,128], index: 2, kind: input, shape index: {}]   ;;  %s9968_s3 = inlined_call_operand.vmem [shape: bf16[128,8], index: 3, kind: input, shape index: {}]   ;;  %s9969_s4 = inlined_call_operand.hbm [shape: f32[16,128], index: 4, kind: output, shape index: {}]  }
   0x1   :  { %v83_v0 = vld [vmem:[%s9966_s1] sm:$0xf]  ;;  %v84_v1 = vld [vmem:[%s9966_s1 + $0x4] sm:$0xf]  ;;  %5986 = vmatprep.subr.bf16.mxu0 %v9970_v2  ;;  %5992 = vmatprep.subr.bf16.mxu1 %v9970_v2  ;;  %v6556_v6 = vld [vmem:[%s9965_s0 + $0x8] sm:$0xff]  }
   0x2   :  { %v143_v3 = vsel %vm141_vm0, %v83_v0, 0  ;;  %v195_v4 = vsel %vm141_vm0, %v84_v1, 0  ;;  %v6555_v5 = vld [vmem:[%s9965_s0] sm:$0xff]   ;;  %5988 = vmatprep.mubr.msk.bf16.mxu0 %vm7172_vm2, %v9970_v2  ;;  %5994 = vmatprep.mubr.msk.bf16.mxu1 %vm7172_vm2, %v9970_v2  ;;  %v85_v7 = vld [vmem:[%s9966_s1 + $0x8] sm:$0xf]  ;;  %v6557_v13 = vld [vmem:[%s9965_s0 + $0x10] sm:$0xff]  }
   0x3   :  { %5987 = vmatpush3.bf16.msra.mxu0 %v143_v3  ;;  %5993 = vmatpush3.bf16.msra.mxu1 %v195_v4  ;;  %v86_v8 = vld [vmem:[%s9966_s1 + $0xc] sm:$0xf]  ;;  %v247_v9 = vsel %vm141_vm0, %v85_v7, 0  ;;  %v87_v11 = vld [vmem:[%s9966_s1 + $0x10] sm:$0xf]  ;;  %v6558_v14 = vld [vmem:[%s9965_s0 + $0x18] sm:$0xff]  }
   0x4   :  { %5998 = vmatprep.subr.bf16.mxu0 %v9970_v2  ;;  %6004 = vmatprep.subr.bf16.mxu1 %v9970_v2  ;;  %v299_v10 = vsel %vm141_vm0, %v86_v8, 0  ;;  %v88_v12 = vld [vmem:[%s9966_s1 + $0x14] sm:$0xf]  ;;  %v351_v15 = vsel %vm141_vm0, %v87_v11, 0  ;;  %v6559_v17 = vld [vmem:[%s9965_s0 + $0x20] sm:$0xff]   ;;  %v6560_v20 = vld [vmem:[%s9965_s0 + $0x28] sm:$0xff]  }
   0x5   :  { %v403_v16 = vsel %vm141_vm0, %v88_v12, 0  ;;  %v89_v18 = vld [vmem:[%s9966_s1 + $0x18] sm:$0xf]  ;;  %v90_v19 = vld [vmem:[%s9966_s1 + $0x1c] sm:$0xf]  ;;  %v6561_v23 = vld [vmem:[%s9965_s0 + $0x30] sm:$0xff]  }
   0x6   :  { %5989 = vmatmul.mubr.msk.bf16.vlgmr.msra.gmra.mrb[0].mxu0 %vm137_vm1, %v6555_v5  ;;  %5995 = vmatmul.mubr.msk.bf16.vlgmr.msra.gmra.mrb[0].mxu1 %vm137_vm1, %v6556_v6  ;;  %v455_v21 = vsel %vm141_vm0, %v89_v18, 0  ;;  %v507_v22 = vsel %vm141_vm0, %v90_v19, 0  ;;  %v91_v24 = vld [vmem:[%s9966_s1 + $0x20] sm:$0xf]  ;;  %v92_v25 = vld [vmem:[%s9966_s1 + $0x24] sm:$0xf] }
   0x7   :  { %5999 = vmatpush3.bf16.msra.mxu0 %v247_v9  ;;  %6005 = vmatpush3.bf16.msra.mxu1 %v299_v10  ;;  %v6562_v26 = vld [vmem:[%s9965_s0 + $0x38] sm:$0xff]   ;;  %v559_v27 = vsel %vm141_vm0, %v91_v24, 0  ;;  %v611_v28 = vsel %vm141_vm0, %v92_v25, 0  ;;  %v93_v29 = vld [vmem:[%s9966_s1 + $0x28] sm:$0xf]  ;;  %v6563_v31 = vld [vmem:[%s9965_s0 + $0x40] sm:$0xff]  }
   0x8   :  { %6000 = vmatprep.mubr.msk.bf16.mxu0 %vm7172_vm2, %v9970_v2  ;;  %6006 = vmatprep.mubr.msk.bf16.mxu1 %vm7172_vm2, %v9970_v2  ;;  %v94_v30 = vld [vmem:[%s9966_s1 + $0x2c] sm:$0xf]  ;;  %v663_v33 = vsel %vm141_vm0, %v93_v29, 0  ;;  %v6565_v35 = vld [vmem:[%s9965_s0 + $0x50] sm:$0xff]   ;;  %v6566_v38 = vld [vmem:[%s9965_s0 + $0x58] sm:$0xff]  }
   0x9   :  { %6010 = vmatprep.subr.bf16.mxu0 %v9970_v2  ;;  %6016 = vmatprep.subr.bf16.mxu1 %v9970_v2  ;;  %v6564_v32 = vld [vmem:[%s9965_s0 + $0x48] sm:$0xff]   ;;  %v715_v34 = vsel %vm141_vm0, %v94_v30, 0  ;;  %v95_v36 = vld [vmem:[%s9966_s1 + $0x30] sm:$0xf]  ;;  %v96_v37 = vld [vmem:[%s9966_s1 + $0x34] sm:$0xf] }
   0xa   :  { %v767_v39 = vsel %vm141_vm0, %v95_v36, 0  ;;  %v819_v40 = vsel %vm141_vm0, %v96_v37, 0  ;;  %v97_v41 = vld [vmem:[%s9966_s1 + $0x38] sm:$0xf]  ;;  %v98_v42 = vld [vmem:[%s9966_s1 + $0x3c] sm:$0xf] }
   0xb   :  { %v6567_v43 = vld [vmem:[%s9965_s0 + $0x60] sm:$0xff]   ;;  %v6568_v44 = vld [vmem:[%s9965_s0 + $0x68] sm:$0xff]   ;;  %v871_v45 = vsel %vm141_vm0, %v97_v41, 0  ;;  %v923_v46 = vsel %vm141_vm0, %v98_v42, 0 }
   0xe   :  { %6001 = vmatmul.mubr.msk.bf16.vlgmr.msra.gmra.mrb[4].mxu0 %vm137_vm1, %v6557_v13  ;;  %6007 = vmatmul.mubr.msk.bf16.vlgmr.msra.gmra.mrb[4].mxu1 %vm137_vm1, %v6558_v14 }
   0xf   :  { %6011 = vmatpush3.bf16.msra.mxu0 %v351_v15  ;;  %6017 = vmatpush3.bf16.msra.mxu1 %v403_v16 }
  0x10   :  { %6012 = vmatprep.mubr.msk.bf16.mxu0 %vm7172_vm2, %v9970_v2  ;;  %6018 = vmatprep.mubr.msk.bf16.mxu1 %vm7172_vm2, %v9970_v2 }
  0x11   :  { %6022 = vmatprep.subr.bf16.mxu0 %v9970_v2  ;;  %6028 = vmatprep.subr.bf16.mxu1 %v9970_v2 }
  0x16   :  { %6013 = vmatmul.mubr.msk.bf16.vlgmr.msra.gmra.mrb[8].mxu0 %vm137_vm1, %v6559_v17  ;;  %6019 = vmatmul.mubr.msk.bf16.vlgmr.msra.gmra.mrb[8].mxu1 %vm137_vm1, %v6560_v20 }
  0x17   :  { %6023 = vmatpush3.bf16.msra.mxu0 %v455_v21  ;;  %6029 = vmatpush3.bf16.msra.mxu1 %v507_v22 }
  0x18   :  { %6024 = vmatprep.mubr.msk.bf16.mxu0 %vm7172_vm2, %v9970_v2  ;;  %6030 = vmatprep.mubr.msk.bf16.mxu1 %vm7172_vm2, %v9970_v2 }
  0x19   :  { %6034 = vmatprep.subr.bf16.mxu0 %v9970_v2  ;;  %6040 = vmatprep.subr.bf16.mxu1 %v9970_v2 }
  0x1e   :  { %6025 = vmatmul.mubr.msk.bf16.vlgmr.msra.gmra.mrb[12].mxu0 %vm137_vm1, %v6561_v23  ;;  %6031 = vmatmul.mubr.msk.bf16.vlgmr.msra.gmra.mrb[12].mxu1 %vm137_vm1, %v6562_v26 }
  0x1f   :  { %6035 = vmatpush3.bf16.msra.mxu0 %v559_v27  ;;  %6041 = vmatpush3.bf16.msra.mxu1 %v611_v28 }
  0x20   :  { %6036 = vmatprep.mubr.msk.bf16.mxu0 %vm7172_vm2, %v9970_v2  ;;  %6042 = vmatprep.mubr.msk.bf16.mxu1 %vm7172_vm2, %v9970_v2 }
  0x21   :  { %6046 = vmatprep.subr.bf16.mxu0 %v9970_v2  ;;  %6052 = vmatprep.subr.bf16.mxu1 %v9970_v2 }
  0x26   :  { %6037 = vmatmul.mubr.msk.bf16.vlgmr.msra.gmra.mrb[16].mxu0 %vm137_vm1, %v6563_v31  ;;  %6043 = vmatmul.mubr.msk.bf16.vlgmr.msra.gmra.mrb[16].mxu1 %vm137_vm1, %v6564_v32 }
  0x27   :  { %6047 = vmatpush3.bf16.msra.mxu0 %v663_v33  ;;  %6053 = vmatpush3.bf16.msra.mxu1 %v715_v34 }
  0x28   :  { %6048 = vmatprep.mubr.msk.bf16.mxu0 %vm7172_vm2, %v9970_v2  ;;  %6054 = vmatprep.mubr.msk.bf16.mxu1 %vm7172_vm2, %v9970_v2 }
  0x29   :  { %6058 = vmatprep.subr.bf16.mxu0 %v9970_v2  ;;  %6064 = vmatprep.subr.bf16.mxu1 %v9970_v2 }
  0x2e   :  { %6049 = vmatmul.mubr.msk.bf16.vlgmr.msra.gmra.mrb[20].mxu0 %vm137_vm1, %v6565_v35  ;;  %6055 = vmatmul.mubr.msk.bf16.vlgmr.msra.gmra.mrb[20].mxu1 %vm137_vm1, %v6566_v38 }
  0x2f   :  { %6059 = vmatpush3.bf16.msra.mxu0 %v767_v39  ;;  %6065 = vmatpush3.bf16.msra.mxu1 %v819_v40 }
  0x30   :  { %6060 = vmatprep.mubr.msk.bf16.mxu0 %vm7172_vm2, %v9970_v2  ;;  %6066 = vmatprep.mubr.msk.bf16.mxu1 %vm7172_vm2, %v9970_v2 }
  0x31   :  { %6070 = vmatprep.subr.bf16.mxu0 %v9970_v2  ;;  %6076 = vmatprep.subr.bf16.mxu1 %v9970_v2 }
  0x36   :  { %6061 = vmatmul.mubr.msk.bf16.vlgmr.msra.gmra.mrb[24].mxu0 %vm137_vm1, %v6567_v43  ;;  %6067 = vmatmul.mubr.msk.bf16.vlgmr.msra.gmra.mrb[24].mxu1 %vm137_vm1, %v6568_v44 }
  0x37   :  { %9 = vsyncpa [#allocation3], 0  ;;  %6071 = vmatpush3.bf16.msra.mxu0 %v871_v45  ;;  %6077 = vmatpush3.bf16.msra.mxu1 %v923_v46  ;;  %v99_v47 = vld [vmem:[%s9966_s1 + $0x40] sm:$0xf]  ;;  %v100_v48 = vld [vmem:[%s9966_s1 + $0x44] sm:$0xf] }
  0x38   :  { %6072 = vmatprep.mubr.msk.bf16.mxu0 %vm7172_vm2, %v9970_v2  ;;  %6078 = vmatprep.mubr.msk.bf16.mxu1 %vm7172_vm2, %v9970_v2  ;;  %v6569_v49 = vld [vmem:[%s9965_s0 + $0x70] sm:$0xff]   ;;  %v6570_v50 = vld [vmem:[%s9965_s0 + $0x78] sm:$0xff]   ;;  %v975_v51 = vsel %vm141_vm0, %v99_v47, 0  ;;  %v1027_v52 = vsel %vm141_vm0, %v100_v48, 0  ;;  %v101_v53 = vld [vmem:[%s9966_s1 + $0x48] sm:$0xf] }
  0x39   :  { %6082 = vmatprep.subr.bf16.mxu0 %v9970_v2  ;;  %6088 = vmatprep.subr.bf16.mxu1 %v9970_v2  ;;  %v102_v54 = vld [vmem:[%s9966_s1 + $0x4c] sm:$0xf]  ;;  %v6571_v55 = vld [vmem:[%s9965_s0 + $0x80] sm:$0xff]   ;;  %v1079_v57 = vsel %vm141_vm0, %v101_v53, 0  ;;  %v103_v59 = vld [vmem:[%s9966_s1 + $0x50] sm:$0xf] }
  0x3a   :  { %v6572_v56 = vld [vmem:[%s9965_s0 + $0x88] sm:$0xff]   ;;  %v1131_v58 = vsel %vm141_vm0, %v102_v54, 0  ;;  %v104_v60 = vld [vmem:[%s9966_s1 + $0x54] sm:$0xf]  ;;  %v6574_v62 = vld [vmem:[%s9965_s0 + $0x98] sm:$0xff]   ;;  %v1183_v63 = vsel %vm141_vm0, %v103_v59, 0 }
  0x3b   :  { %v6573_v61 = vld [vmem:[%s9965_s0 + $0x90] sm:$0xff]   ;;  %v1235_v0 = vsel %vm141_vm0, %v104_v60, 0  ;;  %v105_v1 = vld [vmem:[%s9966_s1 + $0x58] sm:$0xf]  ;;  %v106_v3 = vld [vmem:[%s9966_s1 + $0x5c] sm:$0xf] }
  0x3c   :  { %v6575_v4 = vld [vmem:[%s9965_s0 + $0xa0] sm:$0xff]   ;;  %v6576_v5 = vld [vmem:[%s9965_s0 + $0xa8] sm:$0xff]   ;;  %v1287_v6 = vsel %vm141_vm0, %v105_v1, 0  ;;  %v1339_v7 = vsel %vm141_vm0, %v106_v3, 0  ;;  %v6577_v10 = vld [vmem:[%s9965_s0 + $0xb0] sm:$0xff]  }
  0x3d   :  { %v107_v8 = vld [vmem:[%s9966_s1 + $0x60] sm:$0xf]  ;;  %v108_v9 = vld [vmem:[%s9966_s1 + $0x64] sm:$0xf]  ;;  %v6578_v11 = vld [vmem:[%s9965_s0 + $0xb8] sm:$0xff]  }
  0x3e   :  { %6073 = vmatmul.mubr.msk.bf16.vlgmr.msra.gmra.mrb[28].mxu0 %vm137_vm1, %v6569_v49  ;;  %6079 = vmatmul.mubr.msk.bf16.vlgmr.msra.gmra.mrb[28].mxu1 %vm137_vm1, %v6570_v50  ;;  %v1391_v12 = vsel %vm141_vm0, %v107_v8, 0  ;;  %v1443_v13 = vsel %vm141_vm0, %v108_v9, 0  ;;  %v109_v14 = vld [vmem:[%s9966_s1 + $0x68] sm:$0xf]  ;;  %v110_v15 = vld [vmem:[%s9966_s1 + $0x6c] sm:$0xf] }
  0x3f   :  { %6083 = vmatpush3.bf16.msra.mxu0 %v975_v51  ;;  %6089 = vmatpush3.bf16.msra.mxu1 %v1027_v52  ;;  %v6579_v16 = vld [vmem:[%s9965_s0 + $0xc0] sm:$0xff]   ;;  %v6580_v17 = vld [vmem:[%s9965_s0 + $0xc8] sm:$0xff]   ;;  %v1495_v18 = vsel %vm141_vm0, %v109_v14, 0  ;;  %v1547_v19 = vsel %vm141_vm0, %v110_v15, 0  ;;  %v111_v20 = vld [vmem:[%s9966_s1 + $0x70] sm:$0xf] }
  0x40   :  { %6084 = vmatprep.mubr.msk.bf16.mxu0 %vm7172_vm2, %v9970_v2  ;;  %6090 = vmatprep.mubr.msk.bf16.mxu1 %vm7172_vm2, %v9970_v2  ;;  %v112_v21 = vld [vmem:[%s9966_s1 + $0x74] sm:$0xf]  ;;  %v6582_v23 = vld [vmem:[%s9965_s0 + $0xd8] sm:$0xff]   ;;  %v1599_v24 = vsel %vm141_vm0, %v111_v20, 0  ;;  %v6583_v28 = vld [vmem:[%s9965_s0 + $0xe0] sm:$0xff]  }
  0x41   :  { %6094 = vmatprep.subr.bf16.mxu0 %v9970_v2  ;;  %6100 = vmatprep.subr.bf16.mxu1 %v9970_v2  ;;  %v6581_v22 = vld [vmem:[%s9965_s0 + $0xd0] sm:$0xff]   ;;  %v1651_v25 = vsel %vm141_vm0, %v112_v21, 0  ;;  %v113_v26 = vld [vmem:[%s9966_s1 + $0x78] sm:$0xf]  ;;  %v114_v27 = vld [vmem:[%s9966_s1 + $0x7c] sm:$0xf] }
  0x42   :  { %v6584_v29 = vld [vmem:[%s9965_s0 + $0xe8] sm:$0xff]   ;;  %v1703_v30 = vsel %vm141_vm0, %v113_v26, 0  ;;  %v1755_v31 = vsel %vm141_vm0, %v114_v27, 0  ;;  %v6585_v32 = vld [vmem:[%s9965_s0 + $0xf0] sm:$0xff]   ;;  %v6586_v33 = vld [vmem:[%s9965_s0 + $0xf8] sm:$0xff]  }
  0x43   :  { %v7562_v34 = vld [vmem:[%s9968_s3] sm:$0xff]   ;;  %v7569_v35 = vld [vmem:[%s9968_s3 + $0x8] sm:$0xff]   ;;  %v7576_v36 = vld [vmem:[%s9968_s3 + $0x10] sm:$0xff]  }
  0x44   :  { %v7583_v37 = vld [vmem:[%s9968_s3 + $0x18] sm:$0xff]   ;;  %v7590_v38 = vld [vmem:[%s9968_s3 + $0x20] sm:$0xff]   ;;  %v7597_v39 = vld [vmem:[%s9968_s3 + $0x28] sm:$0xff]  }
  0x45   :  { %v7604_v40 = vld [vmem:[%s9968_s3 + $0x30] sm:$0xff]   ;;  %v7611_v41 = vld [vmem:[%s9968_s3 + $0x38] sm:$0xff]  }
  0x46   :  { %6085 = vmatmul.mubr.msk.bf16.vlgmr.msra.gmra.mrb[32].mxu0 %vm137_vm1, %v6571_v55  ;;  %6091 = vmatmul.mubr.msk.bf16.vlgmr.msra.gmra.mrb[32].mxu1 %vm137_vm1, %v6572_v56 }
  0x47   :  { %6095 = vmatpush3.bf16.msra.mxu0 %v1079_v57  ;;  %6101 = vmatpush3.bf16.msra.mxu1 %v1131_v58 }
  0x48   :  { %6096 = vmatprep.mubr.msk.bf16.mxu0 %vm7172_vm2, %v9970_v2  ;;  %6102 = vmatprep.mubr.msk.bf16.mxu1 %vm7172_vm2, %v9970_v2 }
  0x49   :  { %6106 = vmatprep.subr.bf16.mxu0 %v9970_v2  ;;  %6112 = vmatprep.subr.bf16.mxu1 %v9970_v2 }
  0x4e   :  { %6097 = vmatmul.mubr.msk.bf16.vlgmr.msra.gmra.mrb[36].mxu0 %vm137_vm1, %v6573_v61  ;;  %6103 = vmatmul.mubr.msk.bf16.vlgmr.msra.gmra.mrb[36].mxu1 %vm137_vm1, %v6574_v62 }
  0x4f   :  { %6107 = vmatpush3.bf16.msra.mxu0 %v1183_v63  ;;  %6113 = vmatpush3.bf16.msra.mxu1 %v1235_v0 }
  0x50   :  { %6108 = vmatprep.mubr.msk.bf16.mxu0 %vm7172_vm2, %v9970_v2  ;;  %6114 = vmatprep.mubr.msk.bf16.mxu1 %vm7172_vm2, %v9970_v2 }
  0x51   :  { %6118 = vmatprep.subr.bf16.mxu0 %v9970_v2  ;;  %6124 = vmatprep.subr.bf16.mxu1 %v9970_v2 }
  0x56   :  { %6109 = vmatmul.mubr.msk.bf16.vlgmr.msra.gmra.mrb[40].mxu0 %vm137_vm1, %v6575_v4  ;;  %6115 = vmatmul.mubr.msk.bf16.vlgmr.msra.gmra.mrb[40].mxu1 %vm137_vm1, %v6576_v5 }
  0x57   :  { %6119 = vmatpush3.bf16.msra.mxu0 %v1287_v6  ;;  %6125 = vmatpush3.bf16.msra.mxu1 %v1339_v7 }
  0x58   :  { %6120 = vmatprep.mubr.msk.bf16.mxu0 %vm7172_vm2, %v9970_v2  ;;  %6126 = vmatprep.mubr.msk.bf16.mxu1 %vm7172_vm2, %v9970_v2 }
  0x59   :  { %6130 = vmatprep.subr.bf16.mxu0 %v9970_v2  ;;  %6136 = vmatprep.subr.bf16.mxu1 %v9970_v2 }
  0x5e   :  { %6121 = vmatmul.mubr.msk.bf16.vlgmr.msra.gmra.mrb[44].mxu0 %vm137_vm1, %v6577_v10  ;;  %6127 = vmatmul.mubr.msk.bf16.vlgmr.msra.gmra.mrb[44].mxu1 %vm137_vm1, %v6578_v11 }
  0x5f   :  { %6131 = vmatpush3.bf16.msra.mxu0 %v1391_v12  ;;  %6137 = vmatpush3.bf16.msra.mxu1 %v1443_v13 }
  0x60   :  { %6132 = vmatprep.mubr.msk.bf16.mxu0 %vm7172_vm2, %v9970_v2  ;;  %6138 = vmatprep.mubr.msk.bf16.mxu1 %vm7172_vm2, %v9970_v2 }
  0x61   :  { %6142 = vmatprep.subr.bf16.mxu0 %v9970_v2  ;;  %6148 = vmatprep.subr.bf16.mxu1 %v9970_v2 }
  0x66   :  { %6133 = vmatmul.mubr.msk.bf16.vlgmr.msra.gmra.mrb[48].mxu0 %vm137_vm1, %v6579_v16  ;;  %6139 = vmatmul.mubr.msk.bf16.vlgmr.msra.gmra.mrb[48].mxu1 %vm137_vm1, %v6580_v17 }
  0x67   :  { %6143 = vmatpush3.bf16.msra.mxu0 %v1495_v18  ;;  %6149 = vmatpush3.bf16.msra.mxu1 %v1547_v19 }
  0x68   :  { %6144 = vmatprep.mubr.msk.bf16.mxu0 %vm7172_vm2, %v9970_v2  ;;  %6150 = vmatprep.mubr.msk.bf16.mxu1 %vm7172_vm2, %v9970_v2 }
  0x69   :  { %6154 = vmatprep.subr.bf16.mxu0 %v9970_v2  ;;  %6160 = vmatprep.subr.bf16.mxu1 %v9970_v2 }
  0x6e   :  { %6145 = vmatmul.mubr.msk.bf16.vlgmr.msra.gmra.mrb[52].mxu0 %vm137_vm1, %v6581_v22  ;;  %6151 = vmatmul.mubr.msk.bf16.vlgmr.msra.gmra.mrb[52].mxu1 %vm137_vm1, %v6582_v23 }
  0x6f   :  { %6155 = vmatpush3.bf16.msra.mxu0 %v1599_v24  ;;  %6161 = vmatpush3.bf16.msra.mxu1 %v1651_v25 }
  0x70   :  { %6156 = vmatprep.mubr.msk.bf16.mxu0 %vm7172_vm2, %v9970_v2  ;;  %6162 = vmatprep.mubr.msk.bf16.mxu1 %vm7172_vm2, %v9970_v2 }
  0x71   :  { %6166 = vmatprep.subr.bf16.mxu0 %v9970_v2  ;;  %6172 = vmatprep.subr.bf16.mxu1 %v9970_v2 }
  0x76   :  { %6157 = vmatmul.mubr.msk.bf16.vlgmr.msra.gmra.mrb[56].mxu0 %vm137_vm1, %v6583_v28  ;;  %6163 = vmatmul.mubr.msk.bf16.vlgmr.msra.gmra.mrb[56].mxu1 %vm137_vm1, %v6584_v29 }
  0x77   :  { %6167 = vmatpush3.bf16.msra.mxu0 %v1703_v30  ;;  %6173 = vmatpush3.bf16.msra.mxu1 %v1755_v31 }
  0x78   :  { %6168 = vmatprep.mubr.msk.bf16.mxu0 %vm7172_vm2, %v9970_v2  ;;  %6174 = vmatprep.mubr.msk.bf16.mxu1 %vm7172_vm2, %v9970_v2 }
  0x79   :  { %6178 = vmatprep.subr.bf16.mxu0 %v9970_v2  ;;  %6198 = vmatprep.subr.bf16.mxu1 %v9970_v2 }
  0x7e   :  { %6169 = vmatmul.mubr.msk.bf16.vlgmr.msra.gmra.mrb[60].mxu0 %vm137_vm1, %v6585_v32  ;;  %6175 = vmatmul.mubr.msk.bf16.vlgmr.msra.gmra.mrb[60].mxu1 %vm137_vm1, %v6586_v33 }
  0x7f   :  { %6194 = vmatprep.mubr.msk.bf16.mxu0 %vm7172_vm2, %v9970_v2  ;;  %6200 = vmatprep.mubr.msk.bf16.mxu1 %vm7172_vm2, %v9970_v2 }
  0x80   :  { %6179 = vmatpush3.bf16.msra.mxu0 %v7562_v34 }
  0x81   :  { %6180 = vmatprep.subr.bf16.mxu0 %v9970_v2 }
  0x84   :  { %6181 = vmatpush3.bf16.msra.mxu0 %v7569_v35 }
  0x85   :  { %6182 = vmatprep.subr.bf16.mxu0 %v9970_v2 }
  0x88   :  { %6183 = vmatpush3.bf16.msra.mxu0 %v7576_v36 }
  0x89   :  { %6184 = vmatprep.subr.bf16.mxu0 %v9970_v2 }
  0x8c   :  { %6185 = vmatpush3.bf16.msra.mxu0 %v7583_v37 }
  0x8d   :  { %6186 = vmatprep.subr.bf16.mxu0 %v9970_v2 }
  0x90   :  { %6187 = vmatpush3.bf16.msra.mxu0 %v7590_v38 }
  0x91   :  { %6188 = vmatprep.subr.bf16.mxu0 %v9970_v2 }
  0x94   :  { %6189 = vmatpush3.bf16.msra.mxu0 %v7597_v39 }
  0x95   :  { %6190 = vmatprep.subr.bf16.mxu0 %v9970_v2 }
  0x98   :  { %6191 = vmatpush3.bf16.msra.mxu0 %v7604_v40 }
  0x99   :  { %6192 = vmatprep.subr.bf16.mxu0 %v9970_v2 }
  0x9c   :  { %6193 = vmatpush3.bf16.msra.mxu0 %v7611_v41 }
  0xd9   :  { %v7613_v42 = vpop.f32.mrb[0].mxu0  ;;  %v7615_v43 = vpop.f32.mrb[0].mxu1 }
  0xda   :  { %10263 = vst [vmem:[#allocation5_spill] sm:$0xff] %v7613_v42  ;;  %10264 = vst [vmem:[#allocation6_spill] sm:$0xff] %v7615_v43  ;;  %v1798_v44 = vadd.f32 %v7615_v43, %v7613_v42  ;;  %v5990_v45 = vpop.f32.mrb[1].mxu0  ;;  %v5996_v46 = vpop.f32.mrb[1].mxu1 }
  0xdb   :  { %v7619_v47 = vpop.f32.mrb[2].mxu0  ;;  %v7621_v48 = vpop.f32.mrb[2].mxu1 }
  0xdc   :  { %10265 = vst [vmem:[#allocation7_spill] sm:$0xff] %v7619_v47  ;;  %10266 = vst [vmem:[#allocation8_spill] sm:$0xff] %v7621_v48  ;;  %v1829_v49 = vadd.f32 %v7621_v48, %v7619_v47  ;;  %v5991_v50 = vpop.f32.mrb[3].mxu0  ;;  %v5997_v51 = vpop.f32.mrb[3].mxu1 }
  0xe1   :  { %v7626_v52 = vpop.f32.mrb[4].mxu0  ;;  %v7628_v53 = vpop.f32.mrb[4].mxu1 }
  0xe2   :  { %10267 = vst [vmem:[#allocation9_spill] sm:$0xff] %v7626_v52  ;;  %10268 = vst [vmem:[#allocation10_spill] sm:$0xff] %v7628_v53  ;;  %v1799_v54 = vadd.f32 %v1798_v44, %v7626_v52  ;;  %v6002_v55 = vpop.f32.mrb[5].mxu0  ;;  %v6008_v56 = vpop.f32.mrb[5].mxu1 }
  0xe3   :  { %v7631_v57 = vpop.f32.mrb[6].mxu0  ;;  %v7633_v58 = vpop.f32.mrb[6].mxu1 }
  0xe4   :  { %10269 = vst [vmem:[#allocation11_spill] sm:$0xff] %v7631_v57  ;;  %10270 = vst [vmem:[#allocation12_spill] sm:$0xff] %v7633_v58  ;;  %v1800_v59 = vadd.f32 %v1799_v54, %v7628_v53  ;;  %v1830_v60 = vadd.f32 %v1829_v49, %v7631_v57  ;;  %v6003_v61 = vpop.f32.mrb[7].mxu0  ;;  %v6009_v62 = vpop.f32.mrb[7].mxu1 }
  0xe6   :  { %v1831_v63 = vadd.f32 %v1830_v60, %v7633_v58 }
  0xe9   :  { %v7638_v0 = vpop.f32.mrb[8].mxu0  ;;  %v7640_v1 = vpop.f32.mrb[8].mxu1 }
  0xea   :  { %10271 = vst [vmem:[#allocation13_spill] sm:$0xff] %v7638_v0  ;;  %10272 = vst [vmem:[#allocation14_spill] sm:$0xff] %v7640_v1  ;;  %v1801_v3 = vadd.f32 %v1800_v59, %v7638_v0  ;;  %v6014_v4 = vpop.f32.mrb[9].mxu0  ;;  %v6020_v5 = vpop.f32.mrb[9].mxu1 }
  0xeb   :  { %v7643_v6 = vpop.f32.mrb[10].mxu0  ;;  %v7645_v7 = vpop.f32.mrb[10].mxu1 }
  0xec   :  { %10273 = vst [vmem:[#allocation15_spill] sm:$0xff] %v7643_v6  ;;  %10274 = vst [vmem:[#allocation16_spill] sm:$0xff] %v7645_v7  ;;  %v1802_v8 = vadd.f32 %v1801_v3, %v7640_v1  ;;  %v1832_v9 = vadd.f32 %v1831_v63, %v7643_v6  ;;  %v6015_v10 = vpop.f32.mrb[11].mxu0  ;;  %v6021_v11 = vpop.f32.mrb[11].mxu1 }
  0xee   :  { %v1833_v12 = vadd.f32 %v1832_v9, %v7645_v7 }
  0xf1   :  { %v7650_v13 = vpop.f32.mrb[12].mxu0  ;;  %v7652_v14 = vpop.f32.mrb[12].mxu1 }
  0xf2   :  { %10275 = vst [vmem:[#allocation17_spill] sm:$0xff] %v7650_v13  ;;  %10276 = vst [vmem:[#allocation18_spill] sm:$0xff] %v7652_v14  ;;  %v1803_v15 = vadd.f32 %v1802_v8, %v7650_v13  ;;  %v6026_v16 = vpop.f32.mrb[13].mxu0  ;;  %v6032_v17 = vpop.f32.mrb[13].mxu1 }
  0xf3   :  { %v7655_v18 = vpop.f32.mrb[14].mxu0  ;;  %v7657_v19 = vpop.f32.mrb[14].mxu1 }
  0xf4   :  { %10277 = vst [vmem:[#allocation19_spill] sm:$0xff] %v7655_v18  ;;  %10278 = vst [vmem:[#allocation20_spill] sm:$0xff] %v7657_v19  ;;  %v1804_v20 = vadd.f32 %v1803_v15, %v7652_v14  ;;  %v1834_v21 = vadd.f32 %v1833_v12, %v7655_v18  ;;  %v6027_v22 = vpop.f32.mrb[15].mxu0  ;;  %v6033_v23 = vpop.f32.mrb[15].mxu1 }
  0xf6   :  { %v1835_v24 = vadd.f32 %v1834_v21, %v7657_v19 }
  0xf9   :  { %v7662_v25 = vpop.f32.mrb[16].mxu0  ;;  %v7664_v26 = vpop.f32.mrb[16].mxu1 }
  0xfa   :  { %10279 = vst [vmem:[#allocation21_spill] sm:$0xff] %v7662_v25  ;;  %10280 = vst [vmem:[#allocation22_spill] sm:$0xff] %v7664_v26  ;;  %v1805_v27 = vadd.f32 %v1804_v20, %v7662_v25  ;;  %v6038_v28 = vpop.f32.mrb[17].mxu0  ;;  %v6044_v29 = vpop.f32.mrb[17].mxu1 }
  0xfb   :  { %v7667_v30 = vpop.f32.mrb[18].mxu0  ;;  %v7669_v31 = vpop.f32.mrb[18].mxu1 }
  0xfc   :  { %10281 = vst [vmem:[#allocation23_spill] sm:$0xff] %v7667_v30  ;;  %10282 = vst [vmem:[#allocation24_spill] sm:$0xff] %v7669_v31  ;;  %v1806_v32 = vadd.f32 %v1805_v27, %v7664_v26  ;;  %v1836_v33 = vadd.f32 %v1835_v24, %v7667_v30  ;;  %v6039_v44 = vpop.f32.mrb[19].mxu0  ;;  %v6045_v45 = vpop.f32.mrb[19].mxu1 }
  0xfe   :  { %v1837_v46 = vadd.f32 %v1836_v33, %v7669_v31 }
 0x101   :  { %v7674_v49 = vpop.f32.mrb[20].mxu0  ;;  %v7676_v50 = vpop.f32.mrb[20].mxu1 }
 0x102   :  { %10283 = vst [vmem:[#allocation25_spill] sm:$0xff] %v7674_v49  ;;  %10284 = vst [vmem:[#allocation26_spill] sm:$0xff] %v7676_v50  ;;  %v1807_v51 = vadd.f32 %v1806_v32, %v7674_v49  ;;  %v6050_v54 = vpop.f32.mrb[21].mxu0  ;;  %v6056_v55 = vpop.f32.mrb[21].mxu1 }
 0x103   :  { %v7679_v56 = vpop.f32.mrb[22].mxu0  ;;  %v7681_v59 = vpop.f32.mrb[22].mxu1 }
 0x104   :  { %10285 = vst [vmem:[#allocation27_spill] sm:$0xff] %v7679_v56  ;;  %10286 = vst [vmem:[#allocation28_spill] sm:$0xff] %v7681_v59  ;;  %v1808_v60 = vadd.f32 %v1807_v51, %v7676_v50  ;;  %v1838_v61 = vadd.f32 %v1837_v46, %v7679_v56  ;;  %v6051_v62 = vpop.f32.mrb[23].mxu0  ;;  %v6057_v63 = vpop.f32.mrb[23].mxu1 }
 0x106   :  { %v1839_v3 = vadd.f32 %v1838_v61, %v7681_v59 }
 0x109   :  { %v7686_v4 = vpop.f32.mrb[24].mxu0  ;;  %v7688_v5 = vpop.f32.mrb[24].mxu1 }
 0x10a   :  { %10287 = vst [vmem:[#allocation29_spill] sm:$0xff] %v7686_v4  ;;  %10288 = vst [vmem:[#allocation30_spill] sm:$0xff] %v7688_v5  ;;  %v1809_v8 = vadd.f32 %v1808_v60, %v7686_v4  ;;  %v6062_v9 = vpop.f32.mrb[25].mxu0  ;;  %v6068_v10 = vpop.f32.mrb[25].mxu1 }
 0x10b   :  { %v7691_v11 = vpop.f32.mrb[26].mxu0  ;;  %v7693_v12 = vpop.f32.mrb[26].mxu1 }
 0x10c   :  { %10289 = vst [vmem:[#allocation31_spill] sm:$0xff] %v7691_v11  ;;  %10290 = vst [vmem:[#allocation32_spill] sm:$0xff] %v7693_v12  ;;  %v1810_v15 = vadd.f32 %v1809_v8, %v7688_v5  ;;  %v1840_v16 = vadd.f32 %v1839_v3, %v7691_v11  ;;  %v6063_v17 = vpop.f32.mrb[27].mxu0  ;;  %v6069_v20 = vpop.f32.mrb[27].mxu1 }
 0x10e   :  { %v1841_v21 = vadd.f32 %v1840_v16, %v7693_v12 }
 0x111   :  { %v7698_v22 = vpop.f32.mrb[28].mxu0  ;;  %v7700_v23 = vpop.f32.mrb[28].mxu1 }
 0x112   :  { %10291 = vst [vmem:[#allocation33_spill] sm:$0xff] %v7698_v22  ;;  %10292 = vst [vmem:[#allocation34_spill] sm:$0xff] %v7700_v23  ;;  %v1811_v24 = vadd.f32 %v1810_v15, %v7698_v22  ;;  %v6074_v27 = vpop.f32.mrb[29].mxu0  ;;  %v6080_v28 = vpop.f32.mrb[29].mxu1 }
 0x113   :  { %v7703_v29 = vpop.f32.mrb[30].mxu0  ;;  %v7705_v32 = vpop.f32.mrb[30].mxu1 }
 0x114   :  { %10293 = vst [vmem:[#allocation35_spill] sm:$0xff] %v7703_v29  ;;  %10294 = vst [vmem:[#allocation36_spill] sm:$0xff] %v7705_v32  ;;  %v1812_v33 = vadd.f32 %v1811_v24, %v7700_v23  ;;  %v1842_v44 = vadd.f32 %v1841_v21, %v7703_v29  ;;  %v6075_v45 = vpop.f32.mrb[31].mxu0  ;;  %v6081_v46 = vpop.f32.mrb[31].mxu1 }
 0x116   :  { %v1843_v51 = vadd.f32 %v1842_v44, %v7705_v32 }
 0x119   :  { %v7710_v54 = vpop.f32.mrb[32].mxu0  ;;  %v7712_v55 = vpop.f32.mrb[32].mxu1 }
 0x11a   :  { %10295 = vst [vmem:[#allocation37_spill] sm:$0xff] %v7710_v54  ;;  %10296 = vst [vmem:[#allocation38_spill] sm:$0xff] %v7712_v55  ;;  %v1813_v60 = vadd.f32 %v1812_v33, %v7710_v54  ;;  %v6086_v61 = vpop.f32.mrb[33].mxu0  ;;  %v6092_v62 = vpop.f32.mrb[33].mxu1 }
 0x11b   :  { %v7715_v63 = vpop.f32.mrb[34].mxu0  ;;  %v7717_v3 = vpop.f32.mrb[34].mxu1 }
 0x11c   :  { %10297 = vst [vmem:[#allocation39_spill] sm:$0xff] %v7715_v63  ;;  %10298 = vst [vmem:[#allocation40_spill] sm:$0xff] %v7717_v3  ;;  %v1814_v8 = vadd.f32 %v1813_v60, %v7712_v55  ;;  %v1844_v9 = vadd.f32 %v1843_v51, %v7715_v63  ;;  %v6087_v10 = vpop.f32.mrb[35].mxu0  ;;  %v6093_v15 = vpop.f32.mrb[35].mxu1 }
 0x11e   :  { %v1845_v16 = vadd.f32 %v1844_v9, %v7717_v3 }
 0x121   :  { %v7722_v17 = vpop.f32.mrb[36].mxu0  ;;  %v7724_v20 = vpop.f32.mrb[36].mxu1 }
 0x122   :  { %10299 = vst [vmem:[#allocation41_spill] sm:$0xff] %v7722_v17  ;;  %10300 = vst [vmem:[#allocation42_spill] sm:$0xff] %v7724_v20  ;;  %v1815_v21 = vadd.f32 %v1814_v8, %v7722_v17  ;;  %v6098_v24 = vpop.f32.mrb[37].mxu0  ;;  %v6104_v27 = vpop.f32.mrb[37].mxu1 }
 0x123   :  { %v7727_v28 = vpop.f32.mrb[38].mxu0  ;;  %v7729_v33 = vpop.f32.mrb[38].mxu1 }
 0x124   :  { %10301 = vst [vmem:[#allocation43_spill] sm:$0xff] %v7727_v28  ;;  %10302 = vst [vmem:[#allocation44_spill] sm:$0xff] %v7729_v33  ;;  %v1816_v44 = vadd.f32 %v1815_v21, %v7724_v20  ;;  %v1846_v45 = vadd.f32 %v1845_v16, %v7727_v28  ;;  %v6099_v46 = vpop.f32.mrb[39].mxu0  ;;  %v6105_v51 = vpop.f32.mrb[39].mxu1 }
 0x126   :  { %v1847_v60 = vadd.f32 %v1846_v45, %v7729_v33 }
 0x129   :  { %v7734_v61 = vpop.f32.mrb[40].mxu0  ;;  %v7736_v62 = vpop.f32.mrb[40].mxu1 }
 0x12a   :  { %10303 = vst [vmem:[#allocation45_spill] sm:$0xff] %v7734_v61  ;;  %10304 = vst [vmem:[#allocation46_spill] sm:$0xff] %v7736_v62  ;;  %v1817_v8 = vadd.f32 %v1816_v44, %v7734_v61  ;;  %v6110_v9 = vpop.f32.mrb[41].mxu0  ;;  %v6116_v10 = vpop.f32.mrb[41].mxu1 }
 0x12b   :  { %v7739_v15 = vpop.f32.mrb[42].mxu0  ;;  %v7741_v24 = vpop.f32.mrb[42].mxu1 }
 0x12c   :  { %10305 = vst [vmem:[#allocation47_spill] sm:$0xff] %v7739_v15  ;;  %10306 = vst [vmem:[#allocation48_spill] sm:$0xff] %v7741_v24  ;;  %v1818_v21 = vadd.f32 %v1817_v8, %v7736_v62  ;;  %v1848_v16 = vadd.f32 %v1847_v60, %v7739_v15  ;;  %v6111_v27 = vpop.f32.mrb[43].mxu0  ;;  %v6117_v46 = vpop.f32.mrb[43].mxu1 }
 0x12e   :  { %v1849_v45 = vadd.f32 %v1848_v16, %v7741_v24 }
 0x131   :  { %v7746_v51 = vpop.f32.mrb[44].mxu0  ;;  %v7748_v2 = vpop.f32.mrb[44].mxu1 }
 0x132   :  { %10307 = vst [vmem:[#allocation49_spill] sm:$0xff] %v7746_v51  ;;  %10308 = vst [vmem:[#allocation50_spill] sm:$0xff] %v7748_v2  ;;  %v1819_v44 = vadd.f32 %v1818_v21, %v7746_v51  ;;  %v6122_v9 = vpop.f32.mrb[45].mxu0  ;;  %v6128_v10 = vpop.f32.mrb[45].mxu1 }
 0x133   :  { %v7751_v61 = vpop.f32.mrb[46].mxu0  ;;  %v7753_v33 = vpop.f32.mrb[46].mxu1 }
 0x134   :  { %10309 = vst [vmem:[#allocation51_spill] sm:$0xff] %v7751_v61  ;;  %10310 = vst [vmem:[#allocation52_spill] sm:$0xff] %v7753_v33  ;;  %v1820_v8 = vadd.f32 %v1819_v44, %v7748_v2  ;;  %v1850_v60 = vadd.f32 %v1849_v45, %v7751_v61  ;;  %v6123_v27 = vpop.f32.mrb[47].mxu0  ;;  %v6129_v46 = vpop.f32.mrb[47].mxu1 }
 0x136   :  { %v1851_v16 = vadd.f32 %v1850_v60, %v7753_v33 }
 0x139   :  { %v7758_v24 = vpop.f32.mrb[48].mxu0  ;;  %v7760_v62 = vpop.f32.mrb[48].mxu1 }
 0x13a   :  { %10311 = vst [vmem:[#allocation53_spill] sm:$0xff] %v7758_v24  ;;  %10312 = vst [vmem:[#allocation54_spill] sm:$0xff] %v7760_v62  ;;  %v1821_v21 = vadd.f32 %v1820_v8, %v7758_v24  ;;  %v6134_v9 = vpop.f32.mrb[49].mxu0  ;;  %v6140_v10 = vpop.f32.mrb[49].mxu1 }
 0x13b   :  { %v7763_v51 = vpop.f32.mrb[50].mxu0  ;;  %v7765_v15 = vpop.f32.mrb[50].mxu1 }
 0x13c   :  { %10313 = vst [vmem:[#allocation55_spill] sm:$0xff] %v7763_v51  ;;  %10314 = vst [vmem:[#allocation56_spill] sm:$0xff] %v7765_v15  ;;  %v1822_v44 = vadd.f32 %v1821_v21, %v7760_v62  ;;  %v1852_v45 = vadd.f32 %v1851_v16, %v7763_v51  ;;  %v6135_v27 = vpop.f32.mrb[51].mxu0  ;;  %v6141_v46 = vpop.f32.mrb[51].mxu1 }
 0x13e   :  { %v1853_v60 = vadd.f32 %v1852_v45, %v7765_v15 }
 0x141   :  { %v7770_v33 = vpop.f32.mrb[52].mxu0  ;;  %v7772_v2 = vpop.f32.mrb[52].mxu1 }
 0x142   :  { %10315 = vst [vmem:[#allocation57_spill] sm:$0xff] %v7770_v33  ;;  %10316 = vst [vmem:[#allocation58_spill] sm:$0xff] %v7772_v2  ;;  %v1823_v8 = vadd.f32 %v1822_v44, %v7770_v33  ;;  %v6146_v9 = vpop.f32.mrb[53].mxu0  ;;  %v6152_v10 = vpop.f32.mrb[53].mxu1 }
 0x143   :  { %v7775_v24 = vpop.f32.mrb[54].mxu0  ;;  %v7777_v61 = vpop.f32.mrb[54].mxu1 }
 0x144   :  { %10317 = vst [vmem:[#allocation59_spill] sm:$0xff] %v7775_v24  ;;  %10318 = vst [vmem:[#allocation60_spill] sm:$0xff] %v7777_v61  ;;  %v1824_v21 = vadd.f32 %v1823_v8, %v7772_v2  ;;  %v1854_v16 = vadd.f32 %v1853_v60, %v7775_v24  ;;  %v6147_v27 = vpop.f32.mrb[55].mxu0  ;;  %v6153_v46 = vpop.f32.mrb[55].mxu1 }
 0x146   :  { %v1855_v45 = vadd.f32 %v1854_v16, %v7777_v61 }
 0x149   :  { %v7782_v15 = vpop.f32.mrb[56].mxu0  ;;  %v7784_v62 = vpop.f32.mrb[56].mxu1 }
 0x14a   :  { %10319 = vst [vmem:[#allocation61_spill] sm:$0xff] %v7782_v15  ;;  %10320 = vst [vmem:[#allocation62_spill] sm:$0xff] %v7784_v62  ;;  %v1825_v44 = vadd.f32 %v1824_v21, %v7782_v15  ;;  %v6158_v9 = vpop.f32.mrb[57].mxu0  ;;  %v6164_v10 = vpop.f32.mrb[57].mxu1 }
 0x14b   :  { %v7787_v33 = vpop.f32.mrb[58].mxu0  ;;  %v7789_v51 = vpop.f32.mrb[58].mxu1 }
 0x14c   :  { %10321 = vst [vmem:[#allocation63_spill] sm:$0xff] %v7787_v33  ;;  %10322 = vst [vmem:[#allocation64_spill] sm:$0xff] %v7789_v51  ;;  %v1826_v8 = vadd.f32 %v1825_v44, %v7784_v62  ;;  %v1856_v60 = vadd.f32 %v1855_v45, %v7787_v33  ;;  %v6159_v27 = vpop.f32.mrb[59].mxu0  ;;  %v6165_v46 = vpop.f32.mrb[59].mxu1 }
 0x14e   :  { %v1857_v16 = vadd.f32 %v1856_v60, %v7789_v51 }
 0x151   :  { %v7794_v61 = vpop.f32.mrb[60].mxu0  ;;  %v7796_v2 = vpop.f32.mrb[60].mxu1 }
 0x152   :  { %10323 = vst [vmem:[#allocation65_spill] sm:$0xff] %v7794_v61  ;;  %10324 = vst [vmem:[#allocation66_spill] sm:$0xff] %v7796_v2  ;;  %v1827_v21 = vadd.f32 %v1826_v8, %v7794_v61  ;;  %v6170_v9 = vpop.f32.mrb[61].mxu0  ;;  %v6176_v10 = vpop.f32.mrb[61].mxu1 }
 0x153   :  { %v7799_v15 = vpop.f32.mrb[62].mxu0  ;;  %v7801_v24 = vpop.f32.mrb[62].mxu1 }
 0x154   :  { %10325 = vst [vmem:[#allocation67_spill] sm:$0xff] %v7799_v15  ;;  %10326 = vst [vmem:[#allocation68_spill] sm:$0xff] %v7801_v24  ;;  %v1828_v44 = vadd.f32 %v1827_v21, %v7796_v2  ;;  %v1858_v45 = vadd.f32 %v1857_v16, %v7799_v15  ;;  %v6171_v27 = vpop.f32.mrb[63].mxu0  ;;  %v6177_v46 = vpop.f32.mrb[63].mxu1  ;;  %v7817_v16 = vld [vmem:[%s9967_s2] sm:$0xf] }
 0x155   :  { %10327 = vst [vmem:[#allocation69_spill] sm:$0xff] %v7817_v16  ;;  %v7821_v21 = vsel %vm141_vm0, %v7817_v16, 0  ;;  %6548 = vmatprep.subr.msk.bf16.mxu0 %vm141_vm0, %v7817_v16 }
 0x156   :  { %v7805_v62 = vmul.f32 0.125, %v1828_v44  ;;  %v1859_v60 = vadd.f32 %v1858_v45, %v7801_v24  ;;  %10328 = vst [vmem:[#allocation70_spill] sm:$0xff] %v7821_v21  ;;  %6199 = vmatpush3.bf16.msra.mxu1 %v7821_v21  ;;  %v10329_v44 = vmov 0.0  }
 0x157   :  { %6204 = vmatprep.subr.bf16.mxu1 %v7562_v34 }
 0x158   :  { %v7808_v51 = vmul.f32 0.125, %v1859_v60  ;;  %v1862_v8 = vmul.f32 %v7805_v62, %v7805_v62 }
 0x15a   :  { %v1863_v9 = vmul.f32 %v7808_v51, %v7808_v51 }
 0x15c   :  { %v1864_v10 = vpack.c.bf16 %v1863_v9, %v1862_v8 }
 0x15e   :  { %6195 = vmatmul.mubr.bf16.vlgmr.msra.gmra.mrb[64].mxu0 %v1864_v10 }
 0x15f   :  { %6285 = vmatpush3.bf16.msra.mxu0 %v7821_v21 }
 0x160   :  { %6350 = vmatprep.subr.bf16.mxu0 %v10329_v44 }
 0x231   :  { %v1947_v45 = vpop.f32.mrb[64].mxu0 }
 0x232   :  { %6595 = vrsqrt.f32 %v1947_v45  ;;  %v6196_v27 = vpop.f32.mrb[65].mxu0  ;;  %vm1958_vm3 = vcmp.eq.f32.partialorder %v1947_v45, inf  ;;  %v1961_v24 = vand.u32 2147483648, %v1947_v45  ;;  %vm1960_vm4 = vcmp.eq.f32.partialorder %v1947_v45, 0.0 }
 0x233   :  { %v1950_v46 = vpop.f32.mrb[66].mxu0  ;;  %v1954_v20 = vadd.f32 1.0, %v1947_v45 }
 0x234   :  { %6597 = vrsqrt.f32 %v1950_v46  ;;  %v6197_v60 = vpop.f32.mrb[67].mxu0  ;;  %vm1965_vm5 = vcmp.eq.f32.partialorder %v1950_v46, inf  ;;  %v1968_v33 = vand.u32 2147483648, %v1950_v46  ;;  %vm1967_vm6 = vcmp.eq.f32.partialorder %v1950_v46, 0.0 }
 0x235   :  { %v1955_v55 = vadd.f32 1.0, %v1950_v46 }
 0x23c   :  { %v6596_v8 = vpop.eup %6595 }
 0x23d   :  { %v1957_v9 = vmul.f32 %v6596_v8, %v1947_v45 }
 0x23e   :  { %v6598_v10 = vpop.eup %6597 }
 0x23f   :  { %v1959_v2 = vsel %vm1958_vm3, %v1947_v45, %v1957_v9  ;;  %v1964_v15 = vmul.f32 %v6598_v10, %v1950_v46  ;;  %v10332_v10 = vld [vmem:[#allocation37_spill] sm:$0xff] }
 0x240   :  { %v1962_v61 = vsel %vm1960_vm4, %v1961_v24, %v1959_v2 }
 0x241   :  { %v1970_v28 = vadd.f32 1e-08, %v1962_v61  ;;  %v1966_v17 = vsel %vm1965_vm5, %v1950_v46, %v1964_v15 }
 0x242   :  { %v1969_v3 = vsel %vm1967_vm6, %v1968_v33, %v1966_v17 }
 0x243   :  { %v1972_v27 = vmul.f32 %v1970_v28, %v1954_v20  ;;  %v1971_v63 = vadd.f32 1e-08, %v1969_v3 }
 0x245   :  { %6599 = vrcp.f32 %v1972_v27  ;;  %v1973_v60 = vmul.f32 %v1971_v63, %v1955_v55 }
 0x247   :  { %6601 = vrcp.f32 %v1973_v60 }
 0x24f   :  { %v6600_v8 = vpop.eup %6599 }
 0x250   :  { %v1976_v32 = vmul.f32 %v6600_v8, %v1947_v45 }
 0x251   :  { %v6602_v54 = vpop.eup %6601 }
 0x252   :  { %v1977_v9 = vmul.f32 %v6602_v54, %v1950_v46 }
 0x254   :  { %v1978_v16 = vpack.c.bf16 %v1977_v9, %v1976_v32 }
 0x256   :  { %6201 = vmatmul.mubr.msk.bf16.vlgmr.msra.gmra.mrb[64].mxu1 %vm137_vm1, %v1978_v16 }
 0x257   :  { %6205 = vmatpush3.bf16.msra.mxu1 %v7562_v34 }
 0x258   :  { %6206 = vmatprep.subr.bf16.mxu1 %v7569_v35 }
 0x25b   :  { %6207 = vmatpush3.bf16.msra.mxu1 %v7569_v35 }
 0x25c   :  { %6208 = vmatprep.subr.bf16.mxu1 %v7576_v36 }
 0x25f   :  { %6209 = vmatpush3.bf16.msra.mxu1 %v7576_v36 }
 0x260   :  { %6210 = vmatprep.subr.bf16.mxu1 %v7583_v37 }
 0x263   :  { %6211 = vmatpush3.bf16.msra.mxu1 %v7583_v37 }
 0x264   :  { %6212 = vmatprep.subr.bf16.mxu1 %v7590_v38 }
 0x267   :  { %6213 = vmatpush3.bf16.msra.mxu1 %v7590_v38 }
 0x268   :  { %6214 = vmatprep.subr.bf16.mxu1 %v7597_v39 }
 0x26b   :  { %6215 = vmatpush3.bf16.msra.mxu1 %v7597_v39 }
 0x26c   :  { %6216 = vmatprep.subr.bf16.mxu1 %v7604_v40 }
 0x26f   :  { %6217 = vmatpush3.bf16.msra.mxu1 %v7604_v40 }
 0x270   :  { %6218 = vmatprep.subr.bf16.mxu1 %v7611_v41 }
 0x273   :  { %6219 = vmatpush3.bf16.msra.mxu1 %v7611_v41 }
 0x274   :  { %6370 = vmatprep.subr.bf16.mxu1 %v10329_v44 }
 0x329   :  { %v2019_v2 = vpop.f32.mrb[64].mxu1 }
 0x32a   :  { %v7847_v34 = vmul.f32 %v2019_v2, %v7805_v62  ;;  %v6202_v35 = vpop.f32.mrb[65].mxu1 }
 0x32b   :  { %v2022_v36 = vpop.f32.mrb[66].mxu1 }
 0x32c   :  { %v2030_v37 = vmul.f32 %v7847_v34, %v7615_v43  ;;  %v7852_v38 = vmul.f32 %v2022_v36, %v7808_v51  ;;  %v6203_v39 = vpop.f32.mrb[67].mxu1  ;;  %v2028_v40 = vmul.f32 %v7847_v34, %v7613_v42  ;;  %v2032_v41 = vmul.f32 %v7847_v34, %v7626_v52  ;;  %v10331_v36 = vld [vmem:[#allocation36_spill] sm:$0xff] }
 0x32d   :  { %v2034_v32 = vmul.f32 %v7847_v34, %v7628_v53  ;;  %v7862_v54 = vmul.f32 %v7847_v34, %v7638_v0  ;;  %v7866_v55 = vmul.f32 %v7847_v34, %v7640_v1  ;;  %v7870_v63 = vmul.f32 %v7847_v34, %v7650_v13 }
 0x32e   :  { %v2031_v3 = vmul.f32 %v7852_v38, %v7621_v48  ;;  %v2029_v17 = vmul.f32 %v7852_v38, %v7619_v47  ;;  %v2033_v20 = vmul.f32 %v7852_v38, %v7631_v57  ;;  %v2035_v28 = vmul.f32 %v7852_v38, %v7633_v58 }
 0x32f   :  { %v2037_v33 = vmul.f32 %v7852_v38, %v7643_v6  ;;  %v7884_v61 = vmul.f32 %v7852_v38, %v7645_v7  ;;  %v7888_v62 = vmul.f32 %v7852_v38, %v7655_v18  ;;  %v7892_v15 = vmul.f32 %v7847_v34, %v7652_v14 }
 0x330   :  { %v2092_v24 = vpack.c.bf16 %v2029_v17, %v2028_v40  ;;  %v2093_v51 = vpack.c.bf16 %v2031_v3, %v2030_v37  ;;  %v2094_v16 = vpack.c.bf16 %v2033_v20, %v2032_v41  ;;  %v2095_v45 = vpack.c.bf16 %v2035_v28, %v2034_v32  ;;  %v10330_v32 = vld [vmem:[#allocation69_spill] sm:$0xff] }
 0x331   :  { %v2096_v46 = vpack.c.bf16 %v2037_v33, %v7862_v54  ;;  %v7901_v60 = vmul.f32 %v7852_v38, %v7657_v19  ;;  %v7905_v8 = vmul.f32 %v7847_v34, %v7662_v25  ;;  %v7909_v9 = vmul.f32 %v7852_v38, %v7667_v30  ;;  %v10359_v19 = vld [vmem:[#allocation64_spill] sm:$0xff] }
 0x332   :  { %6220 = vmatprep.mubr.bf16.mxu1 %v2092_v24  ;;  %v7913_v2 = vmul.f32 %v7847_v34, %v7664_v26  ;;  %v7917_v35 = vmul.f32 %v7852_v38, %v7669_v31  ;;  %v7923_v37 = vmul.f32 %v7847_v34, %v7674_v49  ;;  %v7927_v39 = vmul.f32 %v7852_v38, %v7679_v56  ;;  %v10340_v56 = vld [vmem:[#allocation45_spill] sm:$0xff]  ;;  %v10343_v49 = vld [vmem:[#allocation48_spill] sm:$0xff] }
 0x333   :  { %6221 = vmatmul.mubr.bf16.vlgmr.msra.gmra.mrb[68].mxu1 %v2093_v51  ;;  %v7931_v40 = vmul.f32 %v7847_v34, %v7676_v50  ;;  %v7939_v54 = vmul.f32 %v7852_v38, %v7681_v59  ;;  %v7943_v3 = vmul.f32 %v7847_v34, %v7686_v4  ;;  %v7949_v20 = vmul.f32 %v7852_v38, %v7691_v11  ;;  %v10338_v4 = vld [vmem:[#allocation42_spill] sm:$0xff]  ;;  %v10351_v31 = vld [vmem:[#allocation56_spill] sm:$0xff]  ;;  %v10356_v26 = vld [vmem:[#allocation61_spill] sm:$0xff] }
 0x334   :  { %6224 = vmatprep.mubr.bf16.mxu1 %v2094_v16  ;;  %v7953_v28 = vmul.f32 %v7847_v34, %v7688_v5  ;;  %v7957_v33 = vmul.f32 %v7852_v38, %v7693_v12  ;;  %6371 = vmatpush3.bf16.msra.mxu1 %v7821_v21  ;;  %v7964_v51 = vmul.f32 %v7847_v34, %v7698_v22  ;;  %v10333_v22 = vld [vmem:[#allocation39_spill] sm:$0xff]  ;;  %v10339_v5 = vld [vmem:[#allocation44_spill] sm:$0xff]  ;;  %v10342_v59 = vld [vmem:[#allocation46_spill] sm:$0xff] }
 0x335   :  { %v7968_v16 = vmul.f32 %v7852_v38, %v7703_v29  ;;  %v7972_v17 = vmul.f32 %v7847_v34, %v7700_v23  ;;  %6549 = vmatprep.subr.msk.bf16.mxu1 %vm141_vm0, %v10330_v32  ;;  %v2104_v41 = vpack.c.bf16 %v7949_v20, %v7943_v3  ;;  %v7982_v27 = vmul.f32 %v7852_v38, %v10331_v36  ;;  %v10334_v23 = vld [vmem:[#allocation38_spill] sm:$0xff]  ;;  %v10335_v20 = vld [vmem:[#allocation40_spill] sm:$0xff]  ;;  %v10336_v36 = vld [vmem:[#allocation41_spill] sm:$0xff] }
 0x336   :  { %v2105_v24 = vpack.c.bf16 %v7957_v33, %v7953_v28  ;;  %v7986_v21 = vmul.f32 %v7847_v34, %v10332_v10  ;;  %v2061_v32 = vmul.f32 %v7852_v38, %v10333_v22  ;;  %v2062_v3 = vmul.f32 %v7847_v34, %v10334_v23  ;;  %v10337_v10 = vld [vmem:[#allocation43_spill] sm:$0xff] }
 0x337   :  { %v2106_v29 = vpack.c.bf16 %v7968_v16, %v7964_v51  ;;  %v2063_v28 = vmul.f32 %v7852_v38, %v10335_v20  ;;  %v2107_v33 = vpack.c.bf16 %v7982_v27, %v7972_v17  ;;  %v2064_v11 = vmul.f32 %v7847_v34, %v10336_v36  ;;  %v10341_v17 = vld [vmem:[#allocation47_spill] sm:$0xff] }
 0x338   :  { %v2065_v12 = vmul.f32 %v7852_v38, %v10337_v10  ;;  %v2066_v51 = vmul.f32 %v7847_v34, %v10338_v4  ;;  %v2108_v16 = vpack.c.bf16 %v2061_v32, %v7986_v21  ;;  %v2067_v23 = vmul.f32 %v7852_v38, %v10339_v5  ;;  %v10344_v32 = vld [vmem:[#allocation49_spill] sm:$0xff] }
 0x339   :  { %v2109_v22 = vpack.c.bf16 %v2063_v28, %v2062_v3  ;;  %v2068_v20 = vmul.f32 %v7847_v34, %v10340_v56  ;;  %v2069_v36 = vmul.f32 %v7852_v38, %v10341_v17  ;;  %v2070_v10 = vmul.f32 %v7847_v34, %v10342_v59  ;;  %v10345_v28 = vld [vmem:[#allocation51_spill] sm:$0xff]  ;;  %v10346_v56 = vld [vmem:[#allocation50_spill] sm:$0xff]  ;;  %v10347_v17 = vld [vmem:[#allocation52_spill] sm:$0xff] }
 0x33a   :  { %v2110_v27 = vpack.c.bf16 %v2065_v12, %v2064_v11  ;;  %v2071_v4 = vmul.f32 %v7852_v38, %v10343_v49  ;;  %v2111_v21 = vpack.c.bf16 %v2067_v23, %v2066_v51  ;;  %v2072_v3 = vmul.f32 %v7847_v34, %v10344_v32  ;;  %v10348_v59 = vld [vmem:[#allocation53_spill] sm:$0xff]  ;;  %v10350_v51 = vld [vmem:[#allocation54_spill] sm:$0xff] }
 0x33b   :  { %6225 = vmatmul.mubr.bf16.gmra.mrb[72].mxu1 %v2095_v45  ;;  %v2073_v5 = vmul.f32 %v7852_v38, %v10345_v28  ;;  %v2074_v11 = vmul.f32 %v7847_v34, %v10346_v56  ;;  %v2112_v12 = vpack.c.bf16 %v2069_v36, %v2068_v20  ;;  %v2075_v50 = vmul.f32 %v7852_v38, %v10347_v17  ;;  %v10352_v56 = vld [vmem:[#allocation57_spill] sm:$0xff]  ;;  %v10354_v20 = vld [vmem:[#allocation58_spill] sm:$0xff]  ;;  %v10355_v17 = vld [vmem:[#allocation60_spill] sm:$0xff] }
 0x33c   :  { %6228 = vmatprep.mubr.bf16.mxu1 %v2096_v46  ;;  %v2113_v45 = vpack.c.bf16 %v2071_v4, %v2070_v10  ;;  %v2076_v30 = vmul.f32 %v7847_v34, %v10348_v59  ;;  %v10349_v46 = vld [vmem:[#allocation55_spill] sm:$0xff]  ;;  %v2078_v32 = vmul.f32 %v7847_v34, %v10350_v51  ;;  %v2079_v28 = vmul.f32 %v7852_v38, %v10351_v31 }
 0x33d   :  { %v2114_v49 = vpack.c.bf16 %v2073_v5, %v2072_v3  ;;  %v2077_v23 = vmul.f32 %v7852_v38, %v10349_v46  ;;  %v2115_v25 = vpack.c.bf16 %v2075_v50, %v2074_v11  ;;  %v2080_v4 = vmul.f32 %v7847_v34, %v10352_v56  ;;  %v10353_v10 = vld [vmem:[#allocation59_spill] sm:$0xff]  ;;  %v10358_v11 = vld [vmem:[#allocation62_spill] sm:$0xff] }
 0x33e   :  { %v2081_v36 = vmul.f32 %v7852_v38, %v10353_v10  ;;  %v2082_v59 = vmul.f32 %v7847_v34, %v10354_v20  ;;  %v2117_v3 = vpack.c.bf16 %v2079_v28, %v2078_v32  ;;  %v2083_v46 = vmul.f32 %v7852_v38, %v10355_v17  ;;  %v10357_v31 = vld [vmem:[#allocation63_spill] sm:$0xff]  ;;  %v10360_v20 = vld [vmem:[#allocation65_spill] sm:$0xff] }
 0x33f   :  { %v2116_v5 = vpack.c.bf16 %v2077_v23, %v2076_v30  ;;  %v2084_v51 = vmul.f32 %v7847_v34, %v10356_v26  ;;  %v2085_v50 = vmul.f32 %v7852_v38, %v10357_v31  ;;  %v2086_v56 = vmul.f32 %v7847_v34, %v10358_v11  ;;  %v10361_v32 = vld [vmem:[#allocation67_spill] sm:$0xff]  ;;  %v10362_v23 = vld [vmem:[#allocation66_spill] sm:$0xff]  ;;  %v10364_v11 = vld [vmem:[#allocation68_spill] sm:$0xff] }
 0x340   :  { %v2118_v18 = vpack.c.bf16 %v2081_v36, %v2080_v4  ;;  %v2087_v10 = vmul.f32 %v7852_v38, %v10359_v19  ;;  %v2119_v13 = vpack.c.bf16 %v2083_v46, %v2082_v59  ;;  %v2088_v30 = vmul.f32 %v7847_v34, %v10360_v20 }
 0x341   :  { %v2089_v28 = vmul.f32 %v7852_v38, %v10361_v32  ;;  %v2090_v26 = vmul.f32 %v7847_v34, %v10362_v23  ;;  %v10363_v4 = vpack.c.bf16 %v7884_v61, %v7866_v55  ;;  %v2120_v36 = vpack.c.bf16 %v2085_v50, %v2084_v51 }
 0x342   :  { %v2121_v31 = vpack.c.bf16 %v2087_v10, %v2086_v56  ;;  %v2091_v17 = vmul.f32 %v7852_v38, %v10364_v11  ;;  %v10365_v59 = vpack.c.bf16 %v7888_v62, %v7870_v63  ;;  %v10366_v32 = vpack.c.bf16 %v7901_v60, %v7892_v15 }
 0x343   :  { %6229 = vmatmul.mubr.bf16.gmra.mrb[76].mxu1 %v10363_v4  ;;  %v2122_v46 = vpack.c.bf16 %v2089_v28, %v2088_v30  ;;  %v10367_v34 = vpack.c.bf16 %v7909_v9, %v7905_v8  ;;  %v10368_v56 = vpack.c.bf16 %v7917_v35, %v7913_v2  ;;  %v10369_v38 = vpack.c.bf16 %v7927_v39, %v7923_v37 }
 0x344   :  { %6232 = vmatprep.mubr.bf16.mxu1 %v10365_v59  ;;  %v2123_v20 = vpack.c.bf16 %v2091_v17, %v2090_v26  ;;  %v10370_v55 = vpack.c.bf16 %v7939_v54, %v7931_v40 }
 0x34b   :  { %6233 = vmatmul.mubr.bf16.gmra.mrb[80].mxu1 %v10366_v32 }
 0x34c   :  { %6236 = vmatprep.mubr.bf16.mxu1 %v10367_v34 }
 0x353   :  { %6237 = vmatmul.mubr.bf16.gmra.mrb[84].mxu1 %v10368_v56 }
 0x354   :  { %6240 = vmatprep.mubr.bf16.mxu1 %v10369_v38 }
 0x35b   :  { %6241 = vmatmul.mubr.bf16.gmra.mrb[88].mxu1 %v10370_v55 }
 0x35c   :  { %6244 = vmatprep.mubr.bf16.mxu1 %v2104_v41 }
 0x363   :  { %6245 = vmatmul.mubr.bf16.gmra.mrb[92].mxu1 %v2105_v24 }
 0x364   :  { %6248 = vmatprep.mubr.bf16.mxu1 %v2106_v29 }
 0x36b   :  { %6249 = vmatmul.mubr.bf16.gmra.mrb[96].mxu1 %v2107_v33 }
 0x36c   :  { %6252 = vmatprep.mubr.bf16.mxu1 %v2108_v16 }
 0x373   :  { %6253 = vmatmul.mubr.bf16.gmra.mrb[100].mxu1 %v2109_v22 }
 0x374   :  { %6256 = vmatprep.mubr.bf16.mxu1 %v2110_v27 }
 0x37b   :  { %6257 = vmatmul.mubr.bf16.gmra.mrb[104].mxu1 %v2111_v21 }
 0x37c   :  { %6260 = vmatprep.mubr.bf16.mxu1 %v2112_v12 }
 0x383   :  { %6261 = vmatmul.mubr.bf16.gmra.mrb[108].mxu1 %v2113_v45 }
 0x384   :  { %6264 = vmatprep.mubr.bf16.mxu1 %v2114_v49 }
 0x38b   :  { %6265 = vmatmul.mubr.bf16.gmra.mrb[112].mxu1 %v2115_v25 }
 0x38c   :  { %6268 = vmatprep.mubr.bf16.mxu1 %v2116_v5 }
 0x393   :  { %6269 = vmatmul.mubr.bf16.gmra.mrb[116].mxu1 %v2117_v3 }
 0x394   :  { %6272 = vmatprep.mubr.bf16.mxu1 %v2118_v18 }
 0x39b   :  { %6273 = vmatmul.mubr.bf16.gmra.mrb[120].mxu1 %v2119_v13 }
 0x39c   :  { %6276 = vmatprep.mubr.bf16.mxu1 %v2120_v36 }
 0x3a3   :  { %6277 = vmatmul.mubr.bf16.gmra.mrb[124].mxu1 %v2121_v31 }
 0x3a4   :  { %6280 = vmatprep.mubr.bf16.mxu1 %v2122_v46 }
 0x3ab   :  { %6281 = vmatmul.mubr.bf16.gmra.mrb[128].mxu1 %v2123_v20 }
 0x3ac   :  { %6372 = vmatprep.mubr.msk.bf16.mxu1 %vm7172_vm2, %v10329_v44 }
 0x406   :  { %v8078_v26 = vpop.f32.mrb[68].mxu1 }
 0x407   :  { %10371 = vst [vmem:[#allocation69_spill] sm:$0xff] %v8078_v26  ;;  %v8080_v22 = vpop.f32.mrb[69].mxu1  ;;  %v2419_v29 = vsel %vm137_vm1, %v8078_v26, -inf }
 0x408   :  { %10372 = vst [vmem:[#allocation71_spill] sm:$0xff] %v8080_v22  ;;  %2420 = vmax.xlane.f32.xlu1 %v2419_v29  ;;  %v8084_v25 = vpop.f32.mrb[70].mxu1  ;;  %v2413_v13 = vsel %vm137_vm1, %v8080_v22, -inf }
 0x409   :  { %10373 = vst [vmem:[#allocation72_spill] sm:$0xff] %v8084_v25  ;;  %2414 = vmax.xlane.f32.xlu0 %v2413_v13  ;;  %v8088_v18 = vpop.f32.mrb[71].mxu1  ;;  %v2422_v31 = vsel %vm137_vm1, %v8084_v25, -inf }
 0x40a   :  { %10374 = vst [vmem:[#allocation73_spill] sm:$0xff] %v8088_v18  ;;  %v2416_v49 = vsel %vm137_vm1, %v8088_v18, -inf }
 0x40c   :  { %2423 = vmax.xlane.f32.xlu1 %v2422_v31 }
 0x40d   :  { %2417 = vmax.xlane.f32.xlu0 %v2416_v49 }
 0x40e   :  { %v8094_v63 = vpop.f32.mrb[72].mxu1 }
 0x40f   :  { %10375 = vst [vmem:[#allocation74_spill] sm:$0xff] %v8094_v63  ;;  %v8096_v61 = vpop.f32.mrb[73].mxu1  ;;  %v2431_v62 = vsel %vm137_vm1, %v8094_v63, -inf }
 0x410   :  { %10376 = vst [vmem:[#allocation75_spill] sm:$0xff] %v8096_v61  ;;  %v8100_v15 = vpop.f32.mrb[74].mxu1  ;;  %v2425_v9 = vsel %vm137_vm1, %v8096_v61, -inf }
 0x411   :  { %10377 = vst [vmem:[#allocation76_spill] sm:$0xff] %v8100_v15  ;;  %2432 = vmax.xlane.f32.xlu0 %v2431_v62  ;;  %v8102_v60 = vpop.f32.mrb[75].mxu1  ;;  %v2434_v8 = vsel %vm137_vm1, %v8100_v15, -inf }
 0x412   :  { %10378 = vst [vmem:[#allocation77_spill] sm:$0xff] %v8102_v60  ;;  %2435 = vmax.xlane.f32.xlu1 %v2434_v8  ;;  %v2428_v2 = vsel %vm137_vm1, %v8102_v60, -inf }
 0x415   :  { %2426 = vmax.xlane.f32.xlu0 %v2425_v9 }
 0x416   :  { %2429 = vmax.xlane.f32.xlu1 %v2428_v2  ;;  %v8110_v35 = vpop.f32.mrb[76].mxu1 }
 0x417   :  { %10379 = vst [vmem:[#allocation78_spill] sm:$0xff] %v8110_v35  ;;  %v8112_v37 = vpop.f32.mrb[77].mxu1  ;;  %v2443_v39 = vsel %vm137_vm1, %v8110_v35, -inf }
 0x418   :  { %10380 = vst [vmem:[#allocation79_spill] sm:$0xff] %v8112_v37  ;;  %v8116_v40 = vpop.f32.mrb[78].mxu1  ;;  %v2437_v24 = vsel %vm137_vm1, %v8112_v37, -inf }
 0x419   :  { %10381 = vst [vmem:[#allocation80_spill] sm:$0xff] %v8116_v40  ;;  %2444 = vmax.xlane.f32.xlu0 %v2443_v39  ;;  %v8118_v41 = vpop.f32.mrb[79].mxu1  ;;  %v2446_v54 = vsel %vm137_vm1, %v8116_v40, -inf }
 0x41a   :  { %10382 = vst [vmem:[#allocation81_spill] sm:$0xff] %v8118_v41  ;;  %2447 = vmax.xlane.f32.xlu1 %v2446_v54  ;;  %v2440_v33 = vsel %vm137_vm1, %v8118_v41, -inf }
 0x41d   :  { %2438 = vmax.xlane.f32.xlu0 %v2437_v24 }
 0x41e   :  { %2441 = vmax.xlane.f32.xlu1 %v2440_v33  ;;  %v8126_v16 = vpop.f32.mrb[80].mxu1 }
 0x41f   :  { %10383 = vst [vmem:[#allocation82_spill] sm:$0xff] %v8126_v16  ;;  %v8128_v27 = vpop.f32.mrb[81].mxu1  ;;  %v2455_v17 = vsel %vm137_vm1, %v8126_v16, -inf }
 0x420   :  { %10384 = vst [vmem:[#allocation83_spill] sm:$0xff] %v8128_v27  ;;  %v8132_v21 = vpop.f32.mrb[82].mxu1  ;;  %v2449_v51 = vsel %vm137_vm1, %v8128_v27, -inf }
 0x421   :  { %10385 = vst [vmem:[#allocation84_spill] sm:$0xff] %v8132_v21  ;;  %2456 = vmax.xlane.f32.xlu0 %v2455_v17  ;;  %v8134_v12 = vpop.f32.mrb[83].mxu1  ;;  %v2458_v45 = vsel %vm137_vm1, %v8132_v21, -inf }
 0x422   :  { %10386 = vst [vmem:[#allocation85_spill] sm:$0xff] %v8134_v12  ;;  %2459 = vmax.xlane.f32.xlu1 %v2458_v45  ;;  %v2452_v10 = vsel %vm137_vm1, %v8134_v12, -inf }
 0x425   :  { %2450 = vmax.xlane.f32.xlu0 %v2449_v51 }
 0x426   :  { %2453 = vmax.xlane.f32.xlu1 %v2452_v10  ;;  %v8142_v20 = vpop.f32.mrb[84].mxu1 }
 0x427   :  { %10387 = vst [vmem:[#allocation86_spill] sm:$0xff] %v8142_v20  ;;  %v8144_v5 = vpop.f32.mrb[85].mxu1  ;;  %v2467_v3 = vsel %vm137_vm1, %v8142_v20, -inf }
 0x428   :  { %10388 = vst [vmem:[#allocation87_spill] sm:$0xff] %v8144_v5  ;;  %v8148_v50 = vpop.f32.mrb[86].mxu1  ;;  %v2461_v28 = vsel %vm137_vm1, %v8144_v5, -inf }
 0x429   :  { %10389 = vst [vmem:[#allocation88_spill] sm:$0xff] %v8148_v50  ;;  %2468 = vmax.xlane.f32.xlu0 %v2467_v3  ;;  %v8150_v30 = vpop.f32.mrb[87].mxu1  ;;  %v2470_v32 = vsel %vm137_vm1, %v8148_v50, -inf }
 0x42a   :  { %10390 = vst [vmem:[#allocation89_spill] sm:$0xff] %v8150_v30  ;;  %2471 = vmax.xlane.f32.xlu1 %v2470_v32  ;;  %v2464_v4 = vsel %vm137_vm1, %v8150_v30, -inf }
 0x42d   :  { %2462 = vmax.xlane.f32.xlu0 %v2461_v28 }
 0x42e   :  { %2465 = vmax.xlane.f32.xlu1 %v2464_v4  ;;  %v8158_v36 = vpop.f32.mrb[88].mxu1 }
 0x42f   :  { %10391 = vst [vmem:[#allocation90_spill] sm:$0xff] %v8158_v36  ;;  %v8160_v59 = vpop.f32.mrb[89].mxu1  ;;  %v2479_v46 = vsel %vm137_vm1, %v8158_v36, -inf }
 0x430   :  { %10392 = vst [vmem:[#allocation91_spill] sm:$0xff] %v8160_v59  ;;  %v8164_v34 = vpop.f32.mrb[90].mxu1  ;;  %v2473_v55 = vsel %vm137_vm1, %v8160_v59, -inf }
 0x431   :  { %10393 = vst [vmem:[#allocation92_spill] sm:$0xff] %v8164_v34  ;;  %2480 = vmax.xlane.f32.xlu0 %v2479_v46  ;;  %v8166_v56 = vpop.f32.mrb[91].mxu1  ;;  %v2482_v38 = vsel %vm137_vm1, %v8164_v34, -inf }
 0x432   :  { %10394 = vst [vmem:[#allocation93_spill] sm:$0xff] %v8166_v56  ;;  %2483 = vmax.xlane.f32.xlu1 %v2482_v38  ;;  %v2476_v29 = vsel %vm137_vm1, %v8166_v56, -inf }
 0x435   :  { %2474 = vmax.xlane.f32.xlu0 %v2473_v55 }
 0x436   :  { %2477 = vmax.xlane.f32.xlu1 %v2476_v29  ;;  %v8174_v13 = vpop.f32.mrb[92].mxu1 }
 0x437   :  { %10395 = vst [vmem:[#allocation94_spill] sm:$0xff] %v8174_v13  ;;  %v8176_v31 = vpop.f32.mrb[93].mxu1  ;;  %v2491_v49 = vsel %vm137_vm1, %v8174_v13, -inf }
 0x438   :  { %10396 = vst [vmem:[#allocation95_spill] sm:$0xff] %v8176_v31  ;;  %v8180_v62 = vpop.f32.mrb[94].mxu1  ;;  %v2485_v2 = vsel %vm137_vm1, %v8176_v31, -inf }
 0x439   :  { %10397 = vst [vmem:[#allocation96_spill] sm:$0xff] %v8180_v62  ;;  %2492 = vmax.xlane.f32.xlu0 %v2491_v49  ;;  %v8182_v8 = vpop.f32.mrb[95].mxu1  ;;  %v2494_v9 = vsel %vm137_vm1, %v8180_v62, -inf }
 0x43a   :  { %10398 = vst [vmem:[#allocation97_spill] sm:$0xff] %v8182_v8  ;;  %2495 = vmax.xlane.f32.xlu1 %v2494_v9  ;;  %v2488_v39 = vsel %vm137_vm1, %v8182_v8, -inf }
 0x43d   :  { %2486 = vmax.xlane.f32.xlu0 %v2485_v2 }
 0x43e   :  { %2489 = vmax.xlane.f32.xlu1 %v2488_v39  ;;  %v8190_v54 = vpop.f32.mrb[96].mxu1 }
 0x43f   :  { %10399 = vst [vmem:[#allocation98_spill] sm:$0xff] %v8190_v54  ;;  %v8192_v24 = vpop.f32.mrb[97].mxu1  ;;  %v2503_v33 = vsel %vm137_vm1, %v8190_v54, -inf }
 0x440   :  { %10400 = vst [vmem:[#allocation99_spill] sm:$0xff] %v8192_v24  ;;  %v8196_v17 = vpop.f32.mrb[98].mxu1  ;;  %v2497_v10 = vsel %vm137_vm1, %v8192_v24, -inf }
 0x441   :  { %10401 = vst [vmem:[#allocation100_spill] sm:$0xff] %v8196_v17  ;;  %2504 = vmax.xlane.f32.xlu0 %v2503_v33  ;;  %v8198_v45 = vpop.f32.mrb[99].mxu1  ;;  %v2506_v51 = vsel %vm137_vm1, %v8196_v17, -inf }
 0x442   :  { %10402 = vst [vmem:[#allocation101_spill] sm:$0xff] %v8198_v45  ;;  %2507 = vmax.xlane.f32.xlu1 %v2506_v51  ;;  %v2500_v3 = vsel %vm137_vm1, %v8198_v45, -inf }
 0x445   :  { %2498 = vmax.xlane.f32.xlu0 %v2497_v10 }
 0x446   :  { %2501 = vmax.xlane.f32.xlu1 %v2500_v3  ;;  %v8206_v32 = vpop.f32.mrb[100].mxu1 }
 0x447   :  { %10403 = vst [vmem:[#allocation102_spill] sm:$0xff] %v8206_v32  ;;  %v8208_v28 = vpop.f32.mrb[101].mxu1  ;;  %v2515_v4 = vsel %vm137_vm1, %v8206_v32, -inf }
 0x448   :  { %10404 = vst [vmem:[#allocation103_spill] sm:$0xff] %v8208_v28  ;;  %v8212_v46 = vpop.f32.mrb[102].mxu1  ;;  %v2509_v29 = vsel %vm137_vm1, %v8208_v28, -inf }
 0x449   :  { %10405 = vst [vmem:[#allocation104_spill] sm:$0xff] %v8212_v46  ;;  %2516 = vmax.xlane.f32.xlu0 %v2515_v4  ;;  %v8214_v38 = vpop.f32.mrb[103].mxu1  ;;  %v2518_v55 = vsel %vm137_vm1, %v8212_v46, -inf }
 0x44a   :  { %10406 = vst [vmem:[#allocation105_spill] sm:$0xff] %v8214_v38  ;;  %2519 = vmax.xlane.f32.xlu1 %v2518_v55  ;;  %v2512_v49 = vsel %vm137_vm1, %v8214_v38, -inf }
 0x44d   :  { %2510 = vmax.xlane.f32.xlu0 %v2509_v29 }
 0x44e   :  { %2513 = vmax.xlane.f32.xlu1 %v2512_v49  ;;  %v8222_v9 = vpop.f32.mrb[104].mxu1 }
 0x44f   :  { %10407 = vst [vmem:[#allocation106_spill] sm:$0xff] %v8222_v9  ;;  %v8224_v2 = vpop.f32.mrb[105].mxu1  ;;  %v2527_v39 = vsel %vm137_vm1, %v8222_v9, -inf }
 0x450   :  { %10408 = vst [vmem:[#allocation107_spill] sm:$0xff] %v8224_v2  ;;  %v8228_v33 = vpop.f32.mrb[106].mxu1  ;;  %v2521_v3 = vsel %vm137_vm1, %v8224_v2, -inf }
 0x451   :  { %10409 = vst [vmem:[#allocation108_spill] sm:$0xff] %v8228_v33  ;;  %2528 = vmax.xlane.f32.xlu0 %v2527_v39  ;;  %v8230_v51 = vpop.f32.mrb[107].mxu1  ;;  %v2530_v10 = vsel %vm137_vm1, %v8228_v33, -inf }
 0x452   :  { %10410 = vst [vmem:[#allocation109_spill] sm:$0xff] %v8230_v51  ;;  %2531 = vmax.xlane.f32.xlu1 %v2530_v10  ;;  %v2524_v4 = vsel %vm137_vm1, %v8230_v51, -inf }
 0x455   :  { %2522 = vmax.xlane.f32.xlu0 %v2521_v3 }
 0x456   :  { %2525 = vmax.xlane.f32.xlu1 %v2524_v4  ;;  %v8238_v55 = vpop.f32.mrb[108].mxu1 }
 0x457   :  { %10411 = vst [vmem:[#allocation110_spill] sm:$0xff] %v8238_v55  ;;  %v8240_v29 = vpop.f32.mrb[109].mxu1  ;;  %v2539_v49 = vsel %vm137_vm1, %v8238_v55, -inf }
 0x458   :  { %10412 = vst [vmem:[#allocation111_spill] sm:$0xff] %v8240_v29  ;;  %v8244_v39 = vpop.f32.mrb[110].mxu1  ;;  %v2533_v3 = vsel %vm137_vm1, %v8240_v29, -inf }
 0x459   :  { %10413 = vst [vmem:[#allocation112_spill] sm:$0xff] %v8244_v39  ;;  %2540 = vmax.xlane.f32.xlu0 %v2539_v49  ;;  %v8246_v11 = vpop.f32.mrb[111].mxu1  ;;  %v2542_v10 = vsel %vm137_vm1, %v8244_v39, -inf }
 0x45a   :  { %10414 = vst [vmem:[#allocation113_spill] sm:$0xff] %v8246_v11  ;;  %2543 = vmax.xlane.f32.xlu1 %v2542_v10  ;;  %v2536_v4 = vsel %vm137_vm1, %v8246_v11, -inf }
 0x45d   :  { %2534 = vmax.xlane.f32.xlu0 %v2533_v3 }
 0x45e   :  { %2537 = vmax.xlane.f32.xlu1 %v2536_v4  ;;  %v8254_v23 = vpop.f32.mrb[112].mxu1 }
 0x45f   :  { %10415 = vst [vmem:[#allocation114_spill] sm:$0xff] %v8254_v23  ;;  %v8256_v19 = vpop.f32.mrb[113].mxu1  ;;  %v2551_v49 = vsel %vm137_vm1, %v8254_v23, -inf }
 0x460   :  { %10416 = vst [vmem:[#allocation115_spill] sm:$0xff] %v8256_v19  ;;  %v8260_v14 = vpop.f32.mrb[114].mxu1  ;;  %v2545_v3 = vsel %vm137_vm1, %v8256_v19, -inf }
 0x461   :  { %10417 = vst [vmem:[#allocation116_spill] sm:$0xff] %v8260_v14  ;;  %2552 = vmax.xlane.f32.xlu0 %v2551_v49  ;;  %v8262_v6 = vpop.f32.mrb[115].mxu1  ;;  %v2554_v10 = vsel %vm137_vm1, %v8260_v14, -inf }
 0x462   :  { %10418 = vst [vmem:[#allocation117_spill] sm:$0xff] %v8262_v6  ;;  %2555 = vmax.xlane.f32.xlu1 %v2554_v10  ;;  %v2548_v4 = vsel %vm137_vm1, %v8262_v6, -inf }
 0x465   :  { %2546 = vmax.xlane.f32.xlu0 %v2545_v3 }
 0x466   :  { %2549 = vmax.xlane.f32.xlu1 %v2548_v4  ;;  %v8270_v7 = vpop.f32.mrb[116].mxu1 }
 0x467   :  { %10419 = vst [vmem:[#allocation118_spill] sm:$0xff] %v8270_v7  ;;  %v8272_v0 = vpop.f32.mrb[117].mxu1  ;;  %v2563_v49 = vsel %vm137_vm1, %v8270_v7, -inf }
 0x468   :  { %10420 = vst [vmem:[#allocation119_spill] sm:$0xff] %v8272_v0  ;;  %v8276_v1 = vpop.f32.mrb[118].mxu1  ;;  %v2557_v3 = vsel %vm137_vm1, %v8272_v0, -inf }
 0x469   :  { %10421 = vst [vmem:[#allocation120_spill] sm:$0xff] %v8276_v1  ;;  %2564 = vmax.xlane.f32.xlu0 %v2563_v49  ;;  %v8278_v57 = vpop.f32.mrb[119].mxu1  ;;  %v2566_v10 = vsel %vm137_vm1, %v8276_v1, -inf }
 0x46a   :  { %10422 = vst [vmem:[#allocation121_spill] sm:$0xff] %v8278_v57  ;;  %2567 = vmax.xlane.f32.xlu1 %v2566_v10  ;;  %v2560_v4 = vsel %vm137_vm1, %v8278_v57, -inf }
 0x46d   :  { %2558 = vmax.xlane.f32.xlu0 %v2557_v3 }
 0x46e   :  { %2561 = vmax.xlane.f32.xlu1 %v2560_v4  ;;  %v8286_v58 = vpop.f32.mrb[120].mxu1 }
 0x46f   :  { %10423 = vst [vmem:[#allocation122_spill] sm:$0xff] %v8286_v58  ;;  %v8288_v52 = vpop.f32.mrb[121].mxu1  ;;  %v2575_v49 = vsel %vm137_vm1, %v8286_v58, -inf }
 0x470   :  { %10424 = vst [vmem:[#allocation123_spill] sm:$0xff] %v8288_v52  ;;  %v8292_v53 = vpop.f32.mrb[122].mxu1  ;;  %v2569_v3 = vsel %vm137_vm1, %v8288_v52, -inf }
 0x471   :  { %10425 = vst [vmem:[#allocation124_spill] sm:$0xff] %v8292_v53  ;;  %2576 = vmax.xlane.f32.xlu0 %v2575_v49  ;;  %v8294_v47 = vpop.f32.mrb[123].mxu1  ;;  %v2578_v10 = vsel %vm137_vm1, %v8292_v53, -inf }
 0x472   :  { %10426 = vst [vmem:[#allocation125_spill] sm:$0xff] %v8294_v47  ;;  %2579 = vmax.xlane.f32.xlu1 %v2578_v10  ;;  %v2572_v4 = vsel %vm137_vm1, %v8294_v47, -inf }
 0x475   :  { %2570 = vmax.xlane.f32.xlu0 %v2569_v3 }
 0x476   :  { %2573 = vmax.xlane.f32.xlu1 %v2572_v4  ;;  %v8302_v48 = vpop.f32.mrb[124].mxu1 }
 0x477   :  { %10427 = vst [vmem:[#allocation126_spill] sm:$0xff] %v8302_v48  ;;  %v8304_v42 = vpop.f32.mrb[125].mxu1  ;;  %v2587_v49 = vsel %vm137_vm1, %v8302_v48, -inf }
 0x478   :  { %10428 = vst [vmem:[#allocation127_spill] sm:$0xff] %v8304_v42  ;;  %v8308_v43 = vpop.f32.mrb[126].mxu1  ;;  %v2581_v3 = vsel %vm137_vm1, %v8304_v42, -inf }
 0x479   :  { %10429 = vst [vmem:[#allocation128_spill] sm:$0xff] %v8308_v43  ;;  %2588 = vmax.xlane.f32.xlu0 %v2587_v49  ;;  %v8310_v44 = vpop.f32.mrb[127].mxu1  ;;  %v2590_v10 = vsel %vm137_vm1, %v8308_v43, -inf }
 0x47a   :  { %10430 = vst [vmem:[#allocation129_spill] sm:$0xff] %v8310_v44  ;;  %2591 = vmax.xlane.f32.xlu1 %v2590_v10  ;;  %v2584_v4 = vsel %vm137_vm1, %v8310_v44, -inf }
 0x47d   :  { %2582 = vmax.xlane.f32.xlu0 %v2581_v3 }
 0x47e   :  { %2585 = vmax.xlane.f32.xlu1 %v2584_v4  ;;  %v8318_v47 = vpop.f32.mrb[128].mxu1 }
 0x47f   :  { %10431 = vst [vmem:[#allocation130_spill] sm:$0xff] %v8318_v47  ;;  %v8320_v48 = vpop.f32.mrb[129].mxu1 }
 0x480   :  { %10432 = vst [vmem:[#allocation131_spill] sm:$0xff] %v8320_v48  ;;  %v8322_v53 = vpop.f32.mrb[130].mxu1  ;;  %v2593_v49 = vsel %vm137_vm1, %v8320_v48, -inf }
 0x481   :  { %10433 = vst [vmem:[#allocation132_spill] sm:$0xff] %v8322_v53  ;;  %2594 = vmax.xlane.f32.xlu0 %v2593_v49  ;;  %v8326_v43 = vpop.f32.mrb[131].mxu1 }
 0x482   :  { %10434 = vst [vmem:[#allocation133_spill] sm:$0xff] %v8326_v43  ;;  %v2596_v10 = vsel %vm137_vm1, %v8326_v43, -inf }
 0x483   :  { %2597 = vmax.xlane.f32.xlu1 %v2596_v10 }
 0x495   :  { %v2421_v3 = vpop.xlane.xlu1 %2420 }
 0x496   :  { %v2607_v44 = vsub.f32 %v8078_v26, %v2421_v3  ;;  %v2415_v4 = vpop.xlane.xlu0 %2414 }
 0x497   :  { %v2605_v42 = vsub.f32 %v8080_v22, %v2415_v4 }
 0x498   :  { %v2673_v52 = vmul.f32 1.442695, %v2607_v44 }
 0x499   :  { %v2669_v58 = vmul.f32 1.442695, %v2605_v42  ;;  %v2424_v57 = vpop.xlane.xlu1 %2423 }
 0x49a   :  { %6603 = vpow2.f32 %v2673_v52  ;;  %v2608_v1 = vsub.f32 %v8084_v25, %v2424_v57  ;;  %v2418_v48 = vpop.xlane.xlu0 %2417 }
 0x49b   :  { %v2606_v49 = vsub.f32 %v8088_v18, %v2418_v48  ;;  %6605 = vpow2.f32 %v2669_v58 }
 0x49c   :  { %v2675_v0 = vmul.f32 1.442695, %v2608_v1 }
 0x49d   :  { %v2671_v7 = vmul.f32 1.442695, %v2606_v49 }
 0x49e   :  { %6607 = vpow2.f32 %v2675_v0  ;;  %v2433_v10 = vpop.xlane.xlu0 %2432 }
 0x49f   :  { %v2611_v43 = vsub.f32 %v8094_v63, %v2433_v10  ;;  %v2436_v3 = vpop.xlane.xlu1 %2435  ;;  %6609 = vpow2.f32 %v2671_v7 }
 0x4a0   :  { %v2612_v4 = vsub.f32 %v8100_v15, %v2436_v3 }
 0x4a1   :  { %v2681_v44 = vmul.f32 1.442695, %v2611_v43 }
 0x4a2   :  { %v2683_v42 = vmul.f32 1.442695, %v2612_v4  ;;  %v2427_v22 = vpop.xlane.xlu0 %2426 }
 0x4a3   :  { %6611 = vpow2.f32 %v2681_v44  ;;  %v2609_v52 = vsub.f32 %v8096_v61, %v2427_v22  ;;  %v2430_v57 = vpop.xlane.xlu1 %2429 }
 0x4a4   :  { %v8337_v25 = vpop.eup %6603  ;;  %6613 = vpow2.f32 %v2683_v42  ;;  %v2610_v48 = vsub.f32 %v8102_v60, %v2430_v57 }
 0x4a5   :  { %v2677_v58 = vmul.f32 1.442695, %v2609_v52  ;;  %v2803_v0 = vsel %vm137_vm1, %v8337_v25, 0.0  ;;  %v8342_v1 = vpop.eup %6605 }
 0x4a6   :  { %v2679_v7 = vmul.f32 1.442695, %v2610_v48  ;;  %v2445_v49 = vpop.xlane.xlu0 %2444  ;;  %2804 = vadd.xlane.f32.xlu0 %v2803_v0  ;;  %v2797_v44 = vsel %vm137_vm1, %v8342_v1, 0.0 }
 0x4a7   :  { %6615 = vpow2.f32 %v2677_v58  ;;  %v2615_v43 = vsub.f32 %v8110_v35, %v2445_v49  ;;  %v2448_v10 = vpop.xlane.xlu1 %2447 }
 0x4a8   :  { %v8345_v22 = vpop.eup %6607  ;;  %6617 = vpow2.f32 %v2679_v7  ;;  %v2616_v3 = vsub.f32 %v8116_v40, %v2448_v10 }
 0x4a9   :  { %v2689_v4 = vmul.f32 1.442695, %v2615_v43  ;;  %v2806_v42 = vsel %vm137_vm1, %v8345_v22, 0.0  ;;  %v8352_v52 = vpop.eup %6609 }
 0x4aa   :  { %v2691_v57 = vmul.f32 1.442695, %v2616_v3  ;;  %v2439_v48 = vpop.xlane.xlu0 %2438  ;;  %2798 = vadd.xlane.f32.xlu0 %v2797_v44  ;;  %2807 = vadd.xlane.f32.xlu1 %v2806_v42  ;;  %v2800_v10 = vsel %vm137_vm1, %v8352_v52, 0.0 }
 0x4ab   :  { %6619 = vpow2.f32 %v2689_v4  ;;  %v2613_v58 = vsub.f32 %v8112_v37, %v2439_v48  ;;  %v2442_v0 = vpop.xlane.xlu1 %2441 }
 0x4ac   :  { %6621 = vpow2.f32 %v2691_v57  ;;  %v2614_v7 = vsub.f32 %v8118_v41, %v2442_v0 }
 0x4ad   :  { %v8356_v49 = vpop.eup %6611  ;;  %v2685_v43 = vmul.f32 1.442695, %v2613_v58 }
 0x4ae   :  { %v8360_v40 = vpop.eup %6613  ;;  %v2687_v35 = vmul.f32 1.442695, %v2614_v7  ;;  %v2457_v3 = vpop.xlane.xlu0 %2456  ;;  %2801 = vadd.xlane.f32.xlu1 %v2800_v10  ;;  %v2815_v4 = vsel %vm137_vm1, %v8356_v49, 0.0 }
 0x4af   :  { %6623 = vpow2.f32 %v2685_v43  ;;  %v2619_v44 = vsub.f32 %v8126_v16, %v2457_v3  ;;  %v2460_v42 = vpop.xlane.xlu1 %2459  ;;  %2816 = vadd.xlane.f32.xlu0 %v2815_v4  ;;  %v2818_v0 = vsel %vm137_vm1, %v8360_v40, 0.0 }
 0x4b0   :  { %6625 = vpow2.f32 %v2687_v35  ;;  %v2620_v57 = vsub.f32 %v8132_v21, %v2460_v42 }
 0x4b1   :  { %v8366_v48 = vpop.eup %6615  ;;  %v2697_v58 = vmul.f32 1.442695, %v2619_v44 }
 0x4b2   :  { %v8370_v7 = vpop.eup %6617  ;;  %v2699_v10 = vmul.f32 1.442695, %v2620_v57  ;;  %v2451_v41 = vpop.xlane.xlu0 %2450  ;;  %2819 = vadd.xlane.f32.xlu1 %v2818_v0  ;;  %v2809_v43 = vsel %vm137_vm1, %v8366_v48, 0.0 }
 0x4b3   :  { %6627 = vpow2.f32 %v2697_v58  ;;  %v2617_v3 = vsub.f32 %v8128_v27, %v2451_v41  ;;  %v2454_v35 = vpop.xlane.xlu1 %2453  ;;  %2810 = vadd.xlane.f32.xlu0 %v2809_v43  ;;  %v2812_v21 = vsel %vm137_vm1, %v8370_v7, 0.0 }
 0x4b4   :  { %6629 = vpow2.f32 %v2699_v10  ;;  %v2618_v4 = vsub.f32 %v8134_v12, %v2454_v35 }
 0x4b5   :  { %v8376_v44 = vpop.eup %6619  ;;  %v2693_v42 = vmul.f32 1.442695, %v2617_v3 }
 0x4b6   :  { %v8380_v57 = vpop.eup %6621  ;;  %v2695_v0 = vmul.f32 1.442695, %v2618_v4  ;;  %v2469_v16 = vpop.xlane.xlu0 %2468  ;;  %2813 = vadd.xlane.f32.xlu1 %v2812_v21  ;;  %v2827_v58 = vsel %vm137_vm1, %v8376_v44, 0.0 }
 0x4b7   :  { %6631 = vpow2.f32 %v2693_v42  ;;  %v2472_v41 = vpop.xlane.xlu1 %2471  ;;  %2828 = vadd.xlane.f32.xlu0 %v2827_v58  ;;  %v2623_v43 = vsub.f32 %v8142_v20, %v2469_v16  ;;  %v2830_v3 = vsel %vm137_vm1, %v8380_v57, 0.0 }
 0x4b8   :  { %6633 = vpow2.f32 %v2695_v0  ;;  %v2624_v0 = vsub.f32 %v8148_v50, %v2472_v41 }
 0x4b9   :  { %v8384_v10 = vpop.eup %6623  ;;  %v2705_v16 = vmul.f32 1.442695, %v2623_v43 }
 0x4ba   :  { %v8389_v35 = vpop.eup %6625  ;;  %v2463_v12 = vpop.xlane.xlu0 %2462  ;;  %2831 = vadd.xlane.f32.xlu1 %v2830_v3  ;;  %v2821_v21 = vsel %vm137_vm1, %v8384_v10, 0.0  ;;  %v2707_v41 = vmul.f32 1.442695, %v2624_v0 }
 0x4bb   :  { %v2621_v4 = vsub.f32 %v8144_v5, %v2463_v12  ;;  %v2466_v42 = vpop.xlane.xlu1 %2465  ;;  %2822 = vadd.xlane.f32.xlu0 %v2821_v21  ;;  %v2824_v37 = vsel %vm137_vm1, %v8389_v35, 0.0 }
 0x4bc   :  { %v2622_v58 = vsub.f32 %v8150_v30, %v2466_v42 }
 0x4bd   :  { %v8396_v27 = vpop.eup %6627  ;;  %v2701_v20 = vmul.f32 1.442695, %v2621_v4 }
 0x4be   :  { %v8400_v60 = vpop.eup %6629  ;;  %v2703_v3 = vmul.f32 1.442695, %v2622_v58  ;;  %v2481_v15 = vpop.xlane.xlu0 %2480  ;;  %2825 = vadd.xlane.f32.xlu1 %v2824_v37  ;;  %v2839_v12 = vsel %vm137_vm1, %v8396_v27, 0.0 }
 0x4bf   :  { %6635 = vpow2.f32 %v2701_v20  ;;  %v2484_v21 = vpop.xlane.xlu1 %2483  ;;  %2840 = vadd.xlane.f32.xlu0 %v2839_v12  ;;  %v2627_v43 = vsub.f32 %v8158_v36, %v2481_v15  ;;  %v2842_v4 = vsel %vm137_vm1, %v8400_v60, 0.0 }
 0x4c0   :  { %6637 = vpow2.f32 %v2703_v3  ;;  %v2628_v0 = vsub.f32 %v8164_v34, %v2484_v21 }
 0x4c1   :  { %v8404_v42 = vpop.eup %6631  ;;  %6639 = vpow2.f32 %v2705_v16  ;;  %v2713_v15 = vmul.f32 1.442695, %v2627_v43  ;;  %v2602_v43 = vsel %vm137_vm1, %v8322_v53, -inf }
 0x4c2   :  { %v8409_v30 = vpop.eup %6633  ;;  %v2475_v58 = vpop.xlane.xlu0 %2474  ;;  %2843 = vadd.xlane.f32.xlu1 %v2842_v4  ;;  %v2833_v37 = vsel %vm137_vm1, %v8404_v42, 0.0  ;;  %6641 = vpow2.f32 %v2707_v41  ;;  %v2599_v4 = vsel %vm137_vm1, %v8318_v47, -inf }
 0x4c3   :  { %v2625_v20 = vsub.f32 %v8160_v59, %v2475_v58  ;;  %v2478_v12 = vpop.xlane.xlu1 %2477  ;;  %2834 = vadd.xlane.f32.xlu0 %v2833_v37  ;;  %v2836_v36 = vsel %vm137_vm1, %v8409_v30, 0.0  ;;  %v2715_v37 = vmul.f32 1.442695, %v2628_v0 }
 0x4c4   :  { %v2626_v16 = vsub.f32 %v8166_v56, %v2478_v12 }
 0x4c5   :  { %v2709_v3 = vmul.f32 1.442695, %v2625_v20 }
 0x4c6   :  { %v2711_v50 = vmul.f32 1.442695, %v2626_v16  ;;  %v2493_v5 = vpop.xlane.xlu0 %2492  ;;  %2837 = vadd.xlane.f32.xlu1 %v2836_v36 }
 0x4c7   :  { %6643 = vpow2.f32 %v2709_v3  ;;  %v2496_v58 = vpop.xlane.xlu1 %2495  ;;  %2600 = vmax.xlane.f32.xlu0 %v2599_v4  ;;  %v2631_v21 = vsub.f32 %v8174_v13, %v2493_v5 }
 0x4c8   :  { %6645 = vpow2.f32 %v2711_v50 }
 0x4c9   :  { %v8420_v41 = vpop.eup %6635  ;;  %6647 = vpow2.f32 %v2713_v15  ;;  %v2632_v15 = vsub.f32 %v8180_v62, %v2496_v58  ;;  %v2721_v3 = vmul.f32 1.442695, %v2631_v21 }
 0x4ca   :  { %v8425_v20 = vpop.eup %6637  ;;  %v2487_v12 = vpop.xlane.xlu0 %2486  ;;  %2603 = vmax.xlane.f32.xlu1 %v2602_v43  ;;  %v2845_v36 = vsel %vm137_vm1, %v8420_v41, 0.0  ;;  %6649 = vpow2.f32 %v2715_v37 }
 0x4cb   :  { %v8429_v16 = vpop.eup %6639  ;;  %v2629_v0 = vsub.f32 %v8176_v31, %v2487_v12  ;;  %v2490_v50 = vpop.xlane.xlu1 %2489  ;;  %2846 = vadd.xlane.f32.xlu0 %v2845_v36  ;;  %v2848_v13 = vsel %vm137_vm1, %v8425_v20, 0.0  ;;  %v2723_v37 = vmul.f32 1.442695, %v2632_v15 }
 0x4cc   :  { %v2630_v5 = vsub.f32 %v8182_v8, %v2490_v50  ;;  %v8436_v43 = vpop.eup %6641  ;;  %v2851_v12 = vsel %vm137_vm1, %v8429_v16, 0.0 }
 0x4cd   :  { %v2717_v4 = vmul.f32 1.442695, %v2629_v0  ;;  %v2854_v0 = vsel %vm137_vm1, %v8436_v43, 0.0 }
 0x4ce   :  { %v2719_v56 = vmul.f32 1.442695, %v2630_v5  ;;  %v2505_v34 = vpop.xlane.xlu0 %2504  ;;  %2849 = vadd.xlane.f32.xlu1 %v2848_v13 }
 0x4cf   :  { %6651 = vpow2.f32 %v2717_v4  ;;  %v2508_v36 = vpop.xlane.xlu1 %2507  ;;  %2852 = vadd.xlane.f32.xlu0 %v2851_v12  ;;  %v2635_v21 = vsub.f32 %v8190_v54, %v2505_v34 }
 0x4d0   :  { %6653 = vpow2.f32 %v2719_v56 }
 0x4d1   :  { %v8440_v58 = vpop.eup %6643  ;;  %6655 = vpow2.f32 %v2721_v3  ;;  %v2636_v3 = vsub.f32 %v8196_v17, %v2508_v36  ;;  %v2729_v12 = vmul.f32 1.442695, %v2635_v21 }
 0x4d2   :  { %v8445_v50 = vpop.eup %6645  ;;  %v2499_v5 = vpop.xlane.xlu0 %2498  ;;  %2855 = vadd.xlane.f32.xlu1 %v2854_v0  ;;  %v2857_v13 = vsel %vm137_vm1, %v8440_v58, 0.0  ;;  %6657 = vpow2.f32 %v2723_v37 }
 0x4d3   :  { %v8449_v4 = vpop.eup %6647  ;;  %v2633_v15 = vsub.f32 %v8192_v24, %v2499_v5  ;;  %v2502_v56 = vpop.xlane.xlu1 %2501  ;;  %2858 = vadd.xlane.f32.xlu0 %v2857_v13  ;;  %v2860_v8 = vsel %vm137_vm1, %v8445_v50, 0.0  ;;  %v2731_v37 = vmul.f32 1.442695, %v2636_v3 }
 0x4d4   :  { %v2634_v34 = vsub.f32 %v8198_v45, %v2502_v56  ;;  %v8456_v0 = vpop.eup %6649  ;;  %v2863_v5 = vsel %vm137_vm1, %v8449_v4, 0.0 }
 0x4d5   :  { %v2725_v54 = vmul.f32 1.442695, %v2633_v15  ;;  %v2866_v15 = vsel %vm137_vm1, %v8456_v0, 0.0 }
 0x4d6   :  { %v2727_v62 = vmul.f32 1.442695, %v2634_v34  ;;  %v2517_v31 = vpop.xlane.xlu0 %2516  ;;  %2861 = vadd.xlane.f32.xlu1 %v2860_v8 }
 0x4d7   :  { %6659 = vpow2.f32 %v2725_v54  ;;  %v2520_v13 = vpop.xlane.xlu1 %2519  ;;  %2864 = vadd.xlane.f32.xlu0 %v2863_v5  ;;  %v2639_v21 = vsub.f32 %v8206_v32, %v2517_v31 }
 0x4d8   :  { %6661 = vpow2.f32 %v2727_v62 }
 0x4d9   :  { %v8460_v36 = vpop.eup %6651  ;;  %6663 = vpow2.f32 %v2729_v12  ;;  %v2640_v12 = vsub.f32 %v8212_v46, %v2520_v13  ;;  %v2737_v5 = vmul.f32 1.442695, %v2639_v21 }
 0x4da   :  { %v8465_v56 = vpop.eup %6653  ;;  %v2511_v34 = vpop.xlane.xlu0 %2510  ;;  %2867 = vadd.xlane.f32.xlu1 %v2866_v15  ;;  %v2869_v8 = vsel %vm137_vm1, %v8460_v36, 0.0  ;;  %6665 = vpow2.f32 %v2731_v37 }
 0x4db   :  { %v8469_v54 = vpop.eup %6655  ;;  %v2637_v3 = vsub.f32 %v8208_v28, %v2511_v34  ;;  %v2514_v62 = vpop.xlane.xlu1 %2513  ;;  %2870 = vadd.xlane.f32.xlu0 %v2869_v8  ;;  %v2872_v45 = vsel %vm137_vm1, %v8465_v56, 0.0  ;;  %v2739_v37 = vmul.f32 1.442695, %v2640_v12 }
 0x4dc   :  { %v2638_v31 = vsub.f32 %v8214_v38, %v2514_v62  ;;  %v8476_v15 = vpop.eup %6657  ;;  %v2875_v34 = vsel %vm137_vm1, %v8469_v54, 0.0 }
 0x4dd   :  { %v2733_v32 = vmul.f32 1.442695, %v2637_v3  ;;  %v2878_v3 = vsel %vm137_vm1, %v8476_v15, 0.0 }
 0x4de   :  { %v2735_v17 = vmul.f32 1.442695, %v2638_v31  ;;  %v2529_v24 = vpop.xlane.xlu0 %2528  ;;  %2873 = vadd.xlane.f32.xlu1 %v2872_v45 }
 0x4df   :  { %6667 = vpow2.f32 %v2733_v32  ;;  %v2532_v8 = vpop.xlane.xlu1 %2531  ;;  %2876 = vadd.xlane.f32.xlu0 %v2875_v34  ;;  %v2643_v21 = vsub.f32 %v8222_v9, %v2529_v24 }
 0x4e0   :  { %6669 = vpow2.f32 %v2735_v17 }
 0x4e1   :  { %v8480_v13 = vpop.eup %6659  ;;  %6671 = vpow2.f32 %v2737_v5  ;;  %v2644_v5 = vsub.f32 %v8228_v33, %v2532_v8  ;;  %v2745_v34 = vmul.f32 1.442695, %v2643_v21 }
 0x4e2   :  { %v8485_v62 = vpop.eup %6661  ;;  %v2523_v31 = vpop.xlane.xlu0 %2522  ;;  %2879 = vadd.xlane.f32.xlu1 %v2878_v3  ;;  %v2881_v45 = vsel %vm137_vm1, %v8480_v13, 0.0  ;;  %6673 = vpow2.f32 %v2739_v37 }
 0x4e3   :  { %v8489_v32 = vpop.eup %6663  ;;  %v2641_v12 = vsub.f32 %v8224_v2, %v2523_v31  ;;  %v2526_v17 = vpop.xlane.xlu1 %2525  ;;  %2882 = vadd.xlane.f32.xlu0 %v2881_v45  ;;  %v2884_v38 = vsel %vm137_vm1, %v8485_v62, 0.0  ;;  %v2747_v37 = vmul.f32 1.442695, %v2644_v5 }
 0x4e4   :  { %v2642_v24 = vsub.f32 %v8230_v51, %v2526_v17  ;;  %v8496_v3 = vpop.eup %6665  ;;  %v2887_v31 = vsel %vm137_vm1, %v8489_v32, 0.0 }
 0x4e5   :  { %v2741_v9 = vmul.f32 1.442695, %v2641_v12  ;;  %v2890_v12 = vsel %vm137_vm1, %v8496_v3, 0.0 }
 0x4e6   :  { %v2743_v46 = vmul.f32 1.442695, %v2642_v24  ;;  %v2541_v28 = vpop.xlane.xlu0 %2540  ;;  %2885 = vadd.xlane.f32.xlu1 %v2884_v38 }
 0x4e7   :  { %6675 = vpow2.f32 %v2741_v9  ;;  %v2544_v45 = vpop.xlane.xlu1 %2543  ;;  %2888 = vadd.xlane.f32.xlu0 %v2887_v31  ;;  %v2647_v21 = vsub.f32 %v8238_v55, %v2541_v28 }
 0x4e8   :  { %6677 = vpow2.f32 %v2743_v46 }
 0x4e9   :  { %v8500_v8 = vpop.eup %6667  ;;  %6679 = vpow2.f32 %v2745_v34  ;;  %v2648_v34 = vsub.f32 %v8244_v39, %v2544_v45  ;;  %v2753_v31 = vmul.f32 1.442695, %v2647_v21 }
 0x4ea   :  { %v8505_v17 = vpop.eup %6669  ;;  %v2535_v24 = vpop.xlane.xlu0 %2534  ;;  %2891 = vadd.xlane.f32.xlu1 %v2890_v12  ;;  %v2893_v38 = vsel %vm137_vm1, %v8500_v8, 0.0  ;;  %6681 = vpow2.f32 %v2747_v37 }
 0x4eb   :  { %v8509_v9 = vpop.eup %6671  ;;  %v2645_v5 = vsub.f32 %v8240_v29, %v2535_v24  ;;  %v2538_v46 = vpop.xlane.xlu1 %2537  ;;  %2894 = vadd.xlane.f32.xlu0 %v2893_v38  ;;  %v2896_v51 = vsel %vm137_vm1, %v8505_v17, 0.0  ;;  %v2755_v37 = vmul.f32 1.442695, %v2648_v34 }
 0x4ec   :  { %v2646_v28 = vsub.f32 %v8246_v11, %v2538_v46  ;;  %v8516_v12 = vpop.eup %6673  ;;  %v2899_v24 = vsel %vm137_vm1, %v8509_v9, 0.0 }
 0x4ed   :  { %v2749_v55 = vmul.f32 1.442695, %v2645_v5  ;;  %v2902_v5 = vsel %vm137_vm1, %v8516_v12, 0.0 }
 0x4ee   :  { %v2751_v33 = vmul.f32 1.442695, %v2646_v28  ;;  %v2553_v2 = vpop.xlane.xlu0 %2552  ;;  %2897 = vadd.xlane.f32.xlu1 %v2896_v51 }
 0x4ef   :  { %6683 = vpow2.f32 %v2749_v55  ;;  %v2556_v38 = vpop.xlane.xlu1 %2555  ;;  %2900 = vadd.xlane.f32.xlu0 %v2899_v24  ;;  %v2651_v21 = vsub.f32 %v8254_v23, %v2553_v2 }
 0x4f0   :  { %6685 = vpow2.f32 %v2751_v33 }
 0x4f1   :  { %v8520_v45 = vpop.eup %6675  ;;  %6687 = vpow2.f32 %v2753_v31  ;;  %v2652_v31 = vsub.f32 %v8260_v14, %v2556_v38  ;;  %v2761_v24 = vmul.f32 1.442695, %v2651_v21  ;;  %v10435_v21 = vld [vmem:[#allocation118_spill] sm:$0xff] }
 0x4f2   :  { %v8525_v46 = vpop.eup %6677  ;;  %v2547_v28 = vpop.xlane.xlu0 %2546  ;;  %2903 = vadd.xlane.f32.xlu1 %v2902_v5  ;;  %v2905_v51 = vsel %vm137_vm1, %v8520_v45, 0.0  ;;  %6689 = vpow2.f32 %v2755_v37 }
 0x4f3   :  { %v8529_v55 = vpop.eup %6679  ;;  %v2649_v34 = vsub.f32 %v8256_v19, %v2547_v28  ;;  %v2550_v33 = vpop.xlane.xlu1 %2549  ;;  %2906 = vadd.xlane.f32.xlu0 %v2905_v51  ;;  %v2908_v11 = vsel %vm137_vm1, %v8525_v46, 0.0  ;;  %v2763_v37 = vmul.f32 1.442695, %v2652_v31 }
 0x4f4   :  { %v2650_v2 = vsub.f32 %v8262_v6, %v2550_v33  ;;  %v8536_v5 = vpop.eup %6681  ;;  %v2911_v28 = vsel %vm137_vm1, %v8529_v55, 0.0 }
 0x4f5   :  { %v2757_v23 = vmul.f32 1.442695, %v2649_v34  ;;  %v2914_v33 = vsel %vm137_vm1, %v8536_v5, 0.0 }
 0x4f6   :  { %v2759_v39 = vmul.f32 1.442695, %v2650_v2  ;;  %v2565_v29 = vpop.xlane.xlu0 %2564  ;;  %2909 = vadd.xlane.f32.xlu1 %v2908_v11 }
 0x4f7   :  { %6691 = vpow2.f32 %v2757_v23  ;;  %v2568_v51 = vpop.xlane.xlu1 %2567  ;;  %2912 = vadd.xlane.f32.xlu0 %v2911_v28  ;;  %v2655_v34 = vsub.f32 %v10435_v21, %v2565_v29  ;;  %v10437_v28 = vld [vmem:[#allocation119_spill] sm:$0xff]  ;;  %v10439_v29 = vld [vmem:[#allocation121_spill] sm:$0xff] }
 0x4f8   :  { %6693 = vpow2.f32 %v2759_v39 }
 0x4f9   :  { %v8540_v38 = vpop.eup %6683  ;;  %6695 = vpow2.f32 %v2761_v24  ;;  %v10438_v24 = vld [vmem:[#allocation120_spill] sm:$0xff]  ;;  %v2769_v19 = vmul.f32 1.442695, %v2655_v34  ;;  %v10442_v34 = vld [vmem:[#allocation122_spill] sm:$0xff] }
 0x4fa   :  { %v8545_v6 = vpop.eup %6685  ;;  %v2559_v2 = vpop.xlane.xlu0 %2558  ;;  %2915 = vadd.xlane.f32.xlu1 %v2914_v33  ;;  %v2917_v11 = vsel %vm137_vm1, %v8540_v38, 0.0  ;;  %6697 = vpow2.f32 %v2763_v37  ;;  %v2656_v14 = vsub.f32 %v10438_v24, %v2568_v51 }
 0x4fb   :  { %v8549_v23 = vpop.eup %6687  ;;  %v2653_v31 = vsub.f32 %v10437_v28, %v2559_v2  ;;  %v2562_v39 = vpop.xlane.xlu1 %2561  ;;  %2918 = vadd.xlane.f32.xlu0 %v2917_v11  ;;  %v2920_v61 = vsel %vm137_vm1, %v8545_v6, 0.0 }
 0x4fc   :  { %10436 = vst [vmem:[#allocation134_spill] sm:$0xff] %v8549_v23  ;;  %v2654_v21 = vsub.f32 %v10439_v29, %v2562_v39  ;;  %v8556_v33 = vpop.eup %6689  ;;  %v2923_v2 = vsel %vm137_vm1, %v8549_v23, 0.0  ;;  %v2771_v37 = vmul.f32 1.442695, %v2656_v14 }
 0x4fd   :  { %v2765_v59 = vmul.f32 1.442695, %v2653_v31  ;;  %10440 = vst [vmem:[#allocation135_spill] sm:$0xff] %v8556_v33  ;;  %v2926_v39 = vsel %vm137_vm1, %v8556_v33, 0.0 }
 0x4fe   :  { %v2767_v63 = vmul.f32 1.442695, %v2654_v21  ;;  %v2577_v18 = vpop.xlane.xlu0 %2576  ;;  %2921 = vadd.xlane.f32.xlu1 %v2920_v61 }
 0x4ff   :  { %6699 = vpow2.f32 %v2765_v59  ;;  %v2580_v11 = vpop.xlane.xlu1 %2579  ;;  %2924 = vadd.xlane.f32.xlu0 %v2923_v2  ;;  %v2659_v31 = vsub.f32 %v10442_v34, %v2577_v18  ;;  %v10445_v2 = vld [vmem:[#allocation123_spill] sm:$0xff]  ;;  %v10447_v18 = vld [vmem:[#allocation125_spill] sm:$0xff] }
 0x500   :  { %6701 = vpow2.f32 %v2767_v63 }
 0x501   :  { %v8560_v51 = vpop.eup %6691  ;;  %6703 = vpow2.f32 %v2769_v19  ;;  %v10446_v19 = vld [vmem:[#allocation124_spill] sm:$0xff]  ;;  %v2777_v28 = vmul.f32 1.442695, %v2659_v31  ;;  %v10450_v31 = vld [vmem:[#allocation126_spill] sm:$0xff] }
 0x502   :  { %10441 = vst [vmem:[#allocation136_spill] sm:$0xff] %v8560_v51  ;;  %v8565_v29 = vpop.eup %6693  ;;  %v2571_v21 = vpop.xlane.xlu0 %2570  ;;  %2927 = vadd.xlane.f32.xlu1 %v2926_v39  ;;  %v2929_v61 = vsel %vm137_vm1, %v8560_v51, 0.0  ;;  %6705 = vpow2.f32 %v2771_v37  ;;  %v2660_v24 = vsub.f32 %v10446_v19, %v2580_v11 }
 0x503   :  { %10443 = vst [vmem:[#allocation137_spill] sm:$0xff] %v8565_v29  ;;  %v8569_v59 = vpop.eup %6695  ;;  %v2657_v14 = vsub.f32 %v10445_v2, %v2571_v21  ;;  %v2574_v63 = vpop.xlane.xlu1 %2573  ;;  %2930 = vadd.xlane.f32.xlu0 %v2929_v61  ;;  %v2932_v33 = vsel %vm137_vm1, %v8565_v29, 0.0 }
 0x504   :  { %10444 = vst [vmem:[#allocation138_spill] sm:$0xff] %v8569_v59  ;;  %v2658_v34 = vsub.f32 %v10447_v18, %v2574_v63  ;;  %v8576_v39 = vpop.eup %6697  ;;  %v2935_v21 = vsel %vm137_vm1, %v8569_v59, 0.0  ;;  %v2779_v37 = vmul.f32 1.442695, %v2660_v24 }
 0x505   :  { %v2773_v26 = vmul.f32 1.442695, %v2657_v14  ;;  %10448 = vst [vmem:[#allocation139_spill] sm:$0xff] %v8576_v39  ;;  %v2938_v63 = vsel %vm137_vm1, %v8576_v39, 0.0 }
 0x506   :  { %v2775_v23 = vmul.f32 1.442695, %v2658_v34  ;;  %v2589_v51 = vpop.xlane.xlu0 %2588  ;;  %2933 = vadd.xlane.f32.xlu1 %v2932_v33 }
 0x507   :  { %6707 = vpow2.f32 %v2773_v26  ;;  %v2592_v61 = vpop.xlane.xlu1 %2591  ;;  %2936 = vadd.xlane.f32.xlu0 %v2935_v21  ;;  %v2663_v14 = vsub.f32 %v10450_v31, %v2589_v51  ;;  %v10451_v21 = vld [vmem:[#allocation127_spill] sm:$0xff]  ;;  %v10453_v51 = vld [vmem:[#allocation129_spill] sm:$0xff] }
 0x508   :  { %6709 = vpow2.f32 %v2775_v23 }
 0x509   :  { %v8580_v11 = vpop.eup %6699  ;;  %6711 = vpow2.f32 %v2777_v28  ;;  %v10452_v28 = vld [vmem:[#allocation128_spill] sm:$0xff]  ;;  %v2785_v2 = vmul.f32 1.442695, %v2663_v14 }
 0x50a   :  { %10449 = vst [vmem:[#allocation140_spill] sm:$0xff] %v8580_v11  ;;  %v8585_v18 = vpop.eup %6701  ;;  %v2583_v34 = vpop.xlane.xlu0 %2582  ;;  %2939 = vadd.xlane.f32.xlu1 %v2938_v63  ;;  %v2941_v33 = vsel %vm137_vm1, %v8580_v11, 0.0  ;;  %6713 = vpow2.f32 %v2779_v37  ;;  %v2664_v19 = vsub.f32 %v10452_v28, %v2592_v61 }
 0x50b   :  { %v8589_v26 = vpop.eup %6703  ;;  %v2661_v24 = vsub.f32 %v10451_v21, %v2583_v34  ;;  %v2586_v23 = vpop.xlane.xlu1 %2585  ;;  %2942 = vadd.xlane.f32.xlu0 %v2941_v33  ;;  %v2944_v59 = vsel %vm137_vm1, %v8585_v18, 0.0  ;;  %v10454_v33 = vld [vmem:[#allocation131_spill] sm:$0xff] }
 0x50c   :  { %v2662_v31 = vsub.f32 %v10453_v51, %v2586_v23  ;;  %v8596_v63 = vpop.eup %6705  ;;  %v2947_v34 = vsel %vm137_vm1, %v8589_v26, 0.0  ;;  %v2787_v61 = vmul.f32 1.442695, %v2664_v19  ;;  %v10455_v51 = vld [vmem:[#allocation133_spill] sm:$0xff] }
 0x50d   :  { %v2781_v39 = vmul.f32 1.442695, %v2661_v24 }
 0x50e   :  { %v2783_v29 = vmul.f32 1.442695, %v2662_v31  ;;  %v2595_v11 = vpop.xlane.xlu0 %2594  ;;  %2945 = vadd.xlane.f32.xlu1 %v2944_v59  ;;  %v2950_v31 = vsel %vm137_vm1, %v8596_v63, 0.0 }
 0x50f   :  { %6715 = vpow2.f32 %v2781_v39  ;;  %v2665_v37 = vsub.f32 %v10454_v33, %v2595_v11  ;;  %2948 = vadd.xlane.f32.xlu0 %v2947_v34 }
 0x510   :  { %6717 = vpow2.f32 %v2783_v29  ;;  %v2598_v23 = vpop.xlane.xlu1 %2597 }
 0x511   :  { %v8601_v14 = vpop.eup %6707  ;;  %6719 = vpow2.f32 %v2785_v2  ;;  %v2789_v24 = vmul.f32 1.442695, %v2665_v37  ;;  %v2666_v28 = vsub.f32 %v10455_v51, %v2598_v23 }
 0x512   :  { %v8606_v59 = vpop.eup %6709  ;;  %2951 = vadd.xlane.f32.xlu1 %v2950_v31  ;;  %v2953_v39 = vsel %vm137_vm1, %v8601_v14, 0.0  ;;  %6721 = vpow2.f32 %v2787_v61 }
 0x513   :  { %10456 = vst [vmem:[#allocation141_spill] sm:$0xff] %v8606_v59  ;;  %v8610_v11 = vpop.eup %6711  ;;  %2954 = vadd.xlane.f32.xlu0 %v2953_v39  ;;  %v2791_v29 = vmul.f32 1.442695, %v2666_v28  ;;  %6723 = vpow2.f32 %v2789_v24  ;;  %v2956_v2 = vsel %vm137_vm1, %v8606_v59, 0.0 }
 0x514   :  { %10457 = vst [vmem:[#allocation142_spill] sm:$0xff] %v8610_v11  ;;  %v8614_v19 = vpop.eup %6713  ;;  %v2959_v34 = vsel %vm137_vm1, %v8610_v11, 0.0 }
 0x515   :  { %10458 = vst [vmem:[#allocation143_spill] sm:$0xff] %v8614_v19  ;;  %6725 = vpow2.f32 %v2791_v29  ;;  %v2962_v23 = vsel %vm137_vm1, %v8614_v19, 0.0 }
 0x516   :  { %2957 = vadd.xlane.f32.xlu1 %v2956_v2 }
 0x517   :  { %2960 = vadd.xlane.f32.xlu0 %v2959_v34 }
 0x519   :  { %v8618_v37 = vpop.eup %6715 }
 0x51a   :  { %10459 = vst [vmem:[#allocation144_spill] sm:$0xff] %v8618_v37  ;;  %v8622_v31 = vpop.eup %6717  ;;  %2963 = vadd.xlane.f32.xlu1 %v2962_v23  ;;  %v2965_v28 = vsel %vm137_vm1, %v8618_v37, 0.0 }
 0x51b   :  { %10460 = vst [vmem:[#allocation145_spill] sm:$0xff] %v8622_v31  ;;  %v8626_v61 = vpop.eup %6719  ;;  %2966 = vadd.xlane.f32.xlu0 %v2965_v28  ;;  %v2968_v24 = vsel %vm137_vm1, %v8622_v31, 0.0 }
 0x51c   :  { %10461 = vst [vmem:[#allocation146_spill] sm:$0xff] %v8626_v61  ;;  %v8630_v39 = vpop.eup %6721  ;;  %v2971_v29 = vsel %vm137_vm1, %v8626_v61, 0.0 }
 0x51d   :  { %10462 = vst [vmem:[#allocation147_spill] sm:$0xff] %v8630_v39  ;;  %v8634_v2 = vpop.eup %6723  ;;  %v2974_v34 = vsel %vm137_vm1, %v8630_v39, 0.0 }
 0x51e   :  { %2969 = vadd.xlane.f32.xlu1 %v2968_v24  ;;  %10463 = vst [vmem:[#allocation148_spill] sm:$0xff] %v8634_v2  ;;  %v2977_v28 = vsel %vm137_vm1, %v8634_v2, 0.0 }
 0x51f   :  { %2972 = vadd.xlane.f32.xlu0 %v2971_v29  ;;  %v8638_v23 = vpop.eup %6725 }
 0x520   :  { %10464 = vst [vmem:[#allocation149_spill] sm:$0xff] %v8638_v23  ;;  %v2980_v51 = vsel %vm137_vm1, %v8638_v23, 0.0 }
 0x522   :  { %2975 = vadd.xlane.f32.xlu1 %v2974_v34 }
 0x523   :  { %2978 = vadd.xlane.f32.xlu0 %v2977_v28 }
 0x526   :  { %2981 = vadd.xlane.f32.xlu1 %v2980_v51 }
 0x533   :  { %v2805_v24 = vpop.xlane.xlu0 %2804 }
 0x537   :  { %v2799_v33 = vpop.xlane.xlu0 %2798  ;;  %v2808_v21 = vpop.xlane.xlu1 %2807 }
 0x538   :  { %6727 = vrcp.f32 %v2808_v21 }
 0x539   :  { %6729 = vrcp.f32 %v2799_v33 }
 0x53a   :  { %6731 = vrcp.f32 %v2805_v24 }
 0x53b   :  { %v2802_v29 = vpop.xlane.xlu1 %2801 }
 0x53c   :  { %6733 = vrcp.f32 %v2802_v29  ;;  %v2817_v39 = vpop.xlane.xlu0 %2816 }
 0x53f   :  { %v2820_v61 = vpop.xlane.xlu1 %2819 }
 0x540   :  { %v2811_v31 = vpop.xlane.xlu0 %2810  ;;  %6735 = vrcp.f32 %v2820_v61 }
 0x541   :  { %6737 = vrcp.f32 %v2811_v31 }
 0x542   :  { %v6728_v34 = vpop.eup %6727  ;;  %6739 = vrcp.f32 %v2817_v39 }
 0x543   :  { %v2814_v28 = vpop.xlane.xlu1 %2813  ;;  %v6730_v2 = vpop.eup %6729  ;;  %v3056_v19 = vmul.f32 %v6728_v34, %v8345_v22 }
 0x544   :  { %6741 = vrcp.f32 %v2814_v28  ;;  %v2829_v23 = vpop.xlane.xlu0 %2828  ;;  %v6732_v51 = vpop.eup %6731  ;;  %v3053_v33 = vmul.f32 %v6730_v2, %v8342_v1 }
 0x545   :  { %v3055_v29 = vmul.f32 %v6732_v51, %v8337_v25  ;;  %v8653_v25 = vld [vmem:[%s9968_s3] sm:$0xff]  }
 0x546   :  { %v6734_v37 = vpop.eup %6733 }
 0x547   :  { %v2832_v21 = vpop.xlane.xlu1 %2831  ;;  %v3054_v24 = vmul.f32 %v6734_v37, %v8352_v52  ;;  %v3118_v61 = vpack.c.bf16 %v3056_v19, %v3055_v29  ;;  %v10465_v19 = vmov 0.0  }
 0x548   :  { %v2823_v11 = vpop.xlane.xlu0 %2822  ;;  %6743 = vrcp.f32 %v2832_v21 }
 0x549   :  { %v3117_v31 = vpack.c.bf16 %v3054_v24, %v3053_v33  ;;  %6745 = vrcp.f32 %v2823_v11  ;;  %v8664_v33 = vld [vmem:[%s9968_s3 + $0x8] sm:$0xff]  }
 0x54a   :  { %v6736_v39 = vpop.eup %6735  ;;  %6747 = vrcp.f32 %v2829_v23 }
 0x54b   :  { %6286 = vmatprep.mubr.msk.bf16.mxu0 %vm137_vm1, %v3117_v31  ;;  %v2826_v28 = vpop.xlane.xlu1 %2825  ;;  %v6738_v59 = vpop.eup %6737  ;;  %v3060_v11 = vmul.f32 %v6736_v39, %v8360_v40  ;;  %v8674_v31 = vld [vmem:[%s9968_s3 + $0x10] sm:$0xff]  }
 0x54c   :  { %6749 = vrcp.f32 %v2826_v28  ;;  %v2841_v22 = vpop.xlane.xlu0 %2840  ;;  %6287 = vmatmul.mubr.msk.bf16.vlgmr.msra.gmra.mrb[68].mxu0 %vm137_vm1, %v3118_v61  ;;  %v6740_v1 = vpop.eup %6739  ;;  %v3057_v2 = vmul.f32 %v6738_v59, %v8366_v48 }
 0x54d   :  { %6351 = vmatpush3.bf16.msra.mxu0 %v8653_v25  ;;  %v3059_v51 = vmul.f32 %v6740_v1, %v8356_v49 }
 0x54e   :  { %v6742_v52 = vpop.eup %6741  ;;  %6352 = vmatprep.subr.bf16.mxu0 %v10465_v19 }
 0x54f   :  { %v2844_v37 = vpop.xlane.xlu1 %2843  ;;  %v3058_v23 = vmul.f32 %v6742_v52, %v8370_v7  ;;  %v3120_v40 = vpack.c.bf16 %v3060_v11, %v3059_v51 }
 0x550   :  { %v2835_v34 = vpop.xlane.xlu0 %2834  ;;  %6751 = vrcp.f32 %v2844_v37 }
 0x551   :  { %v3119_v21 = vpack.c.bf16 %v3058_v23, %v3057_v2  ;;  %6353 = vmatpush3.bf16.msra.mxu0 %v8664_v33  ;;  %6753 = vrcp.f32 %v2835_v34  ;;  %v8686_v34 = vld [vmem:[%s9968_s3 + $0x18] sm:$0xff]  }
 0x552   :  { %6354 = vmatprep.subr.bf16.mxu0 %v10465_v19  ;;  %v6744_v24 = vpop.eup %6743  ;;  %6755 = vrcp.f32 %v2841_v22 }
 0x553   :  { %6290 = vmatprep.mubr.msk.bf16.mxu0 %vm137_vm1, %v3119_v21  ;;  %v2838_v48 = vpop.xlane.xlu1 %2837  ;;  %v6746_v7 = vpop.eup %6745  ;;  %v3064_v39 = vmul.f32 %v6744_v24, %v8380_v57  ;;  %v8695_v24 = vld [vmem:[%s9968_s3 + $0x20] sm:$0xff]  }
 0x554   :  { %6757 = vrcp.f32 %v2838_v48  ;;  %v2601_v49 = vpop.xlane.xlu0 %2600  ;;  %6291 = vmatmul.mubr.msk.bf16.gmra.mrb[72].mxu0 %vm137_vm1, %v3120_v40  ;;  %v6748_v59 = vpop.eup %6747  ;;  %v3061_v1 = vmul.f32 %v6746_v7, %v8384_v10 }
 0x555   :  { %v2667_v29 = vsub.f32 %v8318_v47, %v2601_v49  ;;  %6355 = vmatpush3.bf16.msra.mxu0 %v8674_v31  ;;  %v3063_v2 = vmul.f32 %v6748_v59, %v8376_v44 }
 0x556   :  { %v6750_v61 = vpop.eup %6749  ;;  %6356 = vmatprep.subr.bf16.mxu0 %v10465_v19 }
 0x557   :  { %v2793_v28 = vmul.f32 1.442695, %v2667_v29  ;;  %v2604_v22 = vpop.xlane.xlu1 %2603  ;;  %v3062_v52 = vmul.f32 %v6750_v61, %v8389_v35  ;;  %v3122_v51 = vpack.c.bf16 %v3064_v39, %v3063_v2 }
 0x558   :  { %v2668_v11 = vsub.f32 %v8322_v53, %v2604_v22  ;;  %v2847_v37 = vpop.xlane.xlu0 %2846  ;;  %v8706_v22 = vld [vmem:[%s9968_s3 + $0x28] sm:$0xff]  }
 0x559   :  { %6759 = vpow2.f32 %v2793_v28  ;;  %v3121_v23 = vpack.c.bf16 %v3062_v52, %v3061_v1  ;;  %6357 = vmatpush3.bf16.msra.mxu0 %v8686_v34 }
 0x55a   :  { %v2795_v57 = vmul.f32 1.442695, %v2668_v11  ;;  %6358 = vmatprep.subr.bf16.mxu0 %v10465_v19  ;;  %v6752_v10 = vpop.eup %6751  ;;  %6761 = vrcp.f32 %v2847_v37  ;;  %v8719_v11 = vld [vmem:[%s9968_s3 + $0x30] sm:$0xff]  }
 0x55b   :  { %6294 = vmatprep.mubr.msk.bf16.mxu0 %vm137_vm1, %v3121_v23  ;;  %v2850_v35 = vpop.xlane.xlu1 %2849  ;;  %v6754_v21 = vpop.eup %6753  ;;  %v3068_v7 = vmul.f32 %v6752_v10, %v8400_v60 }
 0x55c   :  { %6763 = vpow2.f32 %v2795_v57  ;;  %v2853_v44 = vpop.xlane.xlu0 %2852  ;;  %6295 = vmatmul.mubr.msk.bf16.gmra.mrb[76].mxu0 %vm137_vm1, %v3122_v51  ;;  %v6756_v40 = vpop.eup %6755  ;;  %v3065_v59 = vmul.f32 %v6754_v21, %v8404_v42 }
 0x55d   :  { %6765 = vrcp.f32 %v2850_v35  ;;  %6359 = vmatpush3.bf16.msra.mxu0 %v8695_v24  ;;  %v3067_v39 = vmul.f32 %v6756_v40, %v8396_v27 }
 0x55e   :  { %v6758_v48 = vpop.eup %6757  ;;  %6767 = vrcp.f32 %v2853_v44  ;;  %6360 = vmatprep.subr.bf16.mxu0 %v10465_v19  ;;  %v8732_v44 = vld [vmem:[%s9968_s3 + $0x38] sm:$0xff]  }
 0x55f   :  { %v2856_v49 = vpop.xlane.xlu1 %2855  ;;  %v3066_v29 = vmul.f32 %v6758_v48, %v8409_v30  ;;  %v3124_v60 = vpack.c.bf16 %v3068_v7, %v3067_v39 }
 0x560   :  { %6769 = vrcp.f32 %v2856_v49  ;;  %v2859_v61 = vpop.xlane.xlu0 %2858 }
 0x561   :  { %v3123_v28 = vpack.c.bf16 %v3066_v29, %v3065_v59  ;;  %6361 = vmatpush3.bf16.msra.mxu0 %v8706_v22  ;;  %6771 = vrcp.f32 %v2859_v61 }
 0x562   :  { %6362 = vmatprep.subr.bf16.mxu0 %v10465_v19 }
 0x563   :  { %v8710_v1 = vpop.eup %6759  ;;  %6298 = vmatprep.mubr.msk.bf16.mxu0 %vm137_vm1, %v3123_v28  ;;  %v2862_v30 = vpop.xlane.xlu1 %2861 }
 0x564   :  { %6773 = vrcp.f32 %v2862_v30  ;;  %v2865_v42 = vpop.xlane.xlu0 %2864  ;;  %6299 = vmatmul.mubr.msk.bf16.gmra.mrb[80].mxu0 %vm137_vm1, %v3124_v60  ;;  %v2983_v27 = vsel %vm137_vm1, %v8710_v1, 0.0  ;;  %v6762_v52 = vpop.eup %6761 }
 0x565   :  { %2984 = vadd.xlane.f32.xlu0 %v2983_v27  ;;  %6363 = vmatpush3.bf16.msra.mxu0 %v8719_v11  ;;  %6775 = vrcp.f32 %v2865_v42  ;;  %v3069_v35 = vmul.f32 %v6762_v52, %v8420_v41 }
 0x566   :  { %v8722_v37 = vpop.eup %6763  ;;  %6364 = vmatprep.subr.bf16.mxu0 %v10465_v19 }
 0x567   :  { %v6766_v2 = vpop.eup %6765  ;;  %v2868_v23 = vpop.xlane.xlu1 %2867  ;;  %v2986_v57 = vsel %vm137_vm1, %v8722_v37, 0.0 }
 0x568   :  { %v6768_v51 = vpop.eup %6767  ;;  %6777 = vrcp.f32 %v2868_v23  ;;  %v2871_v10 = vpop.xlane.xlu0 %2870  ;;  %2987 = vadd.xlane.f32.xlu1 %v2986_v57  ;;  %v3070_v21 = vmul.f32 %v6766_v2, %v8425_v20 }
 0x569   :  { %6365 = vmatpush3.bf16.msra.mxu0 %v8732_v44  ;;  %6779 = vrcp.f32 %v2871_v10  ;;  %v3071_v49 = vmul.f32 %v6768_v51, %v8429_v16 }
 0x56a   :  { %v6770_v40 = vpop.eup %6769  ;;  %v3125_v48 = vpack.c.bf16 %v3070_v21, %v3069_v35  ;;  %6376 = vmatprep.subr.bf16.mxu0 %v8653_v25 }
 0x56b   :  { %v2874_v7 = vpop.xlane.xlu1 %2873  ;;  %v3072_v59 = vmul.f32 %v6770_v40, %v8436_v43  ;;  %v6772_v41 = vpop.eup %6771 }
 0x56c   :  { %6302 = vmatprep.mubr.msk.bf16.mxu0 %vm137_vm1, %v3125_v48  ;;  %6781 = vrcp.f32 %v2874_v7  ;;  %v2877_v20 = vpop.xlane.xlu0 %2876  ;;  %v3073_v28 = vmul.f32 %v6772_v41, %v8440_v58 }
 0x56d   :  { %v3126_v29 = vpack.c.bf16 %v3072_v59, %v3071_v49  ;;  %6783 = vrcp.f32 %v2877_v20 }
 0x56e   :  { %v6774_v61 = vpop.eup %6773 }
 0x56f   :  { %6303 = vmatmul.mubr.msk.bf16.gmra.mrb[84].mxu0 %vm137_vm1, %v3126_v29  ;;  %v2880_v39 = vpop.xlane.xlu1 %2879  ;;  %v3074_v60 = vmul.f32 %v6774_v61, %v8445_v50  ;;  %v6776_v30 = vpop.eup %6775 }
 0x570   :  { %6785 = vrcp.f32 %v2880_v39  ;;  %v2883_v16 = vpop.xlane.xlu0 %2882  ;;  %v3075_v52 = vmul.f32 %v6776_v30, %v8449_v4 }
 0x571   :  { %v3127_v42 = vpack.c.bf16 %v3074_v60, %v3073_v28  ;;  %6787 = vrcp.f32 %v2883_v16 }
 0x572   :  { %v6778_v43 = vpop.eup %6777 }
 0x573   :  { %6306 = vmatprep.mubr.msk.bf16.mxu0 %vm137_vm1, %v3127_v42  ;;  %v2886_v27 = vpop.xlane.xlu1 %2885  ;;  %v3076_v2 = vmul.f32 %v6778_v43, %v8456_v0  ;;  %v6780_v23 = vpop.eup %6779 }
 0x574   :  { %6789 = vrcp.f32 %v2886_v27  ;;  %v2889_v57 = vpop.xlane.xlu0 %2888  ;;  %v3077_v10 = vmul.f32 %v6780_v23, %v8460_v36 }
 0x575   :  { %v3128_v51 = vpack.c.bf16 %v3076_v2, %v3075_v52  ;;  %6791 = vrcp.f32 %v2889_v57 }
 0x576   :  { %v6782_v58 = vpop.eup %6781 }
 0x577   :  { %6307 = vmatmul.mubr.msk.bf16.gmra.mrb[88].mxu0 %vm137_vm1, %v3128_v51  ;;  %v2892_v50 = vpop.xlane.xlu1 %2891  ;;  %v3078_v35 = vmul.f32 %v6782_v58, %v8465_v56  ;;  %v6784_v21 = vpop.eup %6783 }
 0x578   :  { %6793 = vrcp.f32 %v2892_v50  ;;  %v2895_v40 = vpop.xlane.xlu0 %2894  ;;  %v3079_v7 = vmul.f32 %v6784_v21, %v8469_v54 }
 0x579   :  { %v3129_v48 = vpack.c.bf16 %v3078_v35, %v3077_v10  ;;  %6795 = vrcp.f32 %v2895_v40 }
 0x57a   :  { %v6786_v4 = vpop.eup %6785 }
 0x57b   :  { %6310 = vmatprep.mubr.msk.bf16.mxu0 %vm137_vm1, %v3129_v48  ;;  %v2898_v0 = vpop.xlane.xlu1 %2897  ;;  %v3080_v49 = vmul.f32 %v6786_v4, %v8476_v15  ;;  %v6788_v59 = vpop.eup %6787 }
 0x57c   :  { %6797 = vrcp.f32 %v2898_v0  ;;  %v2901_v41 = vpop.xlane.xlu0 %2900  ;;  %v3081_v29 = vmul.f32 %v6788_v59, %v8480_v13 }
 0x57d   :  { %v3130_v20 = vpack.c.bf16 %v3080_v49, %v3079_v7  ;;  %6799 = vrcp.f32 %v2901_v41 }
 0x57e   :  { %v6790_v36 = vpop.eup %6789 }
 0x57f   :  { %6311 = vmatmul.mubr.msk.bf16.gmra.mrb[92].mxu0 %vm137_vm1, %v3130_v20  ;;  %v2904_v56 = vpop.xlane.xlu1 %2903  ;;  %v3082_v61 = vmul.f32 %v6790_v36, %v8485_v62  ;;  %v6792_v39 = vpop.eup %6791 }
 0x580   :  { %6801 = vrcp.f32 %v2904_v56  ;;  %v2907_v28 = vpop.xlane.xlu0 %2906  ;;  %v3083_v30 = vmul.f32 %v6792_v39, %v8489_v32 }
 0x581   :  { %v3131_v60 = vpack.c.bf16 %v3082_v61, %v3081_v29  ;;  %6803 = vrcp.f32 %v2907_v28 }
 0x582   :  { %v6794_v54 = vpop.eup %6793 }
 0x583   :  { %6314 = vmatprep.mubr.msk.bf16.mxu0 %vm137_vm1, %v3131_v60  ;;  %v2910_v15 = vpop.xlane.xlu1 %2909  ;;  %v3084_v16 = vmul.f32 %v6794_v54, %v8496_v3  ;;  %v6796_v42 = vpop.eup %6795  ;;  %v10466_v60 = vld [vmem:[#allocation134_spill] sm:$0xff] }
 0x584   :  { %6805 = vrcp.f32 %v2910_v15  ;;  %v2913_v43 = vpop.xlane.xlu0 %2912  ;;  %v3085_v52 = vmul.f32 %v6796_v42, %v8500_v8  ;;  %v10467_v15 = vld [vmem:[#allocation135_spill] sm:$0xff] }
 0x585   :  { %v3132_v27 = vpack.c.bf16 %v3084_v16, %v3083_v30  ;;  %6807 = vrcp.f32 %v2913_v43 }
 0x586   :  { %v6798_v13 = vpop.eup %6797 }
 0x587   :  { %6315 = vmatmul.mubr.msk.bf16.gmra.mrb[96].mxu0 %vm137_vm1, %v3132_v27  ;;  %v2916_v62 = vpop.xlane.xlu1 %2915  ;;  %v3086_v2 = vmul.f32 %v6798_v13, %v8505_v17  ;;  %v6800_v23 = vpop.eup %6799  ;;  %v10468_v27 = vld [vmem:[#allocation136_spill] sm:$0xff] }
 0x588   :  { %6809 = vrcp.f32 %v2916_v62  ;;  %v2919_v57 = vpop.xlane.xlu0 %2918  ;;  %v3087_v58 = vmul.f32 %v6800_v23, %v8509_v9  ;;  %v10469_v62 = vld [vmem:[#allocation137_spill] sm:$0xff] }
 0x589   :  { %v3133_v51 = vpack.c.bf16 %v3086_v2, %v3085_v52  ;;  %6811 = vrcp.f32 %v2919_v57 }
 0x58a   :  { %v6802_v32 = vpop.eup %6801 }
 0x58b   :  { %6318 = vmatprep.mubr.msk.bf16.mxu0 %vm137_vm1, %v3133_v51  ;;  %v2922_v3 = vpop.xlane.xlu1 %2921  ;;  %v3088_v50 = vmul.f32 %v6802_v32, %v8516_v12  ;;  %v6804_v10 = vpop.eup %6803 }
 0x58c   :  { %6813 = vrcp.f32 %v2922_v3  ;;  %v2925_v35 = vpop.xlane.xlu0 %2924  ;;  %v3089_v40 = vmul.f32 %v6804_v10, %v8520_v45  ;;  %v10470_v3 = vld [vmem:[#allocation138_spill] sm:$0xff] }
 0x58d   :  { %v3134_v21 = vpack.c.bf16 %v3088_v50, %v3087_v58  ;;  %6815 = vrcp.f32 %v2925_v35  ;;  %v10471_v50 = vld [vmem:[#allocation139_spill] sm:$0xff] }
 0x58e   :  { %v6806_v8 = vpop.eup %6805 }
 0x58f   :  { %6319 = vmatmul.mubr.msk.bf16.gmra.mrb[100].mxu0 %vm137_vm1, %v3134_v21  ;;  %v2928_v17 = vpop.xlane.xlu1 %2927  ;;  %v3090_v48 = vmul.f32 %v6806_v8, %v8525_v46  ;;  %v6808_v4 = vpop.eup %6807 }
 0x590   :  { %6817 = vrcp.f32 %v2928_v17  ;;  %v2931_v0 = vpop.xlane.xlu0 %2930  ;;  %v3091_v49 = vmul.f32 %v6808_v4, %v8529_v55 }
 0x591   :  { %v3135_v7 = vpack.c.bf16 %v3090_v48, %v3089_v40  ;;  %6819 = vrcp.f32 %v2931_v0  ;;  %v10472_v48 = vld [vmem:[#allocation140_spill] sm:$0xff] }
 0x592   :  { %v6810_v9 = vpop.eup %6809 }
 0x593   :  { %6322 = vmatprep.mubr.msk.bf16.mxu0 %vm137_vm1, %v3135_v7  ;;  %v2934_v12 = vpop.xlane.xlu1 %2933  ;;  %v3092_v59 = vmul.f32 %v6810_v9, %v8536_v5  ;;  %v6812_v41 = vpop.eup %6811 }
 0x594   :  { %6821 = vrcp.f32 %v2934_v12  ;;  %v2937_v20 = vpop.xlane.xlu0 %2936  ;;  %v3093_v56 = vmul.f32 %v6812_v41, %v8540_v38 }
 0x595   :  { %v3136_v36 = vpack.c.bf16 %v3092_v59, %v3091_v49  ;;  %6823 = vrcp.f32 %v2937_v20 }
 0x596   :  { %v6814_v45 = vpop.eup %6813 }
 0x597   :  { %6323 = vmatmul.mubr.msk.bf16.gmra.mrb[104].mxu0 %vm137_vm1, %v3136_v36  ;;  %v2940_v46 = vpop.xlane.xlu1 %2939  ;;  %v3094_v29 = vmul.f32 %v6814_v45, %v8545_v6  ;;  %v6816_v61 = vpop.eup %6815 }
 0x598   :  { %6825 = vrcp.f32 %v2940_v46  ;;  %v2943_v39 = vpop.xlane.xlu0 %2942  ;;  %v3095_v54 = vmul.f32 %v6816_v61, %v10466_v60  ;;  %v10473_v61 = vld [vmem:[#allocation141_spill] sm:$0xff]  ;;  %v10474_v60 = vld [vmem:[#allocation142_spill] sm:$0xff] }
 0x599   :  { %v3137_v28 = vpack.c.bf16 %v3094_v29, %v3093_v56  ;;  %6827 = vrcp.f32 %v2943_v39 }
 0x59a   :  { %v6818_v55 = vpop.eup %6817 }
 0x59b   :  { %6326 = vmatprep.mubr.msk.bf16.mxu0 %vm137_vm1, %v3137_v28  ;;  %v2946_v5 = vpop.xlane.xlu1 %2945  ;;  %v3096_v30 = vmul.f32 %v6818_v55, %v10467_v15  ;;  %v6820_v16 = vpop.eup %6819  ;;  %v10475_v15 = vld [vmem:[#allocation143_spill] sm:$0xff] }
 0x59c   :  { %6829 = vrcp.f32 %v2946_v5  ;;  %v2949_v42 = vpop.xlane.xlu0 %2948  ;;  %v3097_v13 = vmul.f32 %v6820_v16, %v10468_v27 }
 0x59d   :  { %v3138_v43 = vpack.c.bf16 %v3096_v30, %v3095_v54  ;;  %6831 = vrcp.f32 %v2949_v42 }
 0x59e   :  { %v6822_v38 = vpop.eup %6821 }
 0x59f   :  { %6327 = vmatmul.mubr.msk.bf16.gmra.mrb[108].mxu0 %vm137_vm1, %v3138_v43  ;;  %v2952_v6 = vpop.xlane.xlu1 %2951  ;;  %v3098_v52 = vmul.f32 %v6822_v38, %v10469_v62  ;;  %v6824_v2 = vpop.eup %6823 }
 0x5a0   :  { %6833 = vrcp.f32 %v2952_v6  ;;  %v2955_v23 = vpop.xlane.xlu0 %2954  ;;  %v3099_v58 = vmul.f32 %v6824_v2, %v10470_v3  ;;  %v10477_v6 = vld [vmem:[#allocation145_spill] sm:$0xff]  ;;  %v10478_v2 = vld [vmem:[#allocation146_spill] sm:$0xff] }
 0x5a1   :  { %v3139_v57 = vpack.c.bf16 %v3098_v52, %v3097_v13  ;;  %6835 = vrcp.f32 %v2955_v23 }
 0x5a2   :  { %v6826_v51 = vpop.eup %6825 }
 0x5a3   :  { %6330 = vmatprep.mubr.msk.bf16.mxu0 %vm137_vm1, %v3139_v57  ;;  %v2958_v32 = vpop.xlane.xlu1 %2957  ;;  %v3100_v10 = vmul.f32 %v6826_v51, %v10471_v50  ;;  %v6828_v35 = vpop.eup %6827  ;;  %v10479_v57 = vld [vmem:[#allocation147_spill] sm:$0xff]  ;;  %v10480_v50 = vld [vmem:[#allocation148_spill] sm:$0xff] }
 0x5a4   :  { %6837 = vrcp.f32 %v2958_v32  ;;  %v2961_v21 = vpop.xlane.xlu0 %2960  ;;  %v3101_v4 = vmul.f32 %v6828_v35, %v10472_v48  ;;  %v10481_v35 = vld [vmem:[#allocation149_spill] sm:$0xff] }
 0x5a5   :  { %v3140_v8 = vpack.c.bf16 %v3100_v10, %v3099_v58  ;;  %6839 = vrcp.f32 %v2961_v21 }
 0x5a6   :  { %v6830_v17 = vpop.eup %6829 }
 0x5a7   :  { %6331 = vmatmul.mubr.msk.bf16.gmra.mrb[112].mxu0 %vm137_vm1, %v3140_v8  ;;  %v2964_v40 = vpop.xlane.xlu1 %2963  ;;  %v3102_v0 = vmul.f32 %v6830_v17, %v8585_v18  ;;  %v6832_v7 = vpop.eup %6831 }
 0x5a8   :  { %6841 = vrcp.f32 %v2964_v40  ;;  %v2967_v9 = vpop.xlane.xlu0 %2966  ;;  %v3103_v41 = vmul.f32 %v6832_v7, %v8589_v26 }
 0x5a9   :  { %v3141_v12 = vpack.c.bf16 %v3102_v0, %v3101_v4  ;;  %6843 = vrcp.f32 %v2967_v9 }
 0x5aa   :  { %v6834_v49 = vpop.eup %6833 }
 0x5ab   :  { %6334 = vmatprep.mubr.msk.bf16.mxu0 %vm137_vm1, %v3141_v12  ;;  %v2970_v59 = vpop.xlane.xlu1 %2969  ;;  %v3104_v20 = vmul.f32 %v6834_v49, %v8596_v63  ;;  %v6836_v36 = vpop.eup %6835  ;;  %v10482_v49 = vld [vmem:[#allocation6_spill] sm:$0xff] }
 0x5ac   :  { %6845 = vrcp.f32 %v2970_v59  ;;  %v2973_v45 = vpop.xlane.xlu0 %2972  ;;  %v3105_v29 = vmul.f32 %v6836_v36, %v8601_v14  ;;  %v10476_v14 = vld [vmem:[#allocation144_spill] sm:$0xff] }
 0x5ad   :  { %v3142_v46 = vpack.c.bf16 %v3104_v20, %v3103_v41  ;;  %6847 = vrcp.f32 %v2973_v45  ;;  %v10483_v20 = vld [vmem:[#allocation5_spill] sm:$0xff] }
 0x5ae   :  { %v6838_v56 = vpop.eup %6837 }
 0x5af   :  { %6335 = vmatmul.mubr.msk.bf16.gmra.mrb[116].mxu0 %vm137_vm1, %v3142_v46  ;;  %v2976_v18 = vpop.xlane.xlu1 %2975  ;;  %v3106_v39 = vmul.f32 %v6838_v56, %v10473_v61  ;;  %v6840_v28 = vpop.eup %6839  ;;  %v10484_v46 = vld [vmem:[#allocation8_spill] sm:$0xff] }
 0x5b0   :  { %6849 = vrcp.f32 %v2976_v18  ;;  %v2979_v55 = vpop.xlane.xlu0 %2978  ;;  %v3107_v54 = vmul.f32 %v6840_v28, %v10474_v60  ;;  %v10486_v28 = vld [vmem:[#allocation10_spill] sm:$0xff] }
 0x5b1   :  { %v3143_v5 = vpack.c.bf16 %v3106_v39, %v3105_v29  ;;  %6851 = vrcp.f32 %v2979_v55 }
 0x5b2   :  { %v6842_v26 = vpop.eup %6841 }
 0x5b3   :  { %6338 = vmatprep.mubr.msk.bf16.mxu0 %vm137_vm1, %v3143_v5  ;;  %v2982_v63 = vpop.xlane.xlu1 %2981  ;;  %v3108_v30 = vmul.f32 %v6842_v26, %v10475_v15  ;;  %v6844_v16 = vpop.eup %6843  ;;  %v10487_v26 = vld [vmem:[#allocation9_spill] sm:$0xff] }
 0x5b4   :  { %6853 = vrcp.f32 %v2982_v63  ;;  %v3109_v38 = vmul.f32 %v6844_v16, %v10476_v14 }
 0x5b5   :  { %v3144_v42 = vpack.c.bf16 %v3108_v30, %v3107_v54  ;;  %v10488_v54 = vld [vmem:[#allocation12_spill] sm:$0xff] }
 0x5b6   :  { %v6846_v43 = vpop.eup %6845 }
 0x5b7   :  { %6339 = vmatmul.mubr.msk.bf16.gmra.mrb[120].mxu0 %vm137_vm1, %v3144_v42  ;;  %v3110_v27 = vmul.f32 %v6846_v43, %v10477_v6  ;;  %v6848_v13 = vpop.eup %6847  ;;  %v10489_v42 = vld [vmem:[#allocation11_spill] sm:$0xff] }
 0x5b8   :  { %v3111_v23 = vmul.f32 %v6848_v13, %v10478_v2  ;;  %v10490_v13 = vld [vmem:[#allocation14_spill] sm:$0xff]  ;;  %v10491_v2 = vld [vmem:[#allocation13_spill] sm:$0xff] }
 0x5b9   :  { %v3145_v62 = vpack.c.bf16 %v3110_v27, %v3109_v38 }
 0x5ba   :  { %v6850_v52 = vpop.eup %6849 }
 0x5bb   :  { %6342 = vmatprep.mubr.msk.bf16.mxu0 %vm137_vm1, %v3145_v62  ;;  %v3112_v51 = vmul.f32 %v6850_v52, %v10479_v57  ;;  %v6852_v32 = vpop.eup %6851 }
 0x5bc   :  { %v3113_v10 = vmul.f32 %v6852_v32, %v10480_v50  ;;  %v10493_v50 = vld [vmem:[#allocation15_spill] sm:$0xff] }
 0x5bd   :  { %v3146_v3 = vpack.c.bf16 %v3112_v51, %v3111_v23  ;;  %v10492_v51 = vld [vmem:[#allocation16_spill] sm:$0xff] }
 0x5be   :  { %v6854_v58 = vpop.eup %6853 }
 0x5bf   :  { %6343 = vmatmul.mubr.msk.bf16.gmra.mrb[124].mxu0 %vm137_vm1, %v3146_v3  ;;  %v3114_v21 = vmul.f32 %v6854_v58, %v10481_v35 }
 0x5c1   :  { %v3147_v8 = vpack.c.bf16 %v3114_v21, %v3113_v10 }
 0x5c3   :  { %6346 = vmatprep.mubr.msk.bf16.mxu0 %vm137_vm1, %v3147_v8 }
 0x5f2   :  { %v2985_v17 = vpop.xlane.xlu0 %2984 }
 0x5f3   :  { %6855 = vrcp.f32 %v2985_v17 }
 0x5f5   :  { %v2988_v40 = vpop.xlane.xlu1 %2987 }
 0x5f6   :  { %6857 = vrcp.f32 %v2988_v40  ;;  %v10494_v40 = vld [vmem:[#allocation18_spill] sm:$0xff] }
 0x5fd   :  { %v6856_v48 = vpop.eup %6855 }
 0x5fe   :  { %v3115_v0 = vmul.f32 %v6856_v48, %v8710_v1  ;;  %v10485_v1 = vld [vmem:[#allocation7_spill] sm:$0xff] }
 0x600   :  { %v6858_v4 = vpop.eup %6857 }
 0x601   :  { %v3116_v7 = vmul.f32 %v6858_v4, %v8722_v37 }
 0x603   :  { %v3148_v9 = vpack.c.bf16 %v3116_v7, %v3115_v0  ;;  %v10495_v0 = vld [vmem:[#allocation17_spill] sm:$0xff] }
 0x605   :  { %6347 = vmatmul.mubr.msk.bf16.gmra.mrb[128].mxu0 %vm137_vm1, %v3148_v9 }
 0x606   :  { %6366 = vmatprep.mubr.msk.bf16.mxu0 %vm7172_vm2, %v10465_v19 }
 0x61f   :  { %v6288_v12 = vpop.f32.mrb[68].mxu0 }
 0x620   :  { %v3536_v59 = vmul.f32 %v6288_v12, %v10482_v49  ;;  %v3279_v41 = vpop.f32.mrb[69].mxu0  ;;  %v10496_v12 = vld [vmem:[#allocation20_spill] sm:$0xff] }
 0x621   :  { %v3534_v36 = vmul.f32 %v3279_v41, %v10483_v20  ;;  %v6289_v45 = vpop.f32.mrb[70].mxu0 }
 0x622   :  { %v3537_v56 = vmul.f32 %v6289_v45, %v10484_v46  ;;  %v3282_v18 = vpop.f32.mrb[71].mxu0  ;;  %v10497_v45 = vld [vmem:[#allocation19_spill] sm:$0xff] }
 0x623   :  { %v3598_v29 = vadd.f32 %v3536_v59, %v3534_v36  ;;  %v3535_v61 = vmul.f32 %v3282_v18, %v10485_v1 }
 0x625   :  { %v3629_v37 = vadd.f32 %v3537_v56, %v3535_v61 }
 0x627   :  { %v6292_v39 = vpop.f32.mrb[72].mxu0 }
 0x628   :  { %v3540_v55 = vmul.f32 %v6292_v39, %v10486_v28  ;;  %v3295_v5 = vpop.f32.mrb[73].mxu0  ;;  %v10498_v39 = vld [vmem:[#allocation22_spill] sm:$0xff] }
 0x629   :  { %v3538_v63 = vmul.f32 %v3295_v5, %v10487_v26  ;;  %v6293_v60 = vpop.f32.mrb[74].mxu0 }
 0x62a   :  { %v3541_v15 = vmul.f32 %v6293_v60, %v10488_v54  ;;  %v3298_v30 = vpop.f32.mrb[75].mxu0 }
 0x62b   :  { %v3599_v16 = vadd.f32 %v3598_v29, %v3538_v63  ;;  %v3539_v43 = vmul.f32 %v3298_v30, %v10489_v42  ;;  %v10499_v63 = vld [vmem:[#allocation21_spill] sm:$0xff]  ;;  %v10500_v30 = vld [vmem:[#allocation24_spill] sm:$0xff] }
 0x62d   :  { %v3630_v14 = vadd.f32 %v3629_v37, %v3539_v43  ;;  %v3600_v38 = vadd.f32 %v3599_v16, %v3540_v55 }
 0x62f   :  { %v6296_v6 = vpop.f32.mrb[76].mxu0  ;;  %v3631_v27 = vadd.f32 %v3630_v14, %v3541_v15 }
 0x630   :  { %v3544_v62 = vmul.f32 %v6296_v6, %v10490_v13  ;;  %v3311_v52 = vpop.f32.mrb[77].mxu0 }
 0x631   :  { %v3542_v23 = vmul.f32 %v3311_v52, %v10491_v2  ;;  %v6297_v57 = vpop.f32.mrb[78].mxu0 }
 0x632   :  { %v3545_v32 = vmul.f32 %v6297_v57, %v10492_v51  ;;  %v3314_v3 = vpop.f32.mrb[79].mxu0  ;;  %v10502_v57 = vld [vmem:[#allocation26_spill] sm:$0xff] }
 0x633   :  { %v3601_v58 = vadd.f32 %v3600_v38, %v3542_v23  ;;  %v3543_v10 = vmul.f32 %v3314_v3, %v10493_v50  ;;  %v10501_v38 = vld [vmem:[#allocation23_spill] sm:$0xff] }
 0x635   :  { %v3632_v35 = vadd.f32 %v3631_v27, %v3543_v10  ;;  %v3602_v21 = vadd.f32 %v3601_v58, %v3544_v62  ;;  %v10503_v58 = vld [vmem:[#allocation25_spill] sm:$0xff] }
 0x637   :  { %v6300_v8 = vpop.f32.mrb[80].mxu0  ;;  %v3633_v17 = vadd.f32 %v3632_v35, %v3545_v32 }
 0x638   :  { %v3548_v48 = vmul.f32 %v6300_v8, %v10494_v40  ;;  %v3327_v4 = vpop.f32.mrb[81].mxu0 }
 0x639   :  { %v3546_v7 = vmul.f32 %v3327_v4, %v10495_v0  ;;  %v6301_v9 = vpop.f32.mrb[82].mxu0  ;;  %v10505_v4 = vld [vmem:[#allocation27_spill] sm:$0xff] }
 0x63a   :  { %v3549_v59 = vmul.f32 %v6301_v9, %v10496_v12  ;;  %v3330_v41 = vpop.f32.mrb[83].mxu0 }
 0x63b   :  { %v3603_v36 = vadd.f32 %v3602_v21, %v3546_v7  ;;  %v3547_v56 = vmul.f32 %v3330_v41, %v10497_v45  ;;  %v10504_v21 = vld [vmem:[#allocation28_spill] sm:$0xff] }
 0x63d   :  { %v3634_v18 = vadd.f32 %v3633_v17, %v3547_v56  ;;  %v3604_v29 = vadd.f32 %v3603_v36, %v3548_v48  ;;  %v10506_v56 = vld [vmem:[#allocation30_spill] sm:$0xff] }
 0x63f   :  { %v3635_v61 = vadd.f32 %v3634_v18, %v3549_v59 }
 0x642   :  { %v6304_v37 = vpop.f32.mrb[84].mxu0 }
 0x643   :  { %v3552_v55 = vmul.f32 %v6304_v37, %v10498_v39  ;;  %v3343_v5 = vpop.f32.mrb[85].mxu0 }
 0x644   :  { %v3550_v60 = vmul.f32 %v3343_v5, %v10499_v63  ;;  %v6305_v15 = vpop.f32.mrb[86].mxu0  ;;  %v10508_v5 = vld [vmem:[#allocation32_spill] sm:$0xff] }
 0x645   :  { %v3553_v16 = vmul.f32 %v6305_v15, %v10500_v30  ;;  %v3346_v43 = vpop.f32.mrb[87].mxu0 }
 0x646   :  { %v3605_v14 = vadd.f32 %v3604_v29, %v3550_v60  ;;  %v3551_v6 = vmul.f32 %v3346_v43, %v10501_v38  ;;  %v10509_v43 = vld [vmem:[#allocation31_spill] sm:$0xff] }
 0x648   :  { %v3636_v27 = vadd.f32 %v3635_v61, %v3551_v6  ;;  %v3606_v62 = vadd.f32 %v3605_v14, %v3552_v55  ;;  %v10507_v61 = vld [vmem:[#allocation29_spill] sm:$0xff] }
 0x64a   :  { %v6308_v52 = vpop.f32.mrb[88].mxu0  ;;  %v3637_v23 = vadd.f32 %v3636_v27, %v3553_v16 }
 0x64b   :  { %v3556_v32 = vmul.f32 %v6308_v52, %v10502_v57  ;;  %v3359_v3 = vpop.f32.mrb[89].mxu0 }
 0x64c   :  { %v3554_v10 = vmul.f32 %v3359_v3, %v10503_v58  ;;  %v6309_v35 = vpop.f32.mrb[90].mxu0 }
 0x64d   :  { %v3557_v8 = vmul.f32 %v6309_v35, %v10504_v21  ;;  %v3362_v17 = vpop.f32.mrb[91].mxu0 }
 0x64e   :  { %v3607_v48 = vadd.f32 %v3606_v62, %v3554_v10  ;;  %v3555_v7 = vmul.f32 %v3362_v17, %v10505_v4  ;;  %v10511_v10 = vld [vmem:[#allocation33_spill] sm:$0xff]  ;;  %v10512_v17 = vld [vmem:[#allocation36_spill] sm:$0xff] }
 0x650   :  { %v3638_v9 = vadd.f32 %v3637_v23, %v3555_v7  ;;  %v3608_v59 = vadd.f32 %v3607_v48, %v3556_v32  ;;  %v10510_v23 = vld [vmem:[#allocation34_spill] sm:$0xff] }
 0x652   :  { %v6312_v41 = vpop.f32.mrb[92].mxu0  ;;  %v3639_v36 = vadd.f32 %v3638_v9, %v3557_v8 }
 0x653   :  { %v3560_v18 = vmul.f32 %v6312_v41, %v10506_v56  ;;  %v3375_v29 = vpop.f32.mrb[93].mxu0  ;;  %v10513_v41 = vld [vmem:[#allocation35_spill] sm:$0xff] }
 0x654   :  { %v3558_v37 = vmul.f32 %v3375_v29, %v10507_v61  ;;  %v6313_v55 = vpop.f32.mrb[94].mxu0 }
 0x655   :  { %v3561_v60 = vmul.f32 %v6313_v55, %v10508_v5  ;;  %v3378_v15 = vpop.f32.mrb[95].mxu0 }
 0x656   :  { %v3609_v16 = vadd.f32 %v3608_v59, %v3558_v37  ;;  %v3559_v14 = vmul.f32 %v3378_v15, %v10509_v43 }
 0x658   :  { %v3640_v6 = vadd.f32 %v3639_v36, %v3559_v14  ;;  %v3610_v27 = vadd.f32 %v3609_v16, %v3560_v18  ;;  %v10514_v36 = vld [vmem:[#allocation38_spill] sm:$0xff] }
 0x65a   :  { %v6316_v62 = vpop.f32.mrb[96].mxu0  ;;  %v3641_v52 = vadd.f32 %v3640_v6, %v3561_v60  ;;  %v10515_v60 = vld [vmem:[#allocation37_spill] sm:$0xff] }
 0x65b   :  { %v3564_v32 = vmul.f32 %v6316_v62, %v10510_v23  ;;  %v3391_v3 = vpop.f32.mrb[97].mxu0  ;;  %v10516_v62 = vld [vmem:[#allocation40_spill] sm:$0xff]  ;;  %v10517_v23 = vld [vmem:[#allocation39_spill] sm:$0xff] }
 0x65c   :  { %v3562_v35 = vmul.f32 %v3391_v3, %v10511_v10  ;;  %v6317_v8 = vpop.f32.mrb[98].mxu0 }
 0x65d   :  { %v3565_v48 = vmul.f32 %v6317_v8, %v10512_v17  ;;  %v3394_v7 = vpop.f32.mrb[99].mxu0 }
 0x65e   :  { %v3611_v9 = vadd.f32 %v3610_v27, %v3562_v35  ;;  %v3563_v29 = vmul.f32 %v3394_v7, %v10513_v41  ;;  %v10521_v41 = vld [vmem:[#allocation43_spill] sm:$0xff] }
 0x660   :  { %v3642_v55 = vadd.f32 %v3641_v52, %v3563_v29  ;;  %v3612_v59 = vadd.f32 %v3611_v9, %v3564_v32  ;;  %v10518_v52 = vld [vmem:[#allocation42_spill] sm:$0xff] }
 0x662   :  { %v6320_v37 = vpop.f32.mrb[100].mxu0  ;;  %v3643_v15 = vadd.f32 %v3642_v55, %v3565_v48  ;;  %v10519_v48 = vld [vmem:[#allocation41_spill] sm:$0xff] }
 0x663   :  { %v3568_v18 = vmul.f32 %v6320_v37, %v10514_v36  ;;  %v3407_v16 = vpop.f32.mrb[101].mxu0  ;;  %v10520_v37 = vld [vmem:[#allocation44_spill] sm:$0xff] }
 0x664   :  { %v3566_v14 = vmul.f32 %v3407_v16, %v10515_v60  ;;  %v6321_v6 = vpop.f32.mrb[102].mxu0 }
 0x665   :  { %v3569_v53 = vmul.f32 %v6321_v6, %v10516_v62  ;;  %v3410_v3 = vpop.f32.mrb[103].mxu0 }
 0x666   :  { %v3613_v47 = vadd.f32 %v3612_v59, %v3566_v14  ;;  %v3567_v8 = vmul.f32 %v3410_v3, %v10517_v23  ;;  %v10525_v23 = vld [vmem:[#allocation47_spill] sm:$0xff] }
 0x668   :  { %v3644_v17 = vadd.f32 %v3643_v15, %v3567_v8  ;;  %v3614_v27 = vadd.f32 %v3613_v47, %v3568_v18  ;;  %v10522_v15 = vld [vmem:[#allocation46_spill] sm:$0xff] }
 0x66a   :  { %v6324_v35 = vpop.f32.mrb[104].mxu0  ;;  %v3645_v7 = vadd.f32 %v3644_v17, %v3569_v53  ;;  %v10523_v53 = vld [vmem:[#allocation45_spill] sm:$0xff] }
 0x66b   :  { %v3572_v32 = vmul.f32 %v6324_v35, %v10518_v52  ;;  %v3423_v9 = vpop.f32.mrb[105].mxu0  ;;  %v10524_v35 = vld [vmem:[#allocation48_spill] sm:$0xff] }
 0x66c   :  { %v3570_v29 = vmul.f32 %v3423_v9, %v10519_v48  ;;  %v6325_v55 = vpop.f32.mrb[106].mxu0 }
 0x66d   :  { %v3573_v36 = vmul.f32 %v6325_v55, %v10520_v37  ;;  %v3426_v16 = vpop.f32.mrb[107].mxu0 }
 0x66e   :  { %v3615_v60 = vadd.f32 %v3614_v27, %v3570_v29  ;;  %v3571_v6 = vmul.f32 %v3426_v16, %v10521_v41  ;;  %v10529_v41 = vld [vmem:[#allocation51_spill] sm:$0xff] }
 0x670   :  { %v3646_v62 = vadd.f32 %v3645_v7, %v3571_v6  ;;  %v3616_v59 = vadd.f32 %v3615_v60, %v3572_v32  ;;  %v10526_v7 = vld [vmem:[#allocation50_spill] sm:$0xff] }
 0x672   :  { %v6328_v14 = vpop.f32.mrb[108].mxu0  ;;  %v3647_v3 = vadd.f32 %v3646_v62, %v3573_v36  ;;  %v10527_v36 = vld [vmem:[#allocation49_spill] sm:$0xff] }
 0x673   :  { %v3576_v47 = vmul.f32 %v6328_v14, %v10522_v15  ;;  %v3439_v18 = vpop.f32.mrb[109].mxu0  ;;  %v10528_v14 = vld [vmem:[#allocation52_spill] sm:$0xff] }
 0x674   :  { %v3574_v17 = vmul.f32 %v3439_v18, %v10523_v53  ;;  %v6329_v8 = vpop.f32.mrb[110].mxu0 }
 0x675   :  { %v3577_v52 = vmul.f32 %v6329_v8, %v10524_v35  ;;  %v3442_v9 = vpop.f32.mrb[111].mxu0 }
 0x676   :  { %v3617_v48 = vadd.f32 %v3616_v59, %v3574_v17  ;;  %v3575_v55 = vmul.f32 %v3442_v9, %v10525_v23  ;;  %v10533_v23 = vld [vmem:[#allocation55_spill] sm:$0xff] }
 0x678   :  { %v3648_v37 = vadd.f32 %v3647_v3, %v3575_v55  ;;  %v3618_v27 = vadd.f32 %v3617_v48, %v3576_v47  ;;  %v10530_v3 = vld [vmem:[#allocation54_spill] sm:$0xff] }
 0x67a   :  { %v6332_v29 = vpop.f32.mrb[112].mxu0  ;;  %v3649_v16 = vadd.f32 %v3648_v37, %v3577_v52  ;;  %v10531_v52 = vld [vmem:[#allocation53_spill] sm:$0xff] }
 0x67b   :  { %v3580_v60 = vmul.f32 %v6332_v29, %v10526_v7  ;;  %v3455_v32 = vpop.f32.mrb[113].mxu0  ;;  %v10532_v29 = vld [vmem:[#allocation56_spill] sm:$0xff] }
 0x67c   :  { %v3578_v62 = vmul.f32 %v3455_v32, %v10527_v36  ;;  %v6333_v6 = vpop.f32.mrb[114].mxu0 }
 0x67d   :  { %v3581_v15 = vmul.f32 %v6333_v6, %v10528_v14  ;;  %v3458_v18 = vpop.f32.mrb[115].mxu0 }
 0x67e   :  { %v3619_v53 = vadd.f32 %v3618_v27, %v3578_v62  ;;  %v3579_v8 = vmul.f32 %v3458_v18, %v10529_v41  ;;  %v10537_v41 = vld [vmem:[#allocation59_spill] sm:$0xff] }
 0x680   :  { %v3650_v35 = vadd.f32 %v3649_v16, %v3579_v8  ;;  %v3620_v59 = vadd.f32 %v3619_v53, %v3580_v60  ;;  %v10534_v16 = vld [vmem:[#allocation58_spill] sm:$0xff] }
 0x682   :  { %v6336_v17 = vpop.f32.mrb[116].mxu0  ;;  %v3651_v9 = vadd.f32 %v3650_v35, %v3581_v15  ;;  %v10535_v15 = vld [vmem:[#allocation57_spill] sm:$0xff] }
 0x683   :  { %v3584_v48 = vmul.f32 %v6336_v17, %v10530_v3  ;;  %v3471_v47 = vpop.f32.mrb[117].mxu0  ;;  %v10536_v17 = vld [vmem:[#allocation60_spill] sm:$0xff] }
 0x684   :  { %v3582_v37 = vmul.f32 %v3471_v47, %v10531_v52  ;;  %v6337_v55 = vpop.f32.mrb[118].mxu0 }
 0x685   :  { %v3585_v7 = vmul.f32 %v6337_v55, %v10532_v29  ;;  %v3474_v32 = vpop.f32.mrb[119].mxu0 }
 0x686   :  { %v3621_v36 = vadd.f32 %v3620_v59, %v3582_v37  ;;  %v3583_v6 = vmul.f32 %v3474_v32, %v10533_v23  ;;  %v10541_v23 = vld [vmem:[#allocation63_spill] sm:$0xff] }
 0x688   :  { %v3652_v14 = vadd.f32 %v3651_v9, %v3583_v6  ;;  %v3622_v27 = vadd.f32 %v3621_v36, %v3584_v48  ;;  %v10538_v9 = vld [vmem:[#allocation62_spill] sm:$0xff] }
 0x68a   :  { %v6340_v62 = vpop.f32.mrb[120].mxu0  ;;  %v3653_v18 = vadd.f32 %v3652_v14, %v3585_v7  ;;  %v10539_v7 = vld [vmem:[#allocation61_spill] sm:$0xff] }
 0x68b   :  { %v3588_v53 = vmul.f32 %v6340_v62, %v10534_v16  ;;  %v3487_v60 = vpop.f32.mrb[121].mxu0  ;;  %v10540_v62 = vld [vmem:[#allocation64_spill] sm:$0xff] }
 0x68c   :  { %v3586_v35 = vmul.f32 %v3487_v60, %v10535_v15  ;;  %v6341_v8 = vpop.f32.mrb[122].mxu0 }
 0x68d   :  { %v3589_v3 = vmul.f32 %v6341_v8, %v10536_v17  ;;  %v3490_v47 = vpop.f32.mrb[123].mxu0 }
 0x68e   :  { %v3623_v52 = vadd.f32 %v3622_v27, %v3586_v35  ;;  %v3587_v55 = vmul.f32 %v3490_v47, %v10537_v41  ;;  %v10545_v41 = vld [vmem:[#allocation67_spill] sm:$0xff] }
 0x690   :  { %v3654_v29 = vadd.f32 %v3653_v18, %v3587_v55  ;;  %v3624_v59 = vadd.f32 %v3623_v52, %v3588_v53  ;;  %v10542_v18 = vld [vmem:[#allocation66_spill] sm:$0xff] }
 0x692   :  { %v6344_v37 = vpop.f32.mrb[124].mxu0  ;;  %v3655_v32 = vadd.f32 %v3654_v29, %v3589_v3  ;;  %v10543_v3 = vld [vmem:[#allocation65_spill] sm:$0xff] }
 0x693   :  { %v3592_v36 = vmul.f32 %v6344_v37, %v10538_v9  ;;  %v3503_v48 = vpop.f32.mrb[125].mxu0  ;;  %v10544_v37 = vld [vmem:[#allocation68_spill] sm:$0xff] }
 0x694   :  { %v3590_v14 = vmul.f32 %v3503_v48, %v10539_v7  ;;  %v6345_v6 = vpop.f32.mrb[126].mxu0 }
 0x695   :  { %v3593_v16 = vmul.f32 %v6345_v6, %v10540_v62  ;;  %v3506_v60 = vpop.f32.mrb[127].mxu0 }
 0x696   :  { %v3625_v15 = vadd.f32 %v3624_v59, %v3590_v14  ;;  %v3591_v8 = vmul.f32 %v3506_v60, %v10541_v23 }
 0x698   :  { %v3656_v17 = vadd.f32 %v3655_v32, %v3591_v8  ;;  %v3626_v27 = vadd.f32 %v3625_v15, %v3592_v36 }
 0x69a   :  { %v3657_v35 = vadd.f32 %v3656_v17, %v3593_v16 }
 0x6d8   :  { %v6348_v47 = vpop.f32.mrb[128].mxu0 }
 0x6d9   :  { %v3596_v52 = vmul.f32 %v6348_v47, %v10542_v18  ;;  %v3519_v53 = vpop.f32.mrb[129].mxu0 }
 0x6da   :  { %v3594_v29 = vmul.f32 %v3519_v53, %v10543_v3  ;;  %v6349_v55 = vpop.f32.mrb[130].mxu0 }
 0x6db   :  { %v3597_v9 = vmul.f32 %v6349_v55, %v10544_v37  ;;  %v3522_v48 = vpop.f32.mrb[131].mxu0 }
 0x6dc   :  { %v3627_v7 = vadd.f32 %v3626_v27, %v3594_v29  ;;  %v3595_v6 = vmul.f32 %v3522_v48, %v10545_v41 }
 0x6de   :  { %v3628_v62 = vadd.f32 %v3627_v7, %v3596_v52  ;;  %v3658_v59 = vadd.f32 %v3657_v35, %v3595_v6 }
 0x6e0   :  { %v3659_v14 = vadd.f32 %v3658_v59, %v3597_v9  ;;  %v3660_v60 = vmul.f32 %v3628_v62, %v3628_v62 }
 0x6e2   :  { %v3661_v32 = vmul.f32 %v3659_v14, %v3659_v14 }
 0x6e4   :  { %v3662_v15 = vpack.c.bf16 %v3661_v32, %v3660_v60  ;;  %v10546_v32 = vld [vmem:[#allocation70_spill] sm:$0xff] }
 0x6e6   :  { %6367 = vmatmul.mubr.bf16.vlgmr.msra.gmra.mrb[132].mxu0 %v3662_v15 }
 0x6e7   :  { %6377 = vmatpush3.bf16.msra.mxu0 %v8653_v25 }
 0x6e8   :  { %6378 = vmatprep.subr.bf16.mxu0 %v8664_v33 }
 0x6eb   :  { %6379 = vmatpush3.bf16.msra.mxu0 %v8664_v33 }
 0x6ec   :  { %6380 = vmatprep.subr.bf16.mxu0 %v8674_v31 }
 0x6ef   :  { %6381 = vmatpush3.bf16.msra.mxu0 %v8674_v31 }
 0x6f0   :  { %6382 = vmatprep.subr.bf16.mxu0 %v8686_v34 }
 0x6f3   :  { %6383 = vmatpush3.bf16.msra.mxu0 %v8686_v34 }
 0x6f4   :  { %6384 = vmatprep.subr.bf16.mxu0 %v8695_v24 }
 0x6f7   :  { %6385 = vmatpush3.bf16.msra.mxu0 %v8695_v24 }
 0x6f8   :  { %6386 = vmatprep.subr.bf16.mxu0 %v8706_v22 }
 0x6fb   :  { %6387 = vmatpush3.bf16.msra.mxu0 %v8706_v22 }
 0x6fc   :  { %6388 = vmatprep.subr.bf16.mxu0 %v8719_v11 }
 0x6ff   :  { %6389 = vmatpush3.bf16.msra.mxu0 %v8719_v11 }
 0x700   :  { %6390 = vmatprep.subr.bf16.mxu0 %v8732_v44 }
 0x703   :  { %6391 = vmatpush3.bf16.msra.mxu0 %v8732_v44 }
 0x7b9   :  { %v3697_v25 = vpop.f32.mrb[132].mxu0 }
 0x7ba   :  { %6859 = vrsqrt.f32 %v3697_v25  ;;  %v6368_v33 = vpop.f32.mrb[133].mxu0  ;;  %vm3708_vm7 = vcmp.eq.f32.partialorder %v3697_v25, inf  ;;  %v3711_v9 = vand.u32 2147483648, %v3697_v25  ;;  %vm3710_vm8 = vcmp.eq.f32.partialorder %v3697_v25, 0.0 }
 0x7bb   :  { %v3700_v31 = vpop.f32.mrb[134].mxu0  ;;  %v3704_v8 = vadd.f32 1.0, %v3697_v25 }
 0x7bc   :  { %6861 = vrsqrt.f32 %v3700_v31  ;;  %v6369_v34 = vpop.f32.mrb[135].mxu0  ;;  %vm3715_vm9 = vcmp.eq.f32.partialorder %v3700_v31, inf  ;;  %v3718_v11 = vand.u32 2147483648, %v3700_v31  ;;  %vm3717_vm10 = vcmp.eq.f32.partialorder %v3700_v31, 0.0 }
 0x7bd   :  { %v3705_v52 = vadd.f32 1.0, %v3700_v31 }
 0x7c4   :  { %v6860_v16 = vpop.eup %6859 }
 0x7c5   :  { %v3707_v24 = vmul.f32 %v6860_v16, %v3697_v25 }
 0x7c6   :  { %v6862_v17 = vpop.eup %6861 }
 0x7c7   :  { %v3709_v22 = vsel %vm3708_vm7, %v3697_v25, %v3707_v24  ;;  %v3714_v36 = vmul.f32 %v6862_v17, %v3700_v31 }
 0x7c8   :  { %v3712_v7 = vsel %vm3710_vm8, %v3711_v9, %v3709_v22 }
 0x7c9   :  { %v3720_v27 = vadd.f32 1e-08, %v3712_v7  ;;  %v3716_v44 = vsel %vm3715_vm9, %v3700_v31, %v3714_v36 }
 0x7ca   :  { %v3719_v35 = vsel %vm3717_vm10, %v3718_v11, %v3716_v44 }
 0x7cb   :  { %v3722_v47 = vmul.f32 %v3720_v27, %v3704_v8  ;;  %v3721_v53 = vadd.f32 1e-08, %v3719_v35 }
 0x7cd   :  { %6863 = vrcp.f32 %v3722_v47  ;;  %v3723_v29 = vmul.f32 %v3721_v53, %v3705_v52 }
 0x7cf   :  { %6865 = vrcp.f32 %v3723_v29 }
 0x7d7   :  { %v6864_v55 = vpop.eup %6863 }
 0x7d8   :  { %v3726_v6 = vmul.f32 %v6864_v55, %v3697_v25 }
 0x7d9   :  { %v6866_v48 = vpop.eup %6865 }
 0x7da   :  { %v3727_v59 = vmul.f32 %v6866_v48, %v3700_v31 }
 0x7dc   :  { %v3728_v60 = vpack.c.bf16 %v3727_v59, %v3726_v6 }
 0x7de   :  { %6373 = vmatmul.mubr.msk.bf16.vlgmr.msra.gmra.mrb[132].mxu1 %vm137_vm1, %v3728_v60  ;;  %v10548_v60 = vld [vmem:[#allocation34_spill] sm:$0xff] }
 0x7df   :  { %6457 = vmatpush3.bf16.msra.mxu1 %v10546_v32 }
 0x7e0   :  { %6522 = vmatprep.subr.bf16.mxu1 %v10465_v19 }
 0x8b1   :  { %v3766_v15 = vpop.f32.mrb[132].mxu1 }
 0x8b2   :  { %v8890_v33 = vmul.f32 %v3766_v15, %v3628_v62  ;;  %v6374_v34 = vpop.f32.mrb[133].mxu1 }
 0x8b3   :  { %v3769_v16 = vpop.f32.mrb[134].mxu1 }
 0x8b4   :  { %v3777_v24 = vmul.f32 %v8890_v33, %v10482_v49  ;;  %v8894_v17 = vmul.f32 %v3769_v16, %v3659_v14  ;;  %v6375_v9 = vpop.f32.mrb[135].mxu1  ;;  %v3775_v25 = vmul.f32 %v8890_v33, %v10483_v20  ;;  %v3779_v31 = vmul.f32 %v8890_v33, %v10487_v26  ;;  %v10642_v49 = vld [vmem:[#allocation123_spill] sm:$0xff] }
 0x8b5   :  { %v3781_v22 = vmul.f32 %v8890_v33, %v10486_v28  ;;  %v8904_v62 = vmul.f32 %v8890_v33, %v10491_v2  ;;  %v8908_v36 = vmul.f32 %v8890_v33, %v10490_v13  ;;  %v8912_v14 = vmul.f32 %v8890_v33, %v10495_v0  ;;  %v10569_v0 = vld [vmem:[#allocation56_spill] sm:$0xff]  ;;  %v10629_v13 = vld [vmem:[#allocation115_spill] sm:$0xff] }
 0x8b6   :  { %v3778_v7 = vmul.f32 %v8894_v17, %v10484_v46  ;;  %v3776_v11 = vmul.f32 %v8894_v17, %v10485_v1  ;;  %v3780_v8 = vmul.f32 %v8894_v17, %v10489_v42  ;;  %v3782_v27 = vmul.f32 %v8894_v17, %v10488_v54  ;;  %v10631_v54 = vld [vmem:[#allocation117_spill] sm:$0xff]  ;;  %v10634_v28 = vld [vmem:[#allocation119_spill] sm:$0xff] }
 0x8b7   :  { %v3784_v44 = vmul.f32 %v8894_v17, %v10493_v50  ;;  %v8926_v35 = vmul.f32 %v8894_v17, %v10492_v51  ;;  %v8930_v47 = vmul.f32 %v8894_v17, %v10497_v45  ;;  %v8934_v52 = vmul.f32 %v8890_v33, %v10494_v40  ;;  %v10574_v50 = vld [vmem:[#allocation61_spill] sm:$0xff] }
 0x8b8   :  { %v3839_v53 = vpack.c.bf16 %v3776_v11, %v3775_v25  ;;  %v3840_v29 = vpack.c.bf16 %v3778_v7, %v3777_v24  ;;  %v3841_v55 = vpack.c.bf16 %v3780_v8, %v3779_v31  ;;  %v3842_v48 = vpack.c.bf16 %v3782_v27, %v3781_v22  ;;  %v10638_v46 = vld [vmem:[#allocation121_spill] sm:$0xff] }
 0x8b9   :  { %v3843_v6 = vpack.c.bf16 %v3784_v44, %v8904_v62  ;;  %v8943_v15 = vmul.f32 %v8894_v17, %v10496_v12  ;;  %v8947_v34 = vmul.f32 %v8890_v33, %v10499_v63  ;;  %v8951_v16 = vmul.f32 %v8894_v17, %v10501_v38  ;;  %v10547_v44 = vld [vmem:[#allocation35_spill] sm:$0xff]  ;;  %v10557_v38 = vld [vmem:[#allocation44_spill] sm:$0xff]  ;;  %v10560_v63 = vld [vmem:[#allocation46_spill] sm:$0xff] }
 0x8ba   :  { %6392 = vmatprep.mubr.bf16.mxu0 %v3839_v53  ;;  %v8955_v24 = vmul.f32 %v8890_v33, %v10498_v39  ;;  %v8959_v9 = vmul.f32 %v8894_v17, %v10500_v30  ;;  %v8965_v31 = vmul.f32 %v8890_v33, %v10503_v58  ;;  %v8969_v22 = vmul.f32 %v8894_v17, %v10505_v4  ;;  %v10552_v4 = vld [vmem:[#allocation38_spill] sm:$0xff]  ;;  %v10558_v30 = vld [vmem:[#allocation45_spill] sm:$0xff]  ;;  %v10561_v39 = vld [vmem:[#allocation48_spill] sm:$0xff] }
 0x8bb   :  { %6393 = vmatmul.mubr.bf16.vlgmr.msra.gmra.mrb[136].mxu0 %v3840_v29  ;;  %v8973_v62 = vmul.f32 %v8890_v33, %v10502_v57  ;;  %v8981_v8 = vmul.f32 %v8894_v17, %v10504_v21  ;;  %v8985_v27 = vmul.f32 %v8890_v33, %v10507_v61  ;;  %v8991_v53 = vmul.f32 %v8894_v17, %v10509_v43  ;;  %v10556_v57 = vld [vmem:[#allocation42_spill] sm:$0xff] }
 0x8bc   :  { %6396 = vmatprep.mubr.bf16.mxu0 %v3841_v55  ;;  %v8995_v29 = vmul.f32 %v8890_v33, %v10506_v56  ;;  %v8999_v55 = vmul.f32 %v8894_v17, %v10508_v5  ;;  %v9005_v7 = vmul.f32 %v8890_v33, %v10511_v10  ;;  %v9009_v25 = vmul.f32 %v8894_v17, %v10547_v44  ;;  %v10549_v5 = vld [vmem:[#allocation36_spill] sm:$0xff]  ;;  %v10550_v10 = vld [vmem:[#allocation37_spill] sm:$0xff]  ;;  %v10551_v56 = vld [vmem:[#allocation39_spill] sm:$0xff] }
 0x8bd   :  { %v9013_v59 = vmul.f32 %v8890_v33, %v10548_v60  ;;  %v3851_v32 = vpack.c.bf16 %v8991_v53, %v8985_v27  ;;  %v9021_v11 = vmul.f32 %v8894_v17, %v10549_v5  ;;  %v9025_v61 = vmul.f32 %v8890_v33, %v10550_v10  ;;  %v10553_v53 = vld [vmem:[#allocation40_spill] sm:$0xff]  ;;  %v10554_v5 = vld [vmem:[#allocation41_spill] sm:$0xff]  ;;  %v10555_v10 = vld [vmem:[#allocation43_spill] sm:$0xff] }
 0x8be   :  { %v3852_v43 = vpack.c.bf16 %v8999_v55, %v8995_v29  ;;  %v3853_v44 = vpack.c.bf16 %v9009_v25, %v9005_v7  ;;  %v3808_v60 = vmul.f32 %v8894_v17, %v10551_v56  ;;  %v3809_v27 = vmul.f32 %v8890_v33, %v10552_v4 }
 0x8bf   :  { %v3810_v29 = vmul.f32 %v8894_v17, %v10553_v53  ;;  %v3854_v55 = vpack.c.bf16 %v9021_v11, %v9013_v59  ;;  %v3811_v21 = vmul.f32 %v8890_v33, %v10554_v5  ;;  %v3812_v58 = vmul.f32 %v8894_v17, %v10555_v10  ;;  %v10559_v11 = vld [vmem:[#allocation47_spill] sm:$0xff] }
 0x8c0   :  { %v3813_v25 = vmul.f32 %v8890_v33, %v10556_v57  ;;  %v3855_v7 = vpack.c.bf16 %v3808_v60, %v9025_v61  ;;  %v3814_v4 = vmul.f32 %v8894_v17, %v10557_v38  ;;  %v3815_v53 = vmul.f32 %v8890_v33, %v10558_v30  ;;  %v10562_v60 = vld [vmem:[#allocation49_spill] sm:$0xff]  ;;  %v10564_v30 = vld [vmem:[#allocation50_spill] sm:$0xff] }
 0x8c1   :  { %v3856_v56 = vpack.c.bf16 %v3810_v29, %v3809_v27  ;;  %v3857_v59 = vpack.c.bf16 %v3812_v58, %v3811_v21  ;;  %v3816_v5 = vmul.f32 %v8894_v17, %v10559_v11  ;;  %v3817_v10 = vmul.f32 %v8890_v33, %v10560_v63  ;;  %v10563_v29 = vld [vmem:[#allocation51_spill] sm:$0xff]  ;;  %v10565_v11 = vld [vmem:[#allocation52_spill] sm:$0xff]  ;;  %v10566_v63 = vld [vmem:[#allocation53_spill] sm:$0xff] }
 0x8c2   :  { %v3818_v57 = vmul.f32 %v8894_v17, %v10561_v39  ;;  %v3858_v61 = vpack.c.bf16 %v3814_v4, %v3813_v25  ;;  %v3819_v27 = vmul.f32 %v8890_v33, %v10562_v60  ;;  %v3820_v38 = vmul.f32 %v8894_v17, %v10563_v29  ;;  %v10568_v25 = vld [vmem:[#allocation54_spill] sm:$0xff] }
 0x8c3   :  { %6397 = vmatmul.mubr.bf16.gmra.mrb[140].mxu0 %v3842_v48  ;;  %v3821_v58 = vmul.f32 %v8890_v33, %v10564_v30  ;;  %v3859_v21 = vpack.c.bf16 %v3816_v5, %v3815_v53  ;;  %v3822_v45 = vmul.f32 %v8894_v17, %v10565_v11  ;;  %v3823_v12 = vmul.f32 %v8890_v33, %v10566_v63  ;;  %v10570_v30 = vld [vmem:[#allocation57_spill] sm:$0xff]  ;;  %v10571_v5 = vld [vmem:[#allocation59_spill] sm:$0xff]  ;;  %v10572_v53 = vld [vmem:[#allocation58_spill] sm:$0xff] }
 0x8c4   :  { %6400 = vmatprep.mubr.bf16.mxu0 %v3843_v6  ;;  %v3860_v48 = vpack.c.bf16 %v3818_v57, %v3817_v10  ;;  %v3861_v39 = vpack.c.bf16 %v3820_v38, %v3819_v27  ;;  %v10567_v6 = vld [vmem:[#allocation55_spill] sm:$0xff]  ;;  %v3825_v60 = vmul.f32 %v8890_v33, %v10568_v25  ;;  %v3826_v29 = vmul.f32 %v8894_v17, %v10569_v0  ;;  %v10573_v11 = vld [vmem:[#allocation60_spill] sm:$0xff] }
 0x8c5   :  { %v3824_v4 = vmul.f32 %v8894_v17, %v10567_v6  ;;  %v3862_v40 = vpack.c.bf16 %v3822_v45, %v3821_v58  ;;  %v3827_v57 = vmul.f32 %v8890_v33, %v10570_v30  ;;  %v3828_v10 = vmul.f32 %v8894_v17, %v10571_v5  ;;  %v10575_v58 = vld [vmem:[#allocation62_spill] sm:$0xff]  ;;  %v10576_v0 = vld [vmem:[#allocation64_spill] sm:$0xff] }
 0x8c6   :  { %v3829_v63 = vmul.f32 %v8890_v33, %v10572_v53  ;;  %v3864_v27 = vpack.c.bf16 %v3826_v29, %v3825_v60  ;;  %v3830_v6 = vmul.f32 %v8894_v17, %v10573_v11  ;;  %v3831_v25 = vmul.f32 %v8890_v33, %v10574_v50  ;;  %v10625_v50 = vld [vmem:[#allocation111_spill] sm:$0xff]  ;;  %v10627_v11 = vld [vmem:[#allocation113_spill] sm:$0xff] }
 0x8c7   :  { %v3863_v38 = vpack.c.bf16 %v3824_v4, %v3823_v12  ;;  %v3865_v51 = vpack.c.bf16 %v3828_v10, %v3827_v57  ;;  %v3832_v45 = vmul.f32 %v8894_v17, %v10541_v23  ;;  %v3833_v30 = vmul.f32 %v8890_v33, %v10575_v58 }
 0x8c8   :  { %v3834_v5 = vmul.f32 %v8894_v17, %v10576_v0  ;;  %v3866_v2 = vpack.c.bf16 %v3830_v6, %v3829_v63  ;;  %v3835_v12 = vmul.f32 %v8890_v33, %v10543_v3  ;;  %v3836_v60 = vmul.f32 %v8894_v17, %v10545_v41 }
 0x8c9   :  { %v3837_v29 = vmul.f32 %v8890_v33, %v10542_v18  ;;  %v10577_v4 = vpack.c.bf16 %v8926_v35, %v8908_v36  ;;  %v3867_v57 = vpack.c.bf16 %v3832_v45, %v3831_v25  ;;  %v3838_v23 = vmul.f32 %v8894_v17, %v10544_v37  ;;  %v10623_v18 = vld [vmem:[#allocation109_spill] sm:$0xff] }
 0x8ca   :  { %v3868_v10 = vpack.c.bf16 %v3834_v5, %v3833_v30  ;;  %v10578_v63 = vpack.c.bf16 %v8930_v47, %v8912_v14  ;;  %v3869_v6 = vpack.c.bf16 %v3836_v60, %v3835_v12  ;;  %v10579_v41 = vpack.c.bf16 %v8943_v15, %v8934_v52  ;;  %v10586_v47 = vld [vmem:[#allocation72_spill] sm:$0xff]  ;;  %v10593_v60 = vld [vmem:[#allocation79_spill] sm:$0xff] }
 0x8cb   :  { %6401 = vmatmul.mubr.bf16.gmra.mrb[144].mxu0 %v10577_v4  ;;  %v3870_v3 = vpack.c.bf16 %v3838_v23, %v3837_v29  ;;  %v10580_v33 = vpack.c.bf16 %v8951_v16, %v8947_v34  ;;  %v10581_v30 = vpack.c.bf16 %v8959_v9, %v8955_v24  ;;  %v10582_v17 = vpack.c.bf16 %v8969_v22, %v8965_v31  ;;  %v10588_v16 = vld [vmem:[#allocation74_spill] sm:$0xff]  ;;  %v10589_v22 = vld [vmem:[#allocation75_spill] sm:$0xff] }
 0x8cc   :  { %6404 = vmatprep.mubr.bf16.mxu0 %v10578_v63  ;;  %v10583_v36 = vpack.c.bf16 %v8981_v8, %v8973_v62 }
 0x8d3   :  { %6405 = vmatmul.mubr.bf16.gmra.mrb[148].mxu0 %v10579_v41 }
 0x8d4   :  { %6408 = vmatprep.mubr.bf16.mxu0 %v10580_v33  ;;  %v10595_v33 = vld [vmem:[#allocation81_spill] sm:$0xff] }
 0x8db   :  { %6409 = vmatmul.mubr.bf16.gmra.mrb[152].mxu0 %v10581_v30 }
 0x8dc   :  { %6412 = vmatprep.mubr.bf16.mxu0 %v10582_v17 }
 0x8e3   :  { %6413 = vmatmul.mubr.bf16.gmra.mrb[156].mxu0 %v10583_v36 }
 0x8e4   :  { %6416 = vmatprep.mubr.bf16.mxu0 %v3851_v32 }
 0x8eb   :  { %6417 = vmatmul.mubr.bf16.gmra.mrb[160].mxu0 %v3852_v43  ;;  %v10584_v43 = vld [vmem:[#allocation69_spill] sm:$0xff] }
 0x8ec   :  { %6420 = vmatprep.mubr.bf16.mxu0 %v3853_v44  ;;  %v10590_v44 = vld [vmem:[#allocation76_spill] sm:$0xff] }
 0x8f3   :  { %6421 = vmatmul.mubr.bf16.gmra.mrb[164].mxu0 %v3854_v55 }
 0x8f4   :  { %6424 = vmatprep.mubr.bf16.mxu0 %v3855_v7 }
 0x8fb   :  { %6425 = vmatmul.mubr.bf16.gmra.mrb[168].mxu0 %v3856_v56  ;;  %v10585_v56 = vld [vmem:[#allocation71_spill] sm:$0xff] }
 0x8fc   :  { %6428 = vmatprep.mubr.bf16.mxu0 %v3857_v59 }
 0x903   :  { %6429 = vmatmul.mubr.bf16.gmra.mrb[172].mxu0 %v3858_v61  ;;  %v10591_v61 = vld [vmem:[#allocation77_spill] sm:$0xff] }
 0x904   :  { %6432 = vmatprep.mubr.bf16.mxu0 %v3859_v21 }
 0x90b   :  { %6433 = vmatmul.mubr.bf16.gmra.mrb[176].mxu0 %v3860_v48 }
 0x90c   :  { %6436 = vmatprep.mubr.bf16.mxu0 %v3861_v39 }
 0x913   :  { %6437 = vmatmul.mubr.bf16.gmra.mrb[180].mxu0 %v3862_v40 }
 0x914   :  { %6440 = vmatprep.mubr.bf16.mxu0 %v3863_v38  ;;  %v10592_v38 = vld [vmem:[#allocation78_spill] sm:$0xff] }
 0x91b   :  { %6441 = vmatmul.mubr.bf16.gmra.mrb[184].mxu0 %v3864_v27 }
 0x91c   :  { %6444 = vmatprep.mubr.bf16.mxu0 %v3865_v51  ;;  %v10587_v51 = vld [vmem:[#allocation73_spill] sm:$0xff] }
 0x923   :  { %6445 = vmatmul.mubr.bf16.gmra.mrb[188].mxu0 %v3866_v2 }
 0x924   :  { %6448 = vmatprep.mubr.bf16.mxu0 %v3867_v57  ;;  %v10594_v57 = vld [vmem:[#allocation80_spill] sm:$0xff] }
 0x92b   :  { %6449 = vmatmul.mubr.bf16.gmra.mrb[192].mxu0 %v3868_v10 }
 0x92c   :  { %6452 = vmatprep.mubr.bf16.mxu0 %v3869_v6 }
 0x933   :  { %6453 = vmatmul.mubr.bf16.gmra.mrb[196].mxu0 %v3870_v3 }
 0x98e   :  { %v6394_v23 = vpop.f32.mrb[136].mxu0 }
 0x98f   :  { %v9116_v41 = vadd.f32 %v6394_v23, %v10584_v43  ;;  %v3905_v32 = vpop.f32.mrb[137].mxu0  ;;  %v10596_v43 = vld [vmem:[#allocation82_spill] sm:$0xff] }
 0x990   :  { %v9119_v14 = vadd.f32 %v3905_v32, %v10585_v56  ;;  %v6395_v35 = vpop.f32.mrb[138].mxu0 }
 0x991   :  { %v9122_v39 = vadd.f32 %v6395_v35, %v10586_v47  ;;  %v3908_v40 = vpop.f32.mrb[139].mxu0  ;;  %v4230_v2 = vsel %vm137_vm1, %v9116_v41, -inf  ;;  %v10597_v47 = vld [vmem:[#allocation83_spill] sm:$0xff] }
 0x992   :  { %v9127_v52 = vadd.f32 %v3908_v40, %v10587_v51  ;;  %4231 = vmax.xlane.f32.xlu0 %v4230_v2  ;;  %v4224_v15 = vsel %vm137_vm1, %v9119_v14, -inf  ;;  %v10598_v51 = vld [vmem:[#allocation84_spill] sm:$0xff] }
 0x993   :  { %v4233_v3 = vsel %vm137_vm1, %v9122_v39, -inf }
 0x994   :  { %4234 = vmax.xlane.f32.xlu1 %v4233_v3  ;;  %v4227_v31 = vsel %vm137_vm1, %v9127_v52, -inf }
 0x996   :  { %4225 = vmax.xlane.f32.xlu0 %v4224_v15  ;;  %v6398_v34 = vpop.f32.mrb[140].mxu0 }
 0x997   :  { %v9134_v24 = vadd.f32 %v6398_v34, %v10588_v16  ;;  %v3921_v9 = vpop.f32.mrb[141].mxu0  ;;  %v10599_v16 = vld [vmem:[#allocation85_spill] sm:$0xff] }
 0x998   :  { %v9139_v62 = vadd.f32 %v3921_v9, %v10589_v22  ;;  %4228 = vmax.xlane.f32.xlu1 %v4227_v31  ;;  %v6399_v8 = vpop.f32.mrb[142].mxu0 }
 0x999   :  { %v9142_v55 = vadd.f32 %v6399_v8, %v10590_v44  ;;  %v3924_v7 = vpop.f32.mrb[143].mxu0  ;;  %v4242_v59 = vsel %vm137_vm1, %v9134_v24, -inf  ;;  %v10600_v44 = vld [vmem:[#allocation86_spill] sm:$0xff] }
 0x99a   :  { %v9147_v21 = vadd.f32 %v3924_v7, %v10591_v61  ;;  %4243 = vmax.xlane.f32.xlu0 %v4242_v59  ;;  %v4236_v25 = vsel %vm137_vm1, %v9139_v62, -inf }
 0x99b   :  { %v4245_v48 = vsel %vm137_vm1, %v9142_v55, -inf }
 0x99c   :  { %4246 = vmax.xlane.f32.xlu1 %v4245_v48  ;;  %v4239_v12 = vsel %vm137_vm1, %v9147_v21, -inf  ;;  %v10601_v48 = vld [vmem:[#allocation87_spill] sm:$0xff] }
 0x99e   :  { %4237 = vmax.xlane.f32.xlu0 %v4236_v25  ;;  %v6402_v5 = vpop.f32.mrb[144].mxu0 }
 0x99f   :  { %v9154_v27 = vadd.f32 %v6402_v5, %v10592_v38  ;;  %v3937_v45 = vpop.f32.mrb[145].mxu0  ;;  %v10602_v38 = vld [vmem:[#allocation88_spill] sm:$0xff] }
 0x9a0   :  { %v9159_v29 = vadd.f32 %v3937_v45, %v10593_v60  ;;  %4240 = vmax.xlane.f32.xlu1 %v4239_v12  ;;  %v6403_v4 = vpop.f32.mrb[146].mxu0 }
 0x9a1   :  { %v9162_v10 = vadd.f32 %v6403_v4, %v10594_v57  ;;  %v3940_v63 = vpop.f32.mrb[147].mxu0  ;;  %v4254_v6 = vsel %vm137_vm1, %v9154_v27, -inf  ;;  %v10603_v4 = vld [vmem:[#allocation89_spill] sm:$0xff] }
 0x9a2   :  { %v9167_v30 = vadd.f32 %v3940_v63, %v10595_v33  ;;  %4255 = vmax.xlane.f32.xlu0 %v4254_v6  ;;  %v4248_v36 = vsel %vm137_vm1, %v9159_v29, -inf }
 0x9a3   :  { %v4257_v17 = vsel %vm137_vm1, %v9162_v10, -inf }
 0x9a4   :  { %4258 = vmax.xlane.f32.xlu1 %v4257_v17  ;;  %v4251_v35 = vsel %vm137_vm1, %v9167_v30, -inf  ;;  %v10604_v17 = vld [vmem:[#allocation90_spill] sm:$0xff] }
 0x9a6   :  { %4249 = vmax.xlane.f32.xlu0 %v4248_v36  ;;  %v6406_v23 = vpop.f32.mrb[148].mxu0 }
 0x9a7   :  { %v9174_v32 = vadd.f32 %v6406_v23, %v10596_v43  ;;  %v3953_v56 = vpop.f32.mrb[149].mxu0 }
 0x9a8   :  { %v9179_v40 = vadd.f32 %v3953_v56, %v10597_v47  ;;  %4252 = vmax.xlane.f32.xlu1 %v4251_v35  ;;  %v6407_v2 = vpop.f32.mrb[150].mxu0  ;;  %v10605_v56 = vld [vmem:[#allocation91_spill] sm:$0xff] }
 0x9a9   :  { %v9182_v3 = vadd.f32 %v6407_v2, %v10598_v51  ;;  %v3956_v15 = vpop.f32.mrb[151].mxu0  ;;  %v4266_v34 = vsel %vm137_vm1, %v9174_v32, -inf  ;;  %v10606_v2 = vld [vmem:[#allocation92_spill] sm:$0xff] }
 0x9aa   :  { %v9187_v9 = vadd.f32 %v3956_v15, %v10599_v16  ;;  %4267 = vmax.xlane.f32.xlu0 %v4266_v34  ;;  %v4260_v22 = vsel %vm137_vm1, %v9179_v40, -inf  ;;  %v10607_v16 = vld [vmem:[#allocation93_spill] sm:$0xff] }
 0x9ab   :  { %v4269_v31 = vsel %vm137_vm1, %v9182_v3, -inf }
 0x9ac   :  { %4270 = vmax.xlane.f32.xlu1 %v4269_v31  ;;  %v4263_v61 = vsel %vm137_vm1, %v9187_v9, -inf }
 0x9ae   :  { %4261 = vmax.xlane.f32.xlu0 %v4260_v22  ;;  %v6410_v8 = vpop.f32.mrb[152].mxu0 }
 0x9af   :  { %v9194_v7 = vadd.f32 %v6410_v8, %v10600_v44  ;;  %v3969_v59 = vpop.f32.mrb[153].mxu0 }
 0x9b0   :  { %v9199_v25 = vadd.f32 %v3969_v59, %v10601_v48  ;;  %4264 = vmax.xlane.f32.xlu1 %v4263_v61  ;;  %v6411_v5 = vpop.f32.mrb[154].mxu0  ;;  %v10608_v59 = vld [vmem:[#allocation94_spill] sm:$0xff] }
 0x9b1   :  { %v9202_v45 = vadd.f32 %v6411_v5, %v10602_v38  ;;  %v3972_v12 = vpop.f32.mrb[155].mxu0  ;;  %v4278_v60 = vsel %vm137_vm1, %v9194_v7, -inf  ;;  %v10609_v38 = vld [vmem:[#allocation95_spill] sm:$0xff] }
 0x9b2   :  { %v9207_v57 = vadd.f32 %v3972_v12, %v10603_v4  ;;  %4279 = vmax.xlane.f32.xlu0 %v4278_v60  ;;  %v4272_v6 = vsel %vm137_vm1, %v9199_v25, -inf  ;;  %v10610_v4 = vld [vmem:[#allocation96_spill] sm:$0xff] }
 0x9b3   :  { %v4281_v63 = vsel %vm137_vm1, %v9202_v45, -inf }
 0x9b4   :  { %4282 = vmax.xlane.f32.xlu1 %v4281_v63  ;;  %v4275_v43 = vsel %vm137_vm1, %v9207_v57, -inf }
 0x9b6   :  { %4273 = vmax.xlane.f32.xlu0 %v4272_v6  ;;  %v6414_v33 = vpop.f32.mrb[156].mxu0 }
 0x9b7   :  { %v9214_v36 = vadd.f32 %v6414_v33, %v10604_v17  ;;  %v3985_v23 = vpop.f32.mrb[157].mxu0  ;;  %v10611_v17 = vld [vmem:[#allocation97_spill] sm:$0xff] }
 0x9b8   :  { %v9219_v35 = vadd.f32 %v3985_v23, %v10605_v56  ;;  %4276 = vmax.xlane.f32.xlu1 %v4275_v43  ;;  %v6415_v47 = vpop.f32.mrb[158].mxu0 }
 0x9b9   :  { %v9222_v51 = vadd.f32 %v6415_v47, %v10606_v2  ;;  %v3988_v15 = vpop.f32.mrb[159].mxu0  ;;  %v4290_v34 = vsel %vm137_vm1, %v9214_v36, -inf  ;;  %v10612_v2 = vld [vmem:[#allocation98_spill] sm:$0xff] }
 0x9ba   :  { %v9227_v31 = vadd.f32 %v3988_v15, %v10607_v16  ;;  %4291 = vmax.xlane.f32.xlu0 %v4290_v34  ;;  %v4284_v8 = vsel %vm137_vm1, %v9219_v35, -inf }
 0x9bb   :  { %v4293_v22 = vsel %vm137_vm1, %v9222_v51, -inf }
 0x9bc   :  { %4294 = vmax.xlane.f32.xlu1 %v4293_v22  ;;  %v4287_v5 = vsel %vm137_vm1, %v9227_v31, -inf  ;;  %v10613_v22 = vld [vmem:[#allocation99_spill] sm:$0xff] }
 0x9be   :  { %4285 = vmax.xlane.f32.xlu0 %v4284_v8  ;;  %v6418_v44 = vpop.f32.mrb[160].mxu0 }
 0x9bf   :  { %v9234_v61 = vadd.f32 %v6418_v44, %v10608_v59  ;;  %v4001_v48 = vpop.f32.mrb[161].mxu0  ;;  %v10614_v59 = vld [vmem:[#allocation100_spill] sm:$0xff] }
 0x9c0   :  { %v9239_v12 = vadd.f32 %v4001_v48, %v10609_v38  ;;  %4288 = vmax.xlane.f32.xlu1 %v4287_v5  ;;  %v6419_v60 = vpop.f32.mrb[162].mxu0 }
 0x9c1   :  { %v9242_v63 = vadd.f32 %v6419_v60, %v10610_v4  ;;  %v4004_v6 = vpop.f32.mrb[163].mxu0  ;;  %v4302_v33 = vsel %vm137_vm1, %v9234_v61, -inf  ;;  %v10615_v60 = vld [vmem:[#allocation101_spill] sm:$0xff] }
 0x9c2   :  { %v9247_v23 = vadd.f32 %v4004_v6, %v10611_v17  ;;  %4303 = vmax.xlane.f32.xlu0 %v4302_v33  ;;  %v4296_v56 = vsel %vm137_vm1, %v9239_v12, -inf }
 0x9c3   :  { %v4305_v43 = vsel %vm137_vm1, %v9242_v63, -inf }
 0x9c4   :  { %4306 = vmax.xlane.f32.xlu1 %v4305_v43  ;;  %v4299_v16 = vsel %vm137_vm1, %v9247_v23, -inf  ;;  %v10616_v43 = vld [vmem:[#allocation102_spill] sm:$0xff] }
 0x9c6   :  { %4297 = vmax.xlane.f32.xlu0 %v4296_v56  ;;  %v6422_v47 = vpop.f32.mrb[164].mxu0 }
 0x9c7   :  { %v9254_v15 = vadd.f32 %v6422_v47, %v10612_v2  ;;  %v4017_v34 = vpop.f32.mrb[165].mxu0 }
 0x9c8   :  { %v9259_v8 = vadd.f32 %v4017_v34, %v10613_v22  ;;  %4300 = vmax.xlane.f32.xlu1 %v4299_v16  ;;  %v6423_v44 = vpop.f32.mrb[166].mxu0  ;;  %v10617_v34 = vld [vmem:[#allocation103_spill] sm:$0xff] }
 0x9c9   :  { %v9262_v48 = vadd.f32 %v6423_v44, %v10614_v59  ;;  %v4020_v5 = vpop.f32.mrb[167].mxu0  ;;  %v4314_v38 = vsel %vm137_vm1, %v9254_v15, -inf  ;;  %v10618_v44 = vld [vmem:[#allocation104_spill] sm:$0xff] }
 0x9ca   :  { %v9267_v4 = vadd.f32 %v4020_v5, %v10615_v60  ;;  %4315 = vmax.xlane.f32.xlu0 %v4314_v38  ;;  %v4308_v33 = vsel %vm137_vm1, %v9259_v8, -inf  ;;  %v10619_v60 = vld [vmem:[#allocation105_spill] sm:$0xff] }
 0x9cb   :  { %v4317_v6 = vsel %vm137_vm1, %v9262_v48, -inf }
 0x9cc   :  { %4318 = vmax.xlane.f32.xlu1 %v4317_v6  ;;  %v4311_v2 = vsel %vm137_vm1, %v9267_v4, -inf }
 0x9ce   :  { %4309 = vmax.xlane.f32.xlu0 %v4308_v33  ;;  %v6426_v17 = vpop.f32.mrb[168].mxu0 }
 0x9cf   :  { %v9274_v56 = vadd.f32 %v6426_v17, %v10616_v43  ;;  %v4033_v47 = vpop.f32.mrb[169].mxu0 }
 0x9d0   :  { %v9279_v16 = vadd.f32 %v4033_v47, %v10617_v34  ;;  %4312 = vmax.xlane.f32.xlu1 %v4311_v2  ;;  %v6427_v22 = vpop.f32.mrb[170].mxu0  ;;  %v10620_v47 = vld [vmem:[#allocation106_spill] sm:$0xff] }
 0x9d1   :  { %v9282_v59 = vadd.f32 %v6427_v22, %v10618_v44  ;;  %v4036_v5 = vpop.f32.mrb[171].mxu0  ;;  %v4326_v38 = vsel %vm137_vm1, %v9274_v56, -inf  ;;  %v10621_v44 = vld [vmem:[#allocation107_spill] sm:$0xff] }
 0x9d2   :  { %v9287_v6 = vadd.f32 %v4036_v5, %v10619_v60  ;;  %4327 = vmax.xlane.f32.xlu0 %v4326_v38  ;;  %v4320_v17 = vsel %vm137_vm1, %v9279_v16, -inf  ;;  %v10622_v60 = vld [vmem:[#allocation108_spill] sm:$0xff] }
 0x9d3   :  { %v4329_v33 = vsel %vm137_vm1, %v9282_v59, -inf }
 0x9d4   :  { %4330 = vmax.xlane.f32.xlu1 %v4329_v33  ;;  %v4323_v22 = vsel %vm137_vm1, %v9287_v6, -inf }
 0x9d6   :  { %4321 = vmax.xlane.f32.xlu0 %v4320_v17  ;;  %v6430_v43 = vpop.f32.mrb[172].mxu0 }
 0x9d7   :  { %v9294_v2 = vadd.f32 %v6430_v43, %v10620_v47  ;;  %v4049_v34 = vpop.f32.mrb[173].mxu0 }
 0x9d8   :  { %v9299_v5 = vadd.f32 %v4049_v34, %v10621_v44  ;;  %4324 = vmax.xlane.f32.xlu1 %v4323_v22  ;;  %v6431_v38 = vpop.f32.mrb[174].mxu0  ;;  %v10624_v22 = vld [vmem:[#allocation110_spill] sm:$0xff] }
 0x9d9   :  { %v9302_v37 = vadd.f32 %v6431_v38, %v10622_v60  ;;  %v4052_v33 = vpop.f32.mrb[175].mxu0  ;;  %v4338_v17 = vsel %vm137_vm1, %v9294_v2, -inf }
 0x9da   :  { %v9307_v0 = vadd.f32 %v4052_v33, %v10623_v18  ;;  %4339 = vmax.xlane.f32.xlu0 %v4338_v17  ;;  %v4332_v47 = vsel %vm137_vm1, %v9299_v5, -inf  ;;  %v10626_v17 = vld [vmem:[#allocation112_spill] sm:$0xff] }
 0x9db   :  { %v4341_v43 = vsel %vm137_vm1, %v9302_v37, -inf }
 0x9dc   :  { %4342 = vmax.xlane.f32.xlu1 %v4341_v43  ;;  %v4335_v60 = vsel %vm137_vm1, %v9307_v0, -inf }
 0x9de   :  { %4333 = vmax.xlane.f32.xlu0 %v4332_v47  ;;  %v6434_v34 = vpop.f32.mrb[176].mxu0 }
 0x9df   :  { %v9314_v44 = vadd.f32 %v6434_v34, %v10624_v22  ;;  %v4065_v38 = vpop.f32.mrb[177].mxu0 }
 0x9e0   :  { %v9319_v18 = vadd.f32 %v4065_v38, %v10625_v50  ;;  %4336 = vmax.xlane.f32.xlu1 %v4335_v60  ;;  %v6435_v33 = vpop.f32.mrb[178].mxu0  ;;  %v10628_v38 = vld [vmem:[#allocation114_spill] sm:$0xff] }
 0x9e1   :  { %v9322_v58 = vadd.f32 %v6435_v33, %v10626_v17  ;;  %v4068_v43 = vpop.f32.mrb[179].mxu0  ;;  %v4350_v47 = vsel %vm137_vm1, %v9314_v44, -inf }
 0x9e2   :  { %v9327_v53 = vadd.f32 %v4068_v43, %v10627_v11  ;;  %4351 = vmax.xlane.f32.xlu0 %v4350_v47  ;;  %v4344_v50 = vsel %vm137_vm1, %v9319_v18, -inf  ;;  %v10630_v47 = vld [vmem:[#allocation116_spill] sm:$0xff] }
 0x9e3   :  { %v4353_v34 = vsel %vm137_vm1, %v9322_v58, -inf }
 0x9e4   :  { %4354 = vmax.xlane.f32.xlu1 %v4353_v34  ;;  %v4347_v17 = vsel %vm137_vm1, %v9327_v53, -inf }
 0x9e6   :  { %4345 = vmax.xlane.f32.xlu0 %v4344_v50  ;;  %v6438_v22 = vpop.f32.mrb[180].mxu0 }
 0x9e7   :  { %v9334_v60 = vadd.f32 %v6438_v22, %v10628_v38  ;;  %v4081_v33 = vpop.f32.mrb[181].mxu0 }
 0x9e8   :  { %v9339_v11 = vadd.f32 %v4081_v33, %v10629_v13  ;;  %4348 = vmax.xlane.f32.xlu1 %v4347_v17  ;;  %v6439_v43 = vpop.f32.mrb[182].mxu0  ;;  %v10632_v33 = vld [vmem:[#allocation118_spill] sm:$0xff] }
 0x9e9   :  { %v9342_v42 = vadd.f32 %v6439_v43, %v10630_v47  ;;  %v4084_v34 = vpop.f32.mrb[183].mxu0  ;;  %v4362_v50 = vsel %vm137_vm1, %v9334_v60, -inf }
 0x9ea   :  { %v9347_v26 = vadd.f32 %v4084_v34, %v10631_v54  ;;  %4363 = vmax.xlane.f32.xlu0 %v4362_v50  ;;  %v4356_v13 = vsel %vm137_vm1, %v9339_v11, -inf  ;;  %v10636_v50 = vld [vmem:[#allocation120_spill] sm:$0xff] }
 0x9eb   :  { %v4365_v22 = vsel %vm137_vm1, %v9342_v42, -inf }
 0x9ec   :  { %4366 = vmax.xlane.f32.xlu1 %v4365_v22  ;;  %v4359_v47 = vsel %vm137_vm1, %v9347_v26, -inf }
 0x9ee   :  { %4357 = vmax.xlane.f32.xlu0 %v4356_v13  ;;  %v6442_v38 = vpop.f32.mrb[184].mxu0 }
 0x9ef   :  { %v9354_v17 = vadd.f32 %v6442_v38, %v10632_v33  ;;  %v4097_v43 = vpop.f32.mrb[185].mxu0 }
 0x9f0   :  { %v9359_v54 = vadd.f32 %v4097_v43, %v10634_v28  ;;  %4360 = vmax.xlane.f32.xlu1 %v4359_v47  ;;  %v6443_v34 = vpop.f32.mrb[186].mxu0  ;;  %v10640_v43 = vld [vmem:[#allocation122_spill] sm:$0xff] }
 0x9f1   :  { %10633 = vst [vmem:[#allocation134_spill] sm:$0xff] %v9354_v17  ;;  %v9362_v1 = vadd.f32 %v6443_v34, %v10636_v50  ;;  %v4100_v22 = vpop.f32.mrb[187].mxu0  ;;  %v4374_v13 = vsel %vm137_vm1, %v9354_v17, -inf }
 0x9f2   :  { %10635 = vst [vmem:[#allocation135_spill] sm:$0xff] %v9359_v54  ;;  %v9367_v20 = vadd.f32 %v4100_v22, %v10638_v46  ;;  %4375 = vmax.xlane.f32.xlu0 %v4374_v13  ;;  %v4368_v28 = vsel %vm137_vm1, %v9359_v54, -inf  ;;  %v10644_v13 = vld [vmem:[#allocation124_spill] sm:$0xff]  ;;  %v10646_v54 = vld [vmem:[#allocation125_spill] sm:$0xff] }
 0x9f3   :  { %10637 = vst [vmem:[#allocation136_spill] sm:$0xff] %v9362_v1  ;;  %v4377_v38 = vsel %vm137_vm1, %v9362_v1, -inf }
 0x9f4   :  { %10639 = vst [vmem:[#allocation137_spill] sm:$0xff] %v9367_v20  ;;  %4378 = vmax.xlane.f32.xlu1 %v4377_v38  ;;  %v4371_v50 = vsel %vm137_vm1, %v9367_v20, -inf }
 0x9f6   :  { %4369 = vmax.xlane.f32.xlu0 %v4368_v28  ;;  %v6446_v33 = vpop.f32.mrb[188].mxu0 }
 0x9f7   :  { %v9374_v47 = vadd.f32 %v6446_v33, %v10640_v43  ;;  %v4113_v34 = vpop.f32.mrb[189].mxu0 }
 0x9f8   :  { %v9379_v46 = vadd.f32 %v4113_v34, %v10642_v49  ;;  %4372 = vmax.xlane.f32.xlu1 %v4371_v50  ;;  %v6447_v22 = vpop.f32.mrb[190].mxu0  ;;  %v10648_v34 = vld [vmem:[#allocation126_spill] sm:$0xff] }
 0x9f9   :  { %10641 = vst [vmem:[#allocation138_spill] sm:$0xff] %v9374_v47  ;;  %v9382_v19 = vadd.f32 %v6447_v22, %v10644_v13  ;;  %v4116_v38 = vpop.f32.mrb[191].mxu0  ;;  %v4386_v28 = vsel %vm137_vm1, %v9374_v47, -inf  ;;  %v10650_v47 = vld [vmem:[#allocation127_spill] sm:$0xff] }
 0x9fa   :  { %10643 = vst [vmem:[#allocation139_spill] sm:$0xff] %v9379_v46  ;;  %v9387_v1 = vadd.f32 %v4116_v38, %v10646_v54  ;;  %4387 = vmax.xlane.f32.xlu0 %v4386_v28  ;;  %v4380_v49 = vsel %vm137_vm1, %v9379_v46, -inf  ;;  %v10652_v28 = vld [vmem:[#allocation128_spill] sm:$0xff]  ;;  %v10654_v46 = vld [vmem:[#allocation129_spill] sm:$0xff] }
 0x9fb   :  { %10645 = vst [vmem:[#allocation140_spill] sm:$0xff] %v9382_v19  ;;  %v4389_v33 = vsel %vm137_vm1, %v9382_v19, -inf }
 0x9fc   :  { %10647 = vst [vmem:[#allocation141_spill] sm:$0xff] %v9387_v1  ;;  %4390 = vmax.xlane.f32.xlu1 %v4389_v33  ;;  %v4383_v13 = vsel %vm137_vm1, %v9387_v1, -inf  ;;  %v10660_v1 = vld [vmem:[#allocation133_spill] sm:$0xff] }
 0x9fe   :  { %4381 = vmax.xlane.f32.xlu0 %v4380_v49  ;;  %v6450_v43 = vpop.f32.mrb[192].mxu0 }
 0x9ff   :  { %v9394_v50 = vadd.f32 %v6450_v43, %v10648_v34  ;;  %v4129_v22 = vpop.f32.mrb[193].mxu0 }
 0xa00   :  { %v9399_v54 = vadd.f32 %v4129_v22, %v10650_v47  ;;  %4384 = vmax.xlane.f32.xlu1 %v4383_v13  ;;  %v6451_v38 = vpop.f32.mrb[194].mxu0  ;;  %v10656_v22 = vld [vmem:[#allocation130_spill] sm:$0xff] }
 0xa01   :  { %10649 = vst [vmem:[#allocation142_spill] sm:$0xff] %v9394_v50  ;;  %v9402_v19 = vadd.f32 %v6451_v38, %v10652_v28  ;;  %v4132_v33 = vpop.f32.mrb[195].mxu0  ;;  %v4398_v49 = vsel %vm137_vm1, %v9394_v50, -inf  ;;  %v10657_v50 = vld [vmem:[#allocation131_spill] sm:$0xff] }
 0xa02   :  { %10651 = vst [vmem:[#allocation143_spill] sm:$0xff] %v9399_v54  ;;  %v9407_v20 = vadd.f32 %v4132_v33, %v10654_v46  ;;  %4399 = vmax.xlane.f32.xlu0 %v4398_v49  ;;  %v4392_v47 = vsel %vm137_vm1, %v9399_v54, -inf  ;;  %v10659_v49 = vld [vmem:[#allocation132_spill] sm:$0xff] }
 0xa03   :  { %10653 = vst [vmem:[#allocation144_spill] sm:$0xff] %v9402_v19  ;;  %v4401_v43 = vsel %vm137_vm1, %v9402_v19, -inf }
 0xa04   :  { %10655 = vst [vmem:[#allocation145_spill] sm:$0xff] %v9407_v20  ;;  %4402 = vmax.xlane.f32.xlu1 %v4401_v43  ;;  %v4395_v28 = vsel %vm137_vm1, %v9407_v20, -inf }
 0xa06   :  { %4393 = vmax.xlane.f32.xlu0 %v4392_v47  ;;  %v6454_v34 = vpop.f32.mrb[196].mxu0 }
 0xa07   :  { %v9414_v13 = vadd.f32 %v6454_v34, %v10656_v22  ;;  %v4145_v38 = vpop.f32.mrb[197].mxu0 }
 0xa08   :  { %v9419_v46 = vadd.f32 %v4145_v38, %v10657_v50  ;;  %4396 = vmax.xlane.f32.xlu1 %v4395_v28  ;;  %v6455_v33 = vpop.f32.mrb[198].mxu0 }
 0xa09   :  { %v9422_v19 = vadd.f32 %v6455_v33, %v10659_v49  ;;  %v4148_v43 = vpop.f32.mrb[199].mxu0 }
 0xa0a   :  { %10658 = vst [vmem:[#allocation146_spill] sm:$0xff] %v9419_v46  ;;  %v9425_v54 = vadd.f32 %v4148_v43, %v10660_v1  ;;  %v4404_v47 = vsel %vm137_vm1, %v9419_v46, -inf }
 0xa0b   :  { %4405 = vmax.xlane.f32.xlu0 %v4404_v47 }
 0xa0c   :  { %10661 = vst [vmem:[#allocation147_spill] sm:$0xff] %v9425_v54  ;;  %v4407_v34 = vsel %vm137_vm1, %v9425_v54, -inf }
 0xa0d   :  { %4408 = vmax.xlane.f32.xlu1 %v4407_v34 }
 0xa1f   :  { %v4232_v22 = vpop.xlane.xlu0 %4231 }
 0xa20   :  { %v4418_v50 = vsub.f32 %v9116_v41, %v4232_v22 }
 0xa21   :  { %v4235_v38 = vpop.xlane.xlu1 %4234 }
 0xa22   :  { %v4484_v28 = vmul.f32 1.442695, %v4418_v50  ;;  %v4419_v33 = vsub.f32 %v9122_v39, %v4235_v38 }
 0xa23   :  { %v4226_v49 = vpop.xlane.xlu0 %4225 }
 0xa24   :  { %6867 = vpow2.f32 %v4484_v28  ;;  %v4486_v20 = vmul.f32 1.442695, %v4419_v33  ;;  %v4416_v1 = vsub.f32 %v9119_v14, %v4226_v49 }
 0xa25   :  { %v4229_v43 = vpop.xlane.xlu1 %4228 }
 0xa26   :  { %6869 = vpow2.f32 %v4486_v20  ;;  %v4480_v46 = vmul.f32 1.442695, %v4416_v1  ;;  %v4417_v47 = vsub.f32 %v9127_v52, %v4229_v43 }
 0xa27   :  { %v4244_v17 = vpop.xlane.xlu0 %4243 }
 0xa28   :  { %6871 = vpow2.f32 %v4480_v46  ;;  %v4482_v34 = vmul.f32 1.442695, %v4417_v47  ;;  %v4422_v54 = vsub.f32 %v9134_v24, %v4244_v17 }
 0xa29   :  { %v4247_v41 = vpop.xlane.xlu1 %4246 }
 0xa2a   :  { %6873 = vpow2.f32 %v4482_v34  ;;  %v4492_v22 = vmul.f32 1.442695, %v4422_v54  ;;  %v4423_v39 = vsub.f32 %v9142_v55, %v4247_v41 }
 0xa2b   :  { %v4238_v50 = vpop.xlane.xlu0 %4237 }
 0xa2c   :  { %6875 = vpow2.f32 %v4492_v22  ;;  %v4494_v38 = vmul.f32 1.442695, %v4423_v39  ;;  %v4420_v14 = vsub.f32 %v9139_v62, %v4238_v50 }
 0xa2d   :  { %v4241_v28 = vpop.xlane.xlu1 %4240 }
 0xa2e   :  { %v9438_v20 = vpop.eup %6867  ;;  %6877 = vpow2.f32 %v4494_v38  ;;  %v4488_v52 = vmul.f32 1.442695, %v4420_v14  ;;  %v4421_v46 = vsub.f32 %v9147_v21, %v4241_v28 }
 0xa2f   :  { %v4256_v33 = vpop.xlane.xlu0 %4255  ;;  %v4614_v24 = vsel %vm137_vm1, %v9438_v20, 0.0 }
 0xa30   :  { %v9443_v17 = vpop.eup %6869  ;;  %6879 = vpow2.f32 %v4488_v52  ;;  %v4490_v55 = vmul.f32 1.442695, %v4421_v46  ;;  %v4426_v54 = vsub.f32 %v9154_v27, %v4256_v33  ;;  %4615 = vadd.xlane.f32.xlu0 %v4614_v24 }
 0xa31   :  { %v4259_v49 = vpop.xlane.xlu1 %4258  ;;  %v4617_v62 = vsel %vm137_vm1, %v9443_v17, 0.0 }
 0xa32   :  { %v9448_v1 = vpop.eup %6871  ;;  %6881 = vpow2.f32 %v4490_v55  ;;  %v4500_v43 = vmul.f32 1.442695, %v4426_v54  ;;  %v4427_v21 = vsub.f32 %v9162_v10, %v4259_v49  ;;  %4618 = vadd.xlane.f32.xlu1 %v4617_v62 }
 0xa33   :  { %v4250_v47 = vpop.xlane.xlu0 %4249  ;;  %v4608_v34 = vsel %vm137_vm1, %v9448_v1, 0.0 }
 0xa34   :  { %v9453_v41 = vpop.eup %6873  ;;  %6883 = vpow2.f32 %v4500_v43  ;;  %v4502_v27 = vmul.f32 1.442695, %v4427_v21  ;;  %v4424_v22 = vsub.f32 %v9159_v29, %v4250_v47  ;;  %4609 = vadd.xlane.f32.xlu0 %v4608_v34 }
 0xa35   :  { %v4253_v39 = vpop.xlane.xlu1 %4252  ;;  %v4611_v50 = vsel %vm137_vm1, %v9453_v41, 0.0 }
 0xa36   :  { %v9458_v38 = vpop.eup %6875  ;;  %6885 = vpow2.f32 %v4502_v27  ;;  %v4496_v10 = vmul.f32 1.442695, %v4424_v22  ;;  %v4425_v14 = vsub.f32 %v9167_v30, %v4253_v39  ;;  %4612 = vadd.xlane.f32.xlu1 %v4611_v50 }
 0xa37   :  { %v4268_v28 = vpop.xlane.xlu0 %4267  ;;  %v4626_v52 = vsel %vm137_vm1, %v9458_v38, 0.0 }
 0xa38   :  { %v9463_v46 = vpop.eup %6877  ;;  %6887 = vpow2.f32 %v4496_v10  ;;  %v4498_v29 = vmul.f32 1.442695, %v4425_v14  ;;  %v4430_v33 = vsub.f32 %v9174_v32, %v4268_v28  ;;  %4627 = vadd.xlane.f32.xlu0 %v4626_v52 }
 0xa39   :  { %v4271_v24 = vpop.xlane.xlu1 %4270  ;;  %v4629_v55 = vsel %vm137_vm1, %v9463_v46, 0.0 }
 0xa3a   :  { %v9468_v54 = vpop.eup %6879  ;;  %6889 = vpow2.f32 %v4498_v29  ;;  %v4508_v30 = vmul.f32 1.442695, %v4430_v33  ;;  %v4431_v49 = vsub.f32 %v9182_v3, %v4271_v24  ;;  %4630 = vadd.xlane.f32.xlu1 %v4629_v55 }
 0xa3b   :  { %v4262_v62 = vpop.xlane.xlu0 %4261  ;;  %v4620_v43 = vsel %vm137_vm1, %v9468_v54, 0.0 }
 0xa3c   :  { %v9473_v21 = vpop.eup %6881  ;;  %6891 = vpow2.f32 %v4508_v30  ;;  %v4510_v32 = vmul.f32 1.442695, %v4431_v49  ;;  %v4428_v47 = vsub.f32 %v9179_v40, %v4262_v62  ;;  %4621 = vadd.xlane.f32.xlu0 %v4620_v43 }
 0xa3d   :  { %v4265_v34 = vpop.xlane.xlu1 %4264  ;;  %v4623_v27 = vsel %vm137_vm1, %v9473_v21, 0.0 }
 0xa3e   :  { %v9478_v22 = vpop.eup %6883  ;;  %6893 = vpow2.f32 %v4510_v32  ;;  %v4504_v3 = vmul.f32 1.442695, %v4428_v47  ;;  %v4429_v39 = vsub.f32 %v9187_v9, %v4265_v34  ;;  %4624 = vadd.xlane.f32.xlu1 %v4623_v27 }
 0xa3f   :  { %v4280_v50 = vpop.xlane.xlu0 %4279  ;;  %v4638_v10 = vsel %vm137_vm1, %v9478_v22, 0.0 }
 0xa40   :  { %v9483_v14 = vpop.eup %6885  ;;  %6895 = vpow2.f32 %v4504_v3  ;;  %v4506_v40 = vmul.f32 1.442695, %v4429_v39  ;;  %4639 = vadd.xlane.f32.xlu0 %v4638_v10  ;;  %v4434_v28 = vsub.f32 %v9194_v7, %v4280_v50 }
 0xa41   :  { %v4283_v52 = vpop.xlane.xlu1 %4282  ;;  %v4641_v29 = vsel %vm137_vm1, %v9483_v14, 0.0 }
 0xa42   :  { %v9488_v33 = vpop.eup %6887  ;;  %6897 = vpow2.f32 %v4506_v40  ;;  %4642 = vadd.xlane.f32.xlu1 %v4641_v29  ;;  %v4435_v30 = vsub.f32 %v9202_v45, %v4283_v52  ;;  %v4516_v7 = vmul.f32 1.442695, %v4434_v28 }
 0xa43   :  { %v4274_v9 = vpop.xlane.xlu0 %4273  ;;  %v4632_v24 = vsel %vm137_vm1, %v9488_v33, 0.0 }
 0xa44   :  { %v9492_v55 = vpop.eup %6889  ;;  %v4432_v49 = vsub.f32 %v9199_v25, %v4274_v9  ;;  %4633 = vadd.xlane.f32.xlu0 %v4632_v24  ;;  %v4518_v45 = vmul.f32 1.442695, %v4435_v30 }
 0xa45   :  { %v4277_v62 = vpop.xlane.xlu1 %4276  ;;  %v4635_v43 = vsel %vm137_vm1, %v9492_v55, 0.0 }
 0xa46   :  { %v9498_v32 = vpop.eup %6891  ;;  %v4512_v47 = vmul.f32 1.442695, %v4432_v49  ;;  %v4433_v34 = vsub.f32 %v9207_v57, %v4277_v62  ;;  %4636 = vadd.xlane.f32.xlu1 %v4635_v43 }
 0xa47   :  { %v4292_v27 = vpop.xlane.xlu0 %4291  ;;  %v4650_v3 = vsel %vm137_vm1, %v9498_v32, 0.0 }
 0xa48   :  { %v9503_v39 = vpop.eup %6893  ;;  %6899 = vpow2.f32 %v4512_v47  ;;  %v4514_v25 = vmul.f32 1.442695, %v4433_v34  ;;  %4651 = vadd.xlane.f32.xlu0 %v4650_v3  ;;  %v4438_v50 = vsub.f32 %v9214_v36, %v4292_v27  ;;  %v4410_v47 = vsel %vm137_vm1, %v9414_v13, -inf }
 0xa49   :  { %6901 = vpow2.f32 %v4516_v7  ;;  %v4295_v10 = vpop.xlane.xlu1 %4294  ;;  %v4653_v40 = vsel %vm137_vm1, %v9503_v39, 0.0  ;;  %v4413_v3 = vsel %vm137_vm1, %v9422_v19, -inf }
 0xa4a   :  { %v9508_v28 = vpop.eup %6895  ;;  %6903 = vpow2.f32 %v4514_v25  ;;  %4654 = vadd.xlane.f32.xlu1 %v4653_v40  ;;  %v4439_v9 = vsub.f32 %v9222_v51, %v4295_v10  ;;  %v4524_v36 = vmul.f32 1.442695, %v4438_v50 }
 0xa4b   :  { %v4286_v57 = vpop.xlane.xlu0 %4285  ;;  %v4644_v52 = vsel %vm137_vm1, %v9508_v28, 0.0  ;;  %6905 = vpow2.f32 %v4518_v45 }
 0xa4c   :  { %v9512_v29 = vpop.eup %6897  ;;  %v4436_v24 = vsub.f32 %v9219_v35, %v4286_v57  ;;  %4645 = vadd.xlane.f32.xlu0 %v4644_v52  ;;  %v4526_v34 = vmul.f32 1.442695, %v4439_v9 }
 0xa4d   :  { %v4289_v30 = vpop.xlane.xlu1 %4288  ;;  %v4647_v49 = vsel %vm137_vm1, %v9512_v29, 0.0 }
 0xa4e   :  { %v4520_v7 = vmul.f32 1.442695, %v4436_v24  ;;  %v4437_v62 = vsub.f32 %v9227_v31, %v4289_v30  ;;  %4648 = vadd.xlane.f32.xlu1 %v4647_v49 }
 0xa4f   :  { %v4304_v43 = vpop.xlane.xlu0 %4303 }
 0xa50   :  { %6907 = vpow2.f32 %v4520_v7  ;;  %v4522_v27 = vmul.f32 1.442695, %v4437_v62  ;;  %4411 = vmax.xlane.f32.xlu0 %v4410_v47  ;;  %v4442_v35 = vsub.f32 %v9234_v61, %v4304_v43 }
 0xa51   :  { %6909 = vpow2.f32 %v4524_v36  ;;  %v4307_v51 = vpop.xlane.xlu1 %4306 }
 0xa52   :  { %v9524_v45 = vpop.eup %6899  ;;  %6911 = vpow2.f32 %v4522_v27  ;;  %4414 = vmax.xlane.f32.xlu1 %v4413_v3  ;;  %v4443_v40 = vsub.f32 %v9242_v63, %v4307_v51  ;;  %v4532_v57 = vmul.f32 1.442695, %v4442_v35 }
 0xa53   :  { %v9526_v31 = vpop.eup %6901  ;;  %v4298_v25 = vpop.xlane.xlu0 %4297  ;;  %v4656_v50 = vsel %vm137_vm1, %v9524_v45, 0.0  ;;  %6913 = vpow2.f32 %v4526_v34 }
 0xa54   :  { %v9530_v10 = vpop.eup %6903  ;;  %v4440_v61 = vsub.f32 %v9239_v12, %v4298_v25  ;;  %4657 = vadd.xlane.f32.xlu0 %v4656_v50  ;;  %v4662_v7 = vsel %vm137_vm1, %v9526_v31, 0.0  ;;  %v4534_v62 = vmul.f32 1.442695, %v4443_v40 }
 0xa55   :  { %v4301_v52 = vpop.xlane.xlu1 %4300  ;;  %v4659_v9 = vsel %vm137_vm1, %v9530_v10, 0.0  ;;  %v9536_v24 = vpop.eup %6905 }
 0xa56   :  { %v4528_v36 = vmul.f32 1.442695, %v4440_v61  ;;  %v4441_v30 = vsub.f32 %v9247_v23, %v4301_v52  ;;  %4660 = vadd.xlane.f32.xlu1 %v4659_v9  ;;  %v4665_v47 = vsel %vm137_vm1, %v9536_v24, 0.0 }
 0xa57   :  { %v4316_v49 = vpop.xlane.xlu0 %4315 }
 0xa58   :  { %6915 = vpow2.f32 %v4528_v36  ;;  %v4530_v63 = vmul.f32 1.442695, %v4441_v30  ;;  %4663 = vadd.xlane.f32.xlu0 %v4662_v7  ;;  %v4446_v12 = vsub.f32 %v9254_v15, %v4316_v49 }
 0xa59   :  { %6917 = vpow2.f32 %v4532_v57  ;;  %v4319_v43 = vpop.xlane.xlu1 %4318 }
 0xa5a   :  { %v9544_v34 = vpop.eup %6907  ;;  %6919 = vpow2.f32 %v4530_v63  ;;  %4666 = vadd.xlane.f32.xlu1 %v4665_v47  ;;  %v4447_v3 = vsub.f32 %v9262_v48, %v4319_v43  ;;  %v4540_v25 = vmul.f32 1.442695, %v4446_v12 }
 0xa5b   :  { %v9546_v23 = vpop.eup %6909  ;;  %v4310_v27 = vpop.xlane.xlu0 %4309  ;;  %v4668_v35 = vsel %vm137_vm1, %v9544_v34, 0.0  ;;  %6921 = vpow2.f32 %v4534_v62 }
 0xa5c   :  { %v9550_v51 = vpop.eup %6911  ;;  %v4444_v15 = vsub.f32 %v9259_v8, %v4310_v27  ;;  %4669 = vadd.xlane.f32.xlu0 %v4668_v35  ;;  %v4674_v36 = vsel %vm137_vm1, %v9546_v23, 0.0  ;;  %v4542_v30 = vmul.f32 1.442695, %v4447_v3 }
 0xa5d   :  { %v4313_v50 = vpop.xlane.xlu1 %4312  ;;  %v4671_v40 = vsel %vm137_vm1, %v9550_v51, 0.0  ;;  %v9556_v61 = vpop.eup %6913 }
 0xa5e   :  { %v4536_v57 = vmul.f32 1.442695, %v4444_v15  ;;  %v4445_v52 = vsub.f32 %v9267_v4, %v4313_v50  ;;  %4672 = vadd.xlane.f32.xlu1 %v4671_v40  ;;  %v4677_v7 = vsel %vm137_vm1, %v9556_v61, 0.0 }
 0xa5f   :  { %v4328_v9 = vpop.xlane.xlu0 %4327 }
 0xa60   :  { %6923 = vpow2.f32 %v4536_v57  ;;  %v4538_v48 = vmul.f32 1.442695, %v4445_v52  ;;  %4675 = vadd.xlane.f32.xlu0 %v4674_v36  ;;  %v4450_v8 = vsub.f32 %v9274_v56, %v4328_v9 }
 0xa61   :  { %6925 = vpow2.f32 %v4540_v25  ;;  %v4331_v49 = vpop.xlane.xlu1 %4330 }
 0xa62   :  { %v9564_v62 = vpop.eup %6915  ;;  %6927 = vpow2.f32 %v4538_v48  ;;  %4678 = vadd.xlane.f32.xlu1 %v4677_v7  ;;  %v4451_v47 = vsub.f32 %v9282_v59, %v4331_v49  ;;  %v4548_v27 = vmul.f32 1.442695, %v4450_v8 }
 0xa63   :  { %v9566_v4 = vpop.eup %6917  ;;  %v4322_v63 = vpop.xlane.xlu0 %4321  ;;  %v4680_v12 = vsel %vm137_vm1, %v9564_v62, 0.0  ;;  %6929 = vpow2.f32 %v4542_v30 }
 0xa64   :  { %v9570_v43 = vpop.eup %6919  ;;  %v4448_v56 = vsub.f32 %v9279_v16, %v4322_v63  ;;  %4681 = vadd.xlane.f32.xlu0 %v4680_v12  ;;  %v4686_v57 = vsel %vm137_vm1, %v9566_v4, 0.0  ;;  %v4550_v52 = vmul.f32 1.442695, %v4451_v47 }
 0xa65   :  { %v4325_v35 = vpop.xlane.xlu1 %4324  ;;  %v4683_v3 = vsel %vm137_vm1, %v9570_v43, 0.0  ;;  %v9576_v15 = vpop.eup %6921 }
 0xa66   :  { %v4544_v25 = vmul.f32 1.442695, %v4448_v56  ;;  %v4449_v50 = vsub.f32 %v9287_v6, %v4325_v35  ;;  %4684 = vadd.xlane.f32.xlu1 %v4683_v3  ;;  %v4689_v36 = vsel %vm137_vm1, %v9576_v15, 0.0 }
 0xa67   :  { %v4340_v40 = vpop.xlane.xlu0 %4339 }
 0xa68   :  { %6931 = vpow2.f32 %v4544_v25  ;;  %v4546_v59 = vmul.f32 1.442695, %v4449_v50  ;;  %4687 = vadd.xlane.f32.xlu0 %v4686_v57  ;;  %v4454_v16 = vsub.f32 %v9294_v2, %v4340_v40 }
 0xa69   :  { %6933 = vpow2.f32 %v4548_v27  ;;  %v4343_v9 = vpop.xlane.xlu1 %4342 }
 0xa6a   :  { %v9584_v30 = vpop.eup %6923  ;;  %6935 = vpow2.f32 %v4546_v59  ;;  %4690 = vadd.xlane.f32.xlu1 %v4689_v36  ;;  %v4455_v7 = vsub.f32 %v9302_v37, %v4343_v9  ;;  %v4556_v63 = vmul.f32 1.442695, %v4454_v16 }
 0xa6b   :  { %v9586_v6 = vpop.eup %6925  ;;  %v4334_v48 = vpop.xlane.xlu0 %4333  ;;  %v4692_v8 = vsel %vm137_vm1, %v9584_v30, 0.0  ;;  %6937 = vpow2.f32 %v4550_v52 }
 0xa6c   :  { %v9590_v49 = vpop.eup %6927  ;;  %v4452_v2 = vsub.f32 %v9299_v5, %v4334_v48  ;;  %4693 = vadd.xlane.f32.xlu0 %v4692_v8  ;;  %v4698_v25 = vsel %vm137_vm1, %v9586_v6, 0.0  ;;  %v4558_v50 = vmul.f32 1.442695, %v4455_v7 }
 0xa6d   :  { %v4337_v12 = vpop.xlane.xlu1 %4336  ;;  %v4695_v47 = vsel %vm137_vm1, %v9590_v49, 0.0  ;;  %v9596_v56 = vpop.eup %6929 }
 0xa6e   :  { %v4552_v27 = vmul.f32 1.442695, %v4452_v2  ;;  %v4453_v35 = vsub.f32 %v9307_v0, %v4337_v12  ;;  %4696 = vadd.xlane.f32.xlu1 %v4695_v47  ;;  %v4701_v57 = vsel %vm137_vm1, %v9596_v56, 0.0 }
 0xa6f   :  { %v4352_v3 = vpop.xlane.xlu0 %4351 }
 0xa70   :  { %6939 = vpow2.f32 %v4552_v27  ;;  %v4554_v37 = vmul.f32 1.442695, %v4453_v35  ;;  %4699 = vadd.xlane.f32.xlu0 %v4698_v25  ;;  %v4458_v5 = vsub.f32 %v9314_v44, %v4352_v3 }
 0xa71   :  { %6941 = vpow2.f32 %v4556_v63  ;;  %v4355_v40 = vpop.xlane.xlu1 %4354 }
 0xa72   :  { %v9604_v52 = vpop.eup %6931  ;;  %6943 = vpow2.f32 %v4554_v37  ;;  %4702 = vadd.xlane.f32.xlu1 %v4701_v57  ;;  %v4459_v36 = vsub.f32 %v9322_v58, %v4355_v40  ;;  %v4564_v48 = vmul.f32 1.442695, %v4458_v5 }
 0xa73   :  { %v9606_v0 = vpop.eup %6933  ;;  %v4346_v59 = vpop.xlane.xlu0 %4345  ;;  %v4704_v16 = vsel %vm137_vm1, %v9604_v52, 0.0  ;;  %6945 = vpow2.f32 %v4558_v50 }
 0xa74   :  { %v9610_v9 = vpop.eup %6935  ;;  %v4456_v44 = vsub.f32 %v9319_v18, %v4346_v59  ;;  %4705 = vadd.xlane.f32.xlu0 %v4704_v16  ;;  %v4710_v27 = vsel %vm137_vm1, %v9606_v0, 0.0  ;;  %v4566_v35 = vmul.f32 1.442695, %v4459_v36 }
 0xa75   :  { %v4349_v8 = vpop.xlane.xlu1 %4348  ;;  %v4707_v7 = vsel %vm137_vm1, %v9610_v9, 0.0  ;;  %v9616_v2 = vpop.eup %6937 }
 0xa76   :  { %v4560_v63 = vmul.f32 1.442695, %v4456_v44  ;;  %v4457_v12 = vsub.f32 %v9327_v53, %v4349_v8  ;;  %4708 = vadd.xlane.f32.xlu1 %v4707_v7  ;;  %v4713_v25 = vsel %vm137_vm1, %v9616_v2, 0.0 }
 0xa77   :  { %v4364_v47 = vpop.xlane.xlu0 %4363 }
 0xa78   :  { %6947 = vpow2.f32 %v4560_v63  ;;  %v4562_v58 = vmul.f32 1.442695, %v4457_v12  ;;  %4711 = vadd.xlane.f32.xlu0 %v4710_v27  ;;  %v4462_v18 = vsub.f32 %v9334_v60, %v4364_v47 }
 0xa79   :  { %6949 = vpow2.f32 %v4564_v48  ;;  %v4367_v3 = vpop.xlane.xlu1 %4366 }
 0xa7a   :  { %v9624_v50 = vpop.eup %6939  ;;  %6951 = vpow2.f32 %v4562_v58  ;;  %4714 = vadd.xlane.f32.xlu1 %v4713_v25  ;;  %v4463_v57 = vsub.f32 %v9342_v42, %v4367_v3  ;;  %v4572_v59 = vmul.f32 1.442695, %v4462_v18 }
 0xa7b   :  { %v9626_v53 = vpop.eup %6941  ;;  %v4358_v37 = vpop.xlane.xlu0 %4357  ;;  %v4716_v5 = vsel %vm137_vm1, %v9624_v50, 0.0  ;;  %6953 = vpow2.f32 %v4566_v35 }
 0xa7c   :  { %v9630_v40 = vpop.eup %6943  ;;  %v4460_v60 = vsub.f32 %v9339_v11, %v4358_v37  ;;  %4717 = vadd.xlane.f32.xlu0 %v4716_v5  ;;  %v4722_v63 = vsel %vm137_vm1, %v9626_v53, 0.0  ;;  %v4574_v12 = vmul.f32 1.442695, %v4463_v57  ;;  %v10662_v11 = vld [vmem:[#allocation134_spill] sm:$0xff]  ;;  %v10664_v37 = vld [vmem:[#allocation136_spill] sm:$0xff]  ;;  %v10665_v57 = vld [vmem:[#allocation135_spill] sm:$0xff] }
 0xa7d   :  { %v4361_v16 = vpop.xlane.xlu1 %4360  ;;  %v4719_v36 = vsel %vm137_vm1, %v9630_v40, 0.0  ;;  %v9636_v44 = vpop.eup %6945 }
 0xa7e   :  { %v4568_v48 = vmul.f32 1.442695, %v4460_v60  ;;  %v4461_v8 = vsub.f32 %v9347_v26, %v4361_v16  ;;  %4720 = vadd.xlane.f32.xlu1 %v4719_v36  ;;  %v4725_v35 = vsel %vm137_vm1, %v9636_v44, 0.0 }
 0xa7f   :  { %v4376_v7 = vpop.xlane.xlu0 %4375 }
 0xa80   :  { %6955 = vpow2.f32 %v4568_v48  ;;  %v4570_v42 = vmul.f32 1.442695, %v4461_v8  ;;  %4723 = vadd.xlane.f32.xlu0 %v4722_v63  ;;  %v4466_v47 = vsub.f32 %v10662_v11, %v4376_v7  ;;  %v10667_v7 = vld [vmem:[#allocation137_spill] sm:$0xff] }
 0xa81   :  { %6957 = vpow2.f32 %v4572_v59  ;;  %v4379_v27 = vpop.xlane.xlu1 %4378 }
 0xa82   :  { %v9644_v58 = vpop.eup %6947  ;;  %6959 = vpow2.f32 %v4570_v42  ;;  %4726 = vadd.xlane.f32.xlu1 %v4725_v35  ;;  %v4467_v5 = vsub.f32 %v10664_v37, %v4379_v27  ;;  %v4580_v59 = vmul.f32 1.442695, %v4466_v47  ;;  %v10668_v47 = vld [vmem:[#allocation138_spill] sm:$0xff] }
 0xa83   :  { %v9646_v26 = vpop.eup %6949  ;;  %v4370_v18 = vpop.xlane.xlu0 %4369  ;;  %v4728_v3 = vsel %vm137_vm1, %v9644_v58, 0.0  ;;  %6961 = vpow2.f32 %v4574_v12 }
 0xa84   :  { %10663 = vst [vmem:[#allocation148_spill] sm:$0xff] %v9646_v26  ;;  %v9650_v25 = vpop.eup %6951  ;;  %v4464_v60 = vsub.f32 %v10665_v57, %v4370_v18  ;;  %4729 = vadd.xlane.f32.xlu0 %v4728_v3  ;;  %v4734_v12 = vsel %vm137_vm1, %v9646_v26, 0.0  ;;  %v4582_v11 = vmul.f32 1.442695, %v4467_v5 }
 0xa85   :  { %v4373_v16 = vpop.xlane.xlu1 %4372  ;;  %v4731_v36 = vsel %vm137_vm1, %v9650_v25, 0.0  ;;  %v9656_v48 = vpop.eup %6953 }
 0xa86   :  { %10666 = vst [vmem:[#allocation149_spill] sm:$0xff] %v9656_v48  ;;  %v4576_v8 = vmul.f32 1.442695, %v4464_v60  ;;  %v4465_v63 = vsub.f32 %v10667_v7, %v4373_v16  ;;  %4732 = vadd.xlane.f32.xlu1 %v4731_v36  ;;  %v4737_v3 = vsel %vm137_vm1, %v9656_v48, 0.0 }
 0xa87   :  { %v4388_v42 = vpop.xlane.xlu0 %4387 }
 0xa88   :  { %6963 = vpow2.f32 %v4576_v8  ;;  %v4578_v27 = vmul.f32 1.442695, %v4465_v63  ;;  %4735 = vadd.xlane.f32.xlu0 %v4734_v12  ;;  %v4470_v35 = vsub.f32 %v10668_v47, %v4388_v42  ;;  %v10672_v8 = vld [vmem:[#allocation139_spill] sm:$0xff] }
 0xa89   :  { %6965 = vpow2.f32 %v4580_v59  ;;  %v4391_v18 = vpop.xlane.xlu1 %4390  ;;  %v10671_v59 = vld [vmem:[#allocation140_spill] sm:$0xff] }
 0xa8a   :  { %v9664_v37 = vpop.eup %6955  ;;  %6967 = vpow2.f32 %v4578_v27  ;;  %4738 = vadd.xlane.f32.xlu1 %v4737_v3  ;;  %v4471_v36 = vsub.f32 %v10671_v59, %v4391_v18  ;;  %v4588_v63 = vmul.f32 1.442695, %v4470_v35  ;;  %v10674_v3 = vld [vmem:[#allocation141_spill] sm:$0xff]  ;;  %v10675_v35 = vld [vmem:[#allocation142_spill] sm:$0xff] }
 0xa8b   :  { %10669 = vst [vmem:[#allocation69_spill] sm:$0xff] %v9664_v37  ;;  %v9666_v57 = vpop.eup %6957  ;;  %v4382_v60 = vpop.xlane.xlu0 %4381  ;;  %v4740_v5 = vsel %vm137_vm1, %v9664_v37, 0.0  ;;  %6969 = vpow2.f32 %v4582_v11 }
 0xa8c   :  { %10670 = vst [vmem:[#allocation71_spill] sm:$0xff] %v9666_v57  ;;  %v9670_v16 = vpop.eup %6959  ;;  %v4468_v7 = vsub.f32 %v10672_v8, %v4382_v60  ;;  %4741 = vadd.xlane.f32.xlu0 %v4740_v5  ;;  %v4746_v11 = vsel %vm137_vm1, %v9666_v57, 0.0  ;;  %v4590_v26 = vmul.f32 1.442695, %v4471_v36 }
 0xa8d   :  { %v4385_v42 = vpop.xlane.xlu1 %4384  ;;  %v4743_v12 = vsel %vm137_vm1, %v9670_v16, 0.0  ;;  %v9676_v27 = vpop.eup %6961 }
 0xa8e   :  { %10673 = vst [vmem:[#allocation72_spill] sm:$0xff] %v9676_v27  ;;  %v4584_v47 = vmul.f32 1.442695, %v4468_v7  ;;  %v4469_v48 = vsub.f32 %v10674_v3, %v4385_v42  ;;  %4744 = vadd.xlane.f32.xlu1 %v4743_v12  ;;  %v4749_v59 = vsel %vm137_vm1, %v9676_v27, 0.0  ;;  %v10679_v27 = vld [vmem:[#allocation145_spill] sm:$0xff] }
 0xa8f   :  { %v4400_v37 = vpop.xlane.xlu0 %4399 }
 0xa90   :  { %6971 = vpow2.f32 %v4584_v47  ;;  %v4586_v18 = vmul.f32 1.442695, %v4469_v48  ;;  %4747 = vadd.xlane.f32.xlu0 %v4746_v11  ;;  %v4474_v60 = vsub.f32 %v10675_v35, %v4400_v37  ;;  %v10677_v48 = vld [vmem:[#allocation144_spill] sm:$0xff]  ;;  %v10678_v37 = vld [vmem:[#allocation143_spill] sm:$0xff] }
 0xa91   :  { %6973 = vpow2.f32 %v4588_v63  ;;  %v4403_v5 = vpop.xlane.xlu1 %4402 }
 0xa92   :  { %v9684_v8 = vpop.eup %6963  ;;  %6975 = vpow2.f32 %v4586_v18  ;;  %4750 = vadd.xlane.f32.xlu1 %v4749_v59  ;;  %v4475_v63 = vsub.f32 %v10677_v48, %v4403_v5  ;;  %v4596_v3 = vmul.f32 1.442695, %v4474_v60  ;;  %v10680_v60 = vld [vmem:[#allocation146_spill] sm:$0xff] }
 0xa93   :  { %10676 = vst [vmem:[#allocation73_spill] sm:$0xff] %v9684_v8  ;;  %v9686_v7 = vpop.eup %6965  ;;  %v4394_v42 = vpop.xlane.xlu0 %4393  ;;  %v4752_v36 = vsel %vm137_vm1, %v9684_v8, 0.0  ;;  %6977 = vpow2.f32 %v4590_v26 }
 0xa94   :  { %v9690_v12 = vpop.eup %6967  ;;  %v4472_v47 = vsub.f32 %v10678_v37, %v4394_v42  ;;  %4753 = vadd.xlane.f32.xlu0 %v4752_v36  ;;  %v4758_v8 = vsel %vm137_vm1, %v9686_v7, 0.0  ;;  %v4598_v26 = vmul.f32 1.442695, %v4475_v63 }
 0xa95   :  { %v4397_v11 = vpop.xlane.xlu1 %4396  ;;  %v4755_v18 = vsel %vm137_vm1, %v9690_v12, 0.0  ;;  %v9696_v35 = vpop.eup %6969 }
 0xa96   :  { %v4592_v59 = vmul.f32 1.442695, %v4472_v47  ;;  %v4473_v57 = vsub.f32 %v10679_v27, %v4397_v11  ;;  %4756 = vadd.xlane.f32.xlu1 %v4755_v18  ;;  %v4761_v48 = vsel %vm137_vm1, %v9696_v35, 0.0  ;;  %v10683_v18 = vld [vmem:[#allocation147_spill] sm:$0xff] }
 0xa98   :  { %6979 = vpow2.f32 %v4592_v59  ;;  %v4594_v5 = vmul.f32 1.442695, %v4473_v57  ;;  %4759 = vadd.xlane.f32.xlu0 %v4758_v8  ;;  %v4406_v42 = vpop.xlane.xlu0 %4405 }
 0xa99   :  { %6981 = vpow2.f32 %v4596_v3  ;;  %v4476_v36 = vsub.f32 %v10680_v60, %v4406_v42 }
 0xa9a   :  { %v9704_v37 = vpop.eup %6971  ;;  %6983 = vpow2.f32 %v4594_v5  ;;  %4762 = vadd.xlane.f32.xlu1 %v4761_v48  ;;  %v4409_v27 = vpop.xlane.xlu1 %4408 }
 0xa9b   :  { %10681 = vst [vmem:[#allocation74_spill] sm:$0xff] %v9704_v37  ;;  %v9706_v47 = vpop.eup %6973  ;;  %v4600_v11 = vmul.f32 1.442695, %v4476_v36  ;;  %v4477_v63 = vsub.f32 %v10683_v18, %v4409_v27  ;;  %v4764_v57 = vsel %vm137_vm1, %v9704_v37, 0.0  ;;  %6985 = vpow2.f32 %v4598_v26 }
 0xa9c   :  { %10682 = vst [vmem:[#allocation75_spill] sm:$0xff] %v9706_v47  ;;  %v9711_v8 = vpop.eup %6975  ;;  %4765 = vadd.xlane.f32.xlu0 %v4764_v57  ;;  %v4770_v5 = vsel %vm137_vm1, %v9706_v47, 0.0 }
 0xa9d   :  { %10684 = vst [vmem:[#allocation76_spill] sm:$0xff] %v9711_v8  ;;  %v4602_v3 = vmul.f32 1.442695, %v4477_v63  ;;  %v4767_v59 = vsel %vm137_vm1, %v9711_v8, 0.0  ;;  %v9715_v42 = vpop.eup %6977  ;;  %6987 = vpow2.f32 %v4600_v11 }
 0xa9e   :  { %10685 = vst [vmem:[#allocation77_spill] sm:$0xff] %v9715_v42  ;;  %4768 = vadd.xlane.f32.xlu1 %v4767_v59  ;;  %v4773_v60 = vsel %vm137_vm1, %v9715_v42, 0.0 }
 0xa9f   :  { %6989 = vpow2.f32 %v4602_v3 }
 0xaa0   :  { %4771 = vadd.xlane.f32.xlu0 %v4770_v5 }
 0xaa2   :  { %v9721_v36 = vpop.eup %6979  ;;  %4774 = vadd.xlane.f32.xlu1 %v4773_v60 }
 0xaa3   :  { %10686 = vst [vmem:[#allocation78_spill] sm:$0xff] %v9721_v36  ;;  %v9723_v26 = vpop.eup %6981  ;;  %v4776_v48 = vsel %vm137_vm1, %v9721_v36, 0.0 }
 0xaa4   :  { %10687 = vst [vmem:[#allocation79_spill] sm:$0xff] %v9723_v26  ;;  %v9727_v27 = vpop.eup %6983  ;;  %4777 = vadd.xlane.f32.xlu0 %v4776_v48  ;;  %v4782_v63 = vsel %vm137_vm1, %v9723_v26, 0.0 }
 0xaa5   :  { %10688 = vst [vmem:[#allocation80_spill] sm:$0xff] %v9727_v27  ;;  %v4779_v11 = vsel %vm137_vm1, %v9727_v27, 0.0  ;;  %v9731_v18 = vpop.eup %6985 }
 0xaa6   :  { %10689 = vst [vmem:[#allocation81_spill] sm:$0xff] %v9731_v18  ;;  %4780 = vadd.xlane.f32.xlu1 %v4779_v11  ;;  %v4785_v3 = vsel %vm137_vm1, %v9731_v18, 0.0 }
 0xaa7   :  { %v9735_v57 = vpop.eup %6987 }
 0xaa8   :  { %10690 = vst [vmem:[#allocation82_spill] sm:$0xff] %v9735_v57  ;;  %4783 = vadd.xlane.f32.xlu0 %v4782_v63  ;;  %v4788_v5 = vsel %vm137_vm1, %v9735_v57, 0.0 }
 0xaa9   :  { %v9739_v59 = vpop.eup %6989 }
 0xaaa   :  { %10691 = vst [vmem:[#allocation83_spill] sm:$0xff] %v9739_v59  ;;  %4786 = vadd.xlane.f32.xlu1 %v4785_v3  ;;  %v4791_v60 = vsel %vm137_vm1, %v9739_v59, 0.0 }
 0xaac   :  { %4789 = vadd.xlane.f32.xlu0 %v4788_v5 }
 0xaae   :  { %4792 = vadd.xlane.f32.xlu1 %v4791_v60 }
 0xabd   :  { %v4616_v48 = vpop.xlane.xlu0 %4615 }
 0xabf   :  { %v4619_v11 = vpop.xlane.xlu1 %4618 }
 0xac0   :  { %6991 = vrcp.f32 %v4619_v11 }
 0xac1   :  { %v4610_v26 = vpop.xlane.xlu0 %4609 }
 0xac2   :  { %6993 = vrcp.f32 %v4610_v26 }
 0xac3   :  { %6995 = vrcp.f32 %v4616_v48  ;;  %v4613_v63 = vpop.xlane.xlu1 %4612 }
 0xac4   :  { %6997 = vrcp.f32 %v4613_v63 }
 0xac5   :  { %v4628_v18 = vpop.xlane.xlu0 %4627 }
 0xac7   :  { %v4631_v27 = vpop.xlane.xlu1 %4630 }
 0xac8   :  { %6999 = vrcp.f32 %v4631_v27 }
 0xac9   :  { %v4622_v3 = vpop.xlane.xlu0 %4621 }
 0xaca   :  { %7001 = vrcp.f32 %v4622_v3  ;;  %v6992_v36 = vpop.eup %6991 }
 0xacb   :  { %7003 = vrcp.f32 %v4628_v18  ;;  %v4625_v5 = vpop.xlane.xlu1 %4624  ;;  %v4867_v11 = vmul.f32 %v6992_v36, %v9443_v17 }
 0xacc   :  { %v6994_v57 = vpop.eup %6993  ;;  %7005 = vrcp.f32 %v4625_v5 }
 0xacd   :  { %v6996_v59 = vpop.eup %6995  ;;  %v4640_v60 = vpop.xlane.xlu0 %4639  ;;  %v4864_v26 = vmul.f32 %v6994_v57, %v9448_v1 }
 0xace   :  { %v6998_v42 = vpop.eup %6997  ;;  %v4866_v63 = vmul.f32 %v6996_v59, %v9438_v20  ;;  %v7139_v20 = vld [vmem:[%s9968_s3] sm:$0xff]  }
 0xacf   :  { %v4643_v47 = vpop.xlane.xlu1 %4642  ;;  %v4865_v48 = vmul.f32 %v6998_v42, %v9453_v41  ;;  %v10692_v42 = vmov 0.0  }
 0xad0   :  { %7007 = vrcp.f32 %v4643_v47  ;;  %v4929_v18 = vpack.c.bf16 %v4867_v11, %v4866_v63 }
 0xad1   :  { %v4634_v27 = vpop.xlane.xlu0 %4633  ;;  %v4928_v3 = vpack.c.bf16 %v4865_v48, %v4864_v26  ;;  %v7140_v48 = vld [vmem:[%s9968_s3 + $0x8] sm:$0xff]  }
 0xad2   :  { %7009 = vrcp.f32 %v4634_v27  ;;  %v7000_v8 = vpop.eup %6999 }
 0xad3   :  { %7011 = vrcp.f32 %v4640_v60  ;;  %6458 = vmatprep.mubr.msk.bf16.mxu1 %vm137_vm1, %v4928_v3  ;;  %v4637_v5 = vpop.xlane.xlu1 %4636  ;;  %v4871_v47 = vmul.f32 %v7000_v8, %v9463_v46  ;;  %v7141_v8 = vld [vmem:[%s9968_s3 + $0x10] sm:$0xff]  }
 0xad4   :  { %v7002_v37 = vpop.eup %7001  ;;  %7013 = vrcp.f32 %v4637_v5  ;;  %6459 = vmatmul.mubr.msk.bf16.vlgmr.msra.gmra.mrb[136].mxu1 %vm137_vm1, %v4929_v18 }
 0xad5   :  { %v7004_v17 = vpop.eup %7003  ;;  %v4652_v1 = vpop.xlane.xlu0 %4651  ;;  %6523 = vmatpush3.bf16.msra.mxu1 %v7139_v20  ;;  %v4868_v57 = vmul.f32 %v7002_v37, %v9468_v54 }
 0xad6   :  { %v7006_v41 = vpop.eup %7005  ;;  %6524 = vmatprep.subr.bf16.mxu1 %v10692_v42  ;;  %v4870_v60 = vmul.f32 %v7004_v17, %v9458_v38 }
 0xad7   :  { %v4655_v36 = vpop.xlane.xlu1 %4654  ;;  %v4869_v59 = vmul.f32 %v7006_v41, %v9473_v21 }
 0xad8   :  { %7015 = vrcp.f32 %v4655_v36  ;;  %v4931_v63 = vpack.c.bf16 %v4871_v47, %v4870_v60 }
 0xad9   :  { %v4646_v11 = vpop.xlane.xlu0 %4645  ;;  %v4930_v26 = vpack.c.bf16 %v4869_v59, %v4868_v57  ;;  %6525 = vmatpush3.bf16.msra.mxu1 %v7140_v48 }
 0xada   :  { %7017 = vrcp.f32 %v4646_v11  ;;  %6526 = vmatprep.subr.bf16.mxu1 %v10692_v42  ;;  %v7008_v46 = vpop.eup %7007  ;;  %v7143_v11 = vld [vmem:[%s9968_s3 + $0x20] sm:$0xff]  }
 0xadb   :  { %7019 = vrcp.f32 %v4652_v1  ;;  %6462 = vmatprep.mubr.msk.bf16.mxu1 %vm137_vm1, %v4930_v26  ;;  %v4649_v54 = vpop.xlane.xlu1 %4648  ;;  %v4875_v18 = vmul.f32 %v7008_v46, %v9483_v14 }
 0xadc   :  { %v7010_v21 = vpop.eup %7009  ;;  %7021 = vrcp.f32 %v4649_v54  ;;  %6463 = vmatmul.mubr.msk.bf16.gmra.mrb[140].mxu1 %vm137_vm1, %v4931_v63 }
 0xadd   :  { %v7012_v38 = vpop.eup %7011  ;;  %v4412_v37 = vpop.xlane.xlu0 %4411  ;;  %6527 = vmatpush3.bf16.msra.mxu1 %v7141_v8  ;;  %v4872_v17 = vmul.f32 %v7010_v21, %v9488_v33  ;;  %v7144_v8 = vld [vmem:[%s9968_s3 + $0x28] sm:$0xff]  }
 0xade   :  { %v7014_v27 = vpop.eup %7013  ;;  %v4478_v3 = vsub.f32 %v9414_v13, %v4412_v37  ;;  %6528 = vmatprep.subr.bf16.mxu1 %v10692_v42  ;;  %v4874_v47 = vmul.f32 %v7012_v38, %v9478_v22  ;;  %v7142_v13 = vld [vmem:[%s9968_s3 + $0x18] sm:$0xff]  }
 0xadf   :  { %v4415_v5 = vpop.xlane.xlu1 %4414  ;;  %v4873_v1 = vmul.f32 %v7014_v27, %v9492_v55 }
 0xae0   :  { %v4604_v20 = vmul.f32 1.442695, %v4478_v3  ;;  %v4479_v41 = vsub.f32 %v9422_v19, %v4415_v5  ;;  %v4933_v59 = vpack.c.bf16 %v4875_v18, %v4874_v47  ;;  %v7145_v18 = vld [vmem:[%s9968_s3 + $0x30] sm:$0xff]  }
 0xae1   :  { %v4658_v36 = vpop.xlane.xlu0 %4657  ;;  %v4932_v57 = vpack.c.bf16 %v4873_v1, %v4872_v17  ;;  %6529 = vmatpush3.bf16.msra.mxu1 %v7142_v13  ;;  %v7146_v13 = vld [vmem:[%s9968_s3 + $0x38] sm:$0xff]   ;;  %s7173_s3 = smov [#allocation2]  }
 0xae2   :  { %7023 = vpow2.f32 %v4604_v20  ;;  %v4606_v14 = vmul.f32 1.442695, %v4479_v41  ;;  %6530 = vmatprep.subr.bf16.mxu1 %v10692_v42  ;;  %v7016_v33 = vpop.eup %7015  ;;  %s5593_s5 = sshll.u32 %s7173_s3, 4  ;;  %s5594_s5 = int_to_ptr.vmem [resolvable:$true] %s5593_s5 }
 0xae3   :  { %7025 = vrcp.f32 %v4658_v36  ;;  %6466 = vmatprep.mubr.msk.bf16.mxu1 %vm137_vm1, %v4932_v57  ;;  %v4661_v55 = vpop.xlane.xlu1 %4660  ;;  %v4879_v48 = vmul.f32 %v7016_v33, %v9503_v39  ;;  %s7147_s6 = scalar_lea.vmem %s5594_s5, 256  ;;  %p7152_p1 = scmp.lt.s32.totalorder %s5594_s5, %s5594_s5 }
 0xae4   :  { %v7018_v19 = vpop.eup %7017  ;;  %7027 = vpow2.f32 %v4606_v14  ;;  %6467 = vmatmul.mubr.msk.bf16.gmra.mrb[144].mxu1 %vm137_vm1, %v4933_v59  ;;  %p7148_p0 = scmp.ne.s32.totalorder %s5594_s5, %s7147_s6  ;;  %p7153_p2 = scmp.lt.s32.totalorder %s7147_s6, %s7147_s6 }
 0xae5   :  { %v7020_v22 = vpop.eup %7019  ;;  %7029 = vrcp.f32 %v4661_v55  ;;  %v4664_v60 = vpop.xlane.xlu0 %4663  ;;  %6531 = vmatpush3.bf16.msra.mxu1 %v7143_v11  ;;  %v4876_v46 = vmul.f32 %v7018_v19, %v9508_v28 }
 0xae6   :  { %v7022_v26 = vpop.eup %7021  ;;  %7031 = vrcp.f32 %v4664_v60  ;;  %6532 = vmatprep.subr.bf16.mxu1 %v10692_v42  ;;  %v4878_v21 = vmul.f32 %v7020_v22, %v9498_v32  ;;  %p7154_p3 = por %p7153_p2, %p7152_p1 }
 0xae7   :  { %v4667_v63 = vpop.xlane.xlu1 %4666  ;;  %v4877_v54 = vmul.f32 %v7022_v26, %v9512_v29 }
 0xae8   :  { %7033 = vrcp.f32 %v4667_v63  ;;  %v4935_v27 = vpack.c.bf16 %v4879_v48, %v4878_v21  ;;  %p7155_p4 = pnand %p7154_p3, %p7148_p0 }
 0xae9   :  { %v4670_v38 = vpop.xlane.xlu0 %4669  ;;  %v4934_v37 = vpack.c.bf16 %v4877_v54, %v4876_v46  ;;  %6533 = vmatpush3.bf16.msra.mxu1 %v7144_v8 }
 0xaea   :  { %7035 = vrcp.f32 %v4670_v38  ;;  %6534 = vmatprep.subr.bf16.mxu1 %v10692_v42 }
 0xaeb   :  { %6470 = vmatprep.mubr.msk.bf16.mxu1 %vm137_vm1, %v4934_v37  ;;  %v4673_v39 = vpop.xlane.xlu1 %4672 }
 0xaec   :  { %v9794_v28 = vpop.eup %7023  ;;  %7037 = vrcp.f32 %v4673_v39  ;;  %6471 = vmatmul.mubr.msk.bf16.gmra.mrb[148].mxu1 %vm137_vm1, %v4935_v27 }
 0xaed   :  { %v7026_v32 = vpop.eup %7025  ;;  %v4676_v29 = vpop.xlane.xlu0 %4675  ;;  %v4794_v3 = vsel %vm137_vm1, %v9794_v28, 0.0  ;;  %6535 = vmatpush3.bf16.msra.mxu1 %v7145_v18 }
 0xaee   :  { %v9802_v5 = vpop.eup %7027  ;;  %7039 = vrcp.f32 %v4676_v29  ;;  %4795 = vadd.xlane.f32.xlu0 %v4794_v3  ;;  %6536 = vmatprep.subr.bf16.mxu1 %v10692_v42  ;;  %v4880_v47 = vmul.f32 %v7026_v32, %v9524_v45 }
 0xaef   :  { %v7030_v17 = vpop.eup %7029  ;;  %v4679_v1 = vpop.xlane.xlu1 %4678  ;;  %v4797_v20 = vsel %vm137_vm1, %v9802_v5, 0.0 }
 0xaf0   :  { %v7032_v41 = vpop.eup %7031  ;;  %7041 = vrcp.f32 %v4679_v1  ;;  %4798 = vadd.xlane.f32.xlu1 %v4797_v20  ;;  %v4881_v36 = vmul.f32 %v7030_v17, %v9530_v10 }
 0xaf1   :  { %v4682_v57 = vpop.xlane.xlu0 %4681  ;;  %6537 = vmatpush3.bf16.msra.mxu1 %v7146_v13  ;;  %v4882_v55 = vmul.f32 %v7032_v41, %v9526_v31 }
 0xaf2   :  { %v7034_v14 = vpop.eup %7033  ;;  %7043 = vrcp.f32 %v4682_v57  ;;  %v4936_v59 = vpack.c.bf16 %v4881_v36, %v4880_v47  ;;  %6542 = vmatprep.subr.bf16.mxu1 %v10692_v42 }
 0xaf3   :  { %v4685_v33 = vpop.xlane.xlu1 %4684  ;;  %v4883_v19 = vmul.f32 %v7034_v14, %v9536_v24 }
 0xaf4   :  { %v7036_v22 = vpop.eup %7035  ;;  %6474 = vmatprep.mubr.msk.bf16.mxu1 %vm137_vm1, %v4936_v59  ;;  %7045 = vrcp.f32 %v4685_v33 }
 0xaf5   :  { %v4688_v45 = vpop.xlane.xlu0 %4687  ;;  %v4937_v10 = vpack.c.bf16 %v4883_v19, %v4882_v55  ;;  %v4884_v26 = vmul.f32 %v7036_v22, %v9544_v34 }
 0xaf6   :  { %v7038_v60 = vpop.eup %7037  ;;  %7047 = vrcp.f32 %v4688_v45 }
 0xaf7   :  { %6475 = vmatmul.mubr.msk.bf16.gmra.mrb[152].mxu1 %vm137_vm1, %v4937_v10  ;;  %v4691_v11 = vpop.xlane.xlu1 %4690  ;;  %v4885_v48 = vmul.f32 %v7038_v60, %v9550_v51 }
 0xaf8   :  { %v7040_v63 = vpop.eup %7039  ;;  %7049 = vrcp.f32 %v4691_v11 }
 0xaf9   :  { %v4694_v31 = vpop.xlane.xlu0 %4693  ;;  %v4938_v46 = vpack.c.bf16 %v4885_v48, %v4884_v26  ;;  %v4886_v21 = vmul.f32 %v7040_v63, %v9546_v23 }
 0xafa   :  { %v7042_v24 = vpop.eup %7041  ;;  %7051 = vrcp.f32 %v4694_v31 }
 0xafb   :  { %6478 = vmatprep.mubr.msk.bf16.mxu1 %vm137_vm1, %v4938_v46  ;;  %v4697_v54 = vpop.xlane.xlu1 %4696  ;;  %v4887_v38 = vmul.f32 %v7042_v24, %v9556_v61 }
 0xafc   :  { %v7044_v37 = vpop.eup %7043  ;;  %7053 = vrcp.f32 %v4697_v54 }
 0xafd   :  { %v4700_v8 = vpop.xlane.xlu0 %4699  ;;  %v4939_v27 = vpack.c.bf16 %v4887_v38, %v4886_v21  ;;  %v4888_v39 = vmul.f32 %v7044_v37, %v9564_v62 }
 0xafe   :  { %v7046_v34 = vpop.eup %7045  ;;  %7055 = vrcp.f32 %v4700_v8 }
 0xaff   :  { %6479 = vmatmul.mubr.msk.bf16.gmra.mrb[156].mxu1 %vm137_vm1, %v4939_v27  ;;  %v4703_v51 = vpop.xlane.xlu1 %4702  ;;  %v4889_v32 = vmul.f32 %v7046_v34, %v9570_v43 }
 0xb00   :  { %v7048_v29 = vpop.eup %7047  ;;  %7057 = vrcp.f32 %v4703_v51 }
 0xb01   :  { %v4706_v3 = vpop.xlane.xlu0 %4705  ;;  %v4940_v18 = vpack.c.bf16 %v4889_v32, %v4888_v39  ;;  %v4890_v17 = vmul.f32 %v7048_v29, %v9566_v4 }
 0xb02   :  { %v7050_v23 = vpop.eup %7049  ;;  %7059 = vrcp.f32 %v4706_v3 }
 0xb03   :  { %6482 = vmatprep.mubr.msk.bf16.mxu1 %vm137_vm1, %v4940_v18  ;;  %v4709_v61 = vpop.xlane.xlu1 %4708  ;;  %v4891_v1 = vmul.f32 %v7050_v23, %v9576_v15 }
 0xb04   :  { %v7052_v20 = vpop.eup %7051  ;;  %7061 = vrcp.f32 %v4709_v61 }
 0xb05   :  { %v4712_v41 = vpop.xlane.xlu0 %4711  ;;  %v4941_v47 = vpack.c.bf16 %v4891_v1, %v4890_v17  ;;  %v4892_v36 = vmul.f32 %v7052_v20, %v9584_v30  ;;  %v10693_v1 = vld [vmem:[#allocation148_spill] sm:$0xff] }
 0xb06   :  { %v7054_v62 = vpop.eup %7053  ;;  %7063 = vrcp.f32 %v4712_v41  ;;  %v10694_v41 = vld [vmem:[#allocation149_spill] sm:$0xff] }
 0xb07   :  { %6483 = vmatmul.mubr.msk.bf16.gmra.mrb[160].mxu1 %vm137_vm1, %v4941_v47  ;;  %v4715_v43 = vpop.xlane.xlu1 %4714  ;;  %v4893_v57 = vmul.f32 %v7054_v62, %v9590_v49 }
 0xb08   :  { %v7056_v13 = vpop.eup %7055  ;;  %7065 = vrcp.f32 %v4715_v43 }
 0xb09   :  { %v4718_v14 = vpop.xlane.xlu0 %4717  ;;  %v4942_v59 = vpack.c.bf16 %v4893_v57, %v4892_v36  ;;  %v4894_v33 = vmul.f32 %v7056_v13, %v9586_v6  ;;  %v10695_v57 = vld [vmem:[#allocation69_spill] sm:$0xff] }
 0xb0a   :  { %v7058_v4 = vpop.eup %7057  ;;  %7067 = vrcp.f32 %v4718_v14 }
 0xb0b   :  { %6486 = vmatprep.mubr.msk.bf16.mxu1 %vm137_vm1, %v4942_v59  ;;  %v4721_v15 = vpop.xlane.xlu1 %4720  ;;  %v4895_v55 = vmul.f32 %v7058_v4, %v9596_v56 }
 0xb0c   :  { %v7060_v19 = vpop.eup %7059  ;;  %7069 = vrcp.f32 %v4721_v15 }
 0xb0d   :  { %v4724_v22 = vpop.xlane.xlu0 %4723  ;;  %v4943_v45 = vpack.c.bf16 %v4895_v55, %v4894_v33  ;;  %v4896_v10 = vmul.f32 %v7060_v19, %v9604_v52  ;;  %v10696_v19 = vld [vmem:[#allocation71_spill] sm:$0xff] }
 0xb0e   :  { %v7062_v30 = vpop.eup %7061  ;;  %7071 = vrcp.f32 %v4724_v22 }
 0xb0f   :  { %6487 = vmatmul.mubr.msk.bf16.gmra.mrb[164].mxu1 %vm137_vm1, %v4943_v45  ;;  %v4727_v49 = vpop.xlane.xlu1 %4726  ;;  %v4897_v60 = vmul.f32 %v7062_v30, %v9610_v9  ;;  %v10697_v45 = vld [vmem:[#allocation72_spill] sm:$0xff] }
 0xb10   :  { %v7064_v11 = vpop.eup %7063  ;;  %7073 = vrcp.f32 %v4727_v49 }
 0xb11   :  { %v4730_v26 = vpop.xlane.xlu0 %4729  ;;  %v4944_v48 = vpack.c.bf16 %v4897_v60, %v4896_v10  ;;  %v4898_v63 = vmul.f32 %v7064_v11, %v9606_v0 }
 0xb12   :  { %v7066_v6 = vpop.eup %7065  ;;  %7075 = vrcp.f32 %v4730_v26  ;;  %v10698_v26 = vld [vmem:[#allocation73_spill] sm:$0xff] }
 0xb13   :  { %6490 = vmatprep.mubr.msk.bf16.mxu1 %vm137_vm1, %v4944_v48  ;;  %v4733_v56 = vpop.xlane.xlu1 %4732  ;;  %v4899_v31 = vmul.f32 %v7066_v6, %v9616_v2 }
 0xb14   :  { %v7068_v46 = vpop.eup %7067  ;;  %7077 = vrcp.f32 %v4733_v56 }
 0xb15   :  { %v4736_v24 = vpop.xlane.xlu0 %4735  ;;  %v4945_v54 = vpack.c.bf16 %v4899_v31, %v4898_v63  ;;  %v4900_v21 = vmul.f32 %v7068_v46, %v9624_v50 }
 0xb16   :  { %v7070_v52 = vpop.eup %7069  ;;  %7079 = vrcp.f32 %v4736_v24 }
 0xb17   :  { %6491 = vmatmul.mubr.msk.bf16.gmra.mrb[168].mxu1 %vm137_vm1, %v4945_v54  ;;  %v4739_v9 = vpop.xlane.xlu1 %4738  ;;  %v4901_v38 = vmul.f32 %v7070_v52, %v9630_v40 }
 0xb18   :  { %v7072_v37 = vpop.eup %7071  ;;  %7081 = vrcp.f32 %v4739_v9 }
 0xb19   :  { %v4742_v8 = vpop.xlane.xlu0 %4741  ;;  %v4946_v27 = vpack.c.bf16 %v4901_v38, %v4900_v21  ;;  %v4902_v34 = vmul.f32 %v7072_v37, %v9626_v53 }
 0xb1a   :  { %v7074_v0 = vpop.eup %7073  ;;  %7083 = vrcp.f32 %v4742_v8  ;;  %v10699_v8 = vld [vmem:[#allocation74_spill] sm:$0xff] }
 0xb1b   :  { %6494 = vmatprep.mubr.msk.bf16.mxu1 %vm137_vm1, %v4946_v27  ;;  %v4745_v2 = vpop.xlane.xlu1 %4744  ;;  %v4903_v51 = vmul.f32 %v7074_v0, %v9636_v44  ;;  %v10700_v0 = vld [vmem:[#allocation76_spill] sm:$0xff] }
 0xb1c   :  { %v7076_v39 = vpop.eup %7075  ;;  %7085 = vrcp.f32 %v4745_v2 }
 0xb1d   :  { %v4748_v32 = vpop.xlane.xlu0 %4747  ;;  %v4947_v29 = vpack.c.bf16 %v4903_v51, %v4902_v34  ;;  %v4904_v3 = vmul.f32 %v7076_v39, %v9644_v58 }
 0xb1e   :  { %v7078_v50 = vpop.eup %7077  ;;  %7087 = vrcp.f32 %v4748_v32  ;;  %v10701_v32 = vld [vmem:[#allocation75_spill] sm:$0xff] }
 0xb1f   :  { %6495 = vmatmul.mubr.msk.bf16.gmra.mrb[172].mxu1 %vm137_vm1, %v4947_v29  ;;  %v4751_v40 = vpop.xlane.xlu1 %4750  ;;  %v4905_v18 = vmul.f32 %v7078_v50, %v9650_v25  ;;  %v10702_v50 = vld [vmem:[#allocation77_spill] sm:$0xff] }
 0xb20   :  { %v7080_v23 = vpop.eup %7079  ;;  %7089 = vrcp.f32 %v4751_v40 }
 0xb21   :  { %v4754_v61 = vpop.xlane.xlu0 %4753  ;;  %v4948_v17 = vpack.c.bf16 %v4905_v18, %v4904_v3  ;;  %v4906_v20 = vmul.f32 %v7080_v23, %v10693_v1 }
 0xb22   :  { %v7082_v53 = vpop.eup %7081  ;;  %7091 = vrcp.f32 %v4754_v61  ;;  %v10703_v61 = vld [vmem:[#allocation78_spill] sm:$0xff] }
 0xb23   :  { %6498 = vmatprep.mubr.msk.bf16.mxu1 %vm137_vm1, %v4948_v17  ;;  %v4757_v44 = vpop.xlane.xlu1 %4756  ;;  %v4907_v47 = vmul.f32 %v7082_v53, %v10694_v41  ;;  %v10704_v53 = vld [vmem:[#allocation80_spill] sm:$0xff] }
 0xb24   :  { %v7084_v62 = vpop.eup %7083  ;;  %7093 = vrcp.f32 %v4757_v44 }
 0xb25   :  { %v4760_v43 = vpop.xlane.xlu0 %4759  ;;  %v4949_v36 = vpack.c.bf16 %v4907_v47, %v4906_v20  ;;  %v4908_v13 = vmul.f32 %v7084_v62, %v10695_v57  ;;  %v10705_v47 = vld [vmem:[#allocation79_spill] sm:$0xff] }
 0xb26   :  { %v7086_v58 = vpop.eup %7085  ;;  %7095 = vrcp.f32 %v4760_v43  ;;  %v10706_v43 = vld [vmem:[#allocation81_spill] sm:$0xff] }
 0xb27   :  { %6499 = vmatmul.mubr.msk.bf16.gmra.mrb[176].mxu1 %vm137_vm1, %v4949_v36  ;;  %v4763_v25 = vpop.xlane.xlu1 %4762  ;;  %v4909_v14 = vmul.f32 %v7086_v58, %v9670_v16 }
 0xb28   :  { %v7088_v59 = vpop.eup %7087  ;;  %7097 = vrcp.f32 %v4763_v25 }
 0xb29   :  { %v4766_v4 = vpop.xlane.xlu0 %4765  ;;  %v4950_v15 = vpack.c.bf16 %v4909_v14, %v4908_v13  ;;  %v4910_v22 = vmul.f32 %v7088_v59, %v10696_v19  ;;  %v10707_v13 = vld [vmem:[#allocation82_spill] sm:$0xff]  ;;  %v10708_v59 = vld [vmem:[#allocation83_spill] sm:$0xff] }
 0xb2a   :  { %v7090_v33 = vpop.eup %7089  ;;  %7099 = vrcp.f32 %v4766_v4 }
 0xb2b   :  { %6502 = vmatprep.mubr.msk.bf16.mxu1 %vm137_vm1, %v4950_v15  ;;  %v4769_v55 = vpop.xlane.xlu1 %4768  ;;  %v4911_v30 = vmul.f32 %v7090_v33, %v10697_v45 }
 0xb2c   :  { %v7092_v49 = vpop.eup %7091  ;;  %7101 = vrcp.f32 %v4769_v55 }
 0xb2d   :  { %v4772_v10 = vpop.xlane.xlu0 %4771  ;;  %v4951_v60 = vpack.c.bf16 %v4911_v30, %v4910_v22  ;;  %v4912_v48 = vmul.f32 %v7092_v49, %v10698_v26  ;;  %v10710_v26 = vld [vmem:[#allocation5_spill] sm:$0xff] }
 0xb2e   :  { %v7094_v11 = vpop.eup %7093  ;;  %7103 = vrcp.f32 %v4772_v10 }
 0xb2f   :  { %6503 = vmatmul.mubr.msk.bf16.gmra.mrb[180].mxu1 %vm137_vm1, %v4951_v60  ;;  %v4775_v16 = vpop.xlane.xlu1 %4774  ;;  %v4913_v6 = vmul.f32 %v7094_v11, %v9690_v12  ;;  %v10709_v60 = vld [vmem:[#allocation6_spill] sm:$0xff] }
 0xb30   :  { %v7096_v56 = vpop.eup %7095  ;;  %7105 = vrcp.f32 %v4775_v16 }
 0xb31   :  { %v4778_v63 = vpop.xlane.xlu0 %4777  ;;  %v4952_v31 = vpack.c.bf16 %v4913_v6, %v4912_v48  ;;  %v4914_v54 = vmul.f32 %v7096_v56, %v9686_v7  ;;  %v10711_v56 = vld [vmem:[#allocation8_spill] sm:$0xff] }
 0xb32   :  { %v7098_v46 = vpop.eup %7097  ;;  %7107 = vrcp.f32 %v4778_v63 }
 0xb33   :  { %6506 = vmatprep.mubr.msk.bf16.mxu1 %vm137_vm1, %v4952_v31  ;;  %v4781_v24 = vpop.xlane.xlu1 %4780  ;;  %v4915_v52 = vmul.f32 %v7098_v46, %v9696_v35 }
 0xb34   :  { %v7100_v9 = vpop.eup %7099  ;;  %7109 = vrcp.f32 %v4781_v24 }
 0xb35   :  { %v4784_v21 = vpop.xlane.xlu0 %4783  ;;  %v4953_v38 = vpack.c.bf16 %v4915_v52, %v4914_v54  ;;  %v4916_v27 = vmul.f32 %v7100_v9, %v10699_v8  ;;  %v10713_v52 = vld [vmem:[#allocation10_spill] sm:$0xff]  ;;  %v10715_v8 = vld [vmem:[#allocation12_spill] sm:$0xff] }
 0xb36   :  { %v7102_v37 = vpop.eup %7101  ;;  %7111 = vrcp.f32 %v4784_v21 }
 0xb37   :  { %6507 = vmatmul.mubr.msk.bf16.gmra.mrb[184].mxu1 %vm137_vm1, %v4953_v38  ;;  %v4787_v12 = vpop.xlane.xlu1 %4786  ;;  %v4917_v2 = vmul.f32 %v7102_v37, %v10700_v0  ;;  %v10714_v38 = vld [vmem:[#allocation9_spill] sm:$0xff] }
 0xb38   :  { %v7104_v34 = vpop.eup %7103  ;;  %7113 = vrcp.f32 %v4787_v12 }
 0xb39   :  { %v4790_v51 = vpop.xlane.xlu0 %4789  ;;  %v4954_v39 = vpack.c.bf16 %v4917_v2, %v4916_v27  ;;  %v4918_v29 = vmul.f32 %v7104_v34, %v10701_v32  ;;  %v10716_v34 = vld [vmem:[#allocation11_spill] sm:$0xff] }
 0xb3a   :  { %v7106_v7 = vpop.eup %7105  ;;  %7115 = vrcp.f32 %v4790_v51 }
 0xb3b   :  { %6510 = vmatprep.mubr.msk.bf16.mxu1 %vm137_vm1, %v4954_v39  ;;  %v4793_v35 = vpop.xlane.xlu1 %4792  ;;  %v4919_v40 = vmul.f32 %v7106_v7, %v10702_v50 }
 0xb3c   :  { %v7108_v3 = vpop.eup %7107  ;;  %7117 = vrcp.f32 %v4793_v35 }
 0xb3d   :  { %v4955_v18 = vpack.c.bf16 %v4919_v40, %v4918_v29  ;;  %v4920_v17 = vmul.f32 %v7108_v3, %v10703_v61  ;;  %v10717_v29 = vld [vmem:[#allocation14_spill] sm:$0xff]  ;;  %v10718_v3 = vld [vmem:[#allocation13_spill] sm:$0xff]  ;;  %v10719_v61 = vld [vmem:[#allocation16_spill] sm:$0xff] }
 0xb3e   :  { %v7110_v23 = vpop.eup %7109 }
 0xb3f   :  { %6511 = vmatmul.mubr.msk.bf16.gmra.mrb[188].mxu1 %vm137_vm1, %v4955_v18  ;;  %v4921_v44 = vmul.f32 %v7110_v23, %v10704_v53 }
 0xb40   :  { %v7112_v1 = vpop.eup %7111 }
 0xb41   :  { %v4956_v20 = vpack.c.bf16 %v4921_v44, %v4920_v17  ;;  %v4922_v62 = vmul.f32 %v7112_v1, %v10705_v47  ;;  %v10720_v1 = vld [vmem:[#allocation15_spill] sm:$0xff] }
 0xb42   :  { %v7114_v41 = vpop.eup %7113 }
 0xb43   :  { %6514 = vmatprep.mubr.msk.bf16.mxu1 %vm137_vm1, %v4956_v20  ;;  %v4923_v36 = vmul.f32 %v7114_v41, %v10706_v43 }
 0xb44   :  { %v7116_v58 = vpop.eup %7115 }
 0xb45   :  { %v4957_v25 = vpack.c.bf16 %v4923_v36, %v4922_v62  ;;  %v4924_v14 = vmul.f32 %v7116_v58, %v10707_v13  ;;  %v10721_v36 = vld [vmem:[#allocation18_spill] sm:$0xff] }
 0xb46   :  { %v7118_v57 = vpop.eup %7117 }
 0xb47   :  { %6515 = vmatmul.mubr.msk.bf16.gmra.mrb[192].mxu1 %vm137_vm1, %v4957_v25  ;;  %v4925_v4 = vmul.f32 %v7118_v57, %v10708_v59  ;;  %v10722_v57 = vld [vmem:[#allocation17_spill] sm:$0xff]  ;;  %v10723_v59 = vld [vmem:[#allocation20_spill] sm:$0xff] }
 0xb49   :  { %v4958_v15 = vpack.c.bf16 %v4925_v4, %v4924_v14 }
 0xb4b   :  { %6518 = vmatprep.mubr.msk.bf16.mxu1 %vm137_vm1, %v4958_v15 }
 0xb7b   :  { %v4796_v33 = vpop.xlane.xlu0 %4795 }
 0xb7c   :  { %7119 = vrcp.f32 %v4796_v33 }
 0xb7d   :  { %v4799_v55 = vpop.xlane.xlu1 %4798 }
 0xb7e   :  { %7121 = vrcp.f32 %v4799_v55  ;;  %v10724_v55 = vld [vmem:[#allocation19_spill] sm:$0xff] }
 0xb86   :  { %v7120_v19 = vpop.eup %7119 }
 0xb87   :  { %v4926_v45 = vmul.f32 %v7120_v19, %v9794_v28  ;;  %v10712_v28 = vld [vmem:[#allocation7_spill] sm:$0xff] }
 0xb88   :  { %v7122_v22 = vpop.eup %7121 }
 0xb89   :  { %v4927_v30 = vmul.f32 %v7122_v22, %v9802_v5 }
 0xb8b   :  { %v4959_v49 = vpack.c.bf16 %v4927_v30, %v4926_v45 }
 0xb8d   :  { %6519 = vmatmul.mubr.msk.bf16.gmra.mrb[196].mxu1 %vm137_vm1, %v4959_v49 }
 0xb8e   :  { %6538 = vmatprep.mubr.msk.bf16.mxu1 %vm7172_vm2, %v10692_v42 }
 0xba7   :  { %v6460_v10 = vpop.f32.mrb[136].mxu1 }
 0xba8   :  { %v5347_v11 = vmul.f32 %v6460_v10, %v10709_v60  ;;  %v5090_v16 = vpop.f32.mrb[137].mxu1  ;;  %v10725_v10 = vld [vmem:[#allocation22_spill] sm:$0xff] }
 0xba9   :  { %v5345_v48 = vmul.f32 %v5090_v16, %v10710_v26  ;;  %v6461_v6 = vpop.f32.mrb[138].mxu1  ;;  %v10726_v16 = vld [vmem:[#allocation21_spill] sm:$0xff] }
 0xbaa   :  { %v5348_v63 = vmul.f32 %v6461_v6, %v10711_v56  ;;  %v5093_v31 = vpop.f32.mrb[139].mxu1  ;;  %v10727_v6 = vld [vmem:[#allocation24_spill] sm:$0xff] }
 0xbab   :  { %v5409_v46 = vadd.f32 %v5347_v11, %v5345_v48  ;;  %v5346_v24 = vmul.f32 %v5093_v31, %v10712_v28 }
 0xbad   :  { %v5440_v5 = vadd.f32 %v5348_v63, %v5346_v24 }
 0xbaf   :  { %v6464_v54 = vpop.f32.mrb[140].mxu1 }
 0xbb0   :  { %v5351_v9 = vmul.f32 %v6464_v54, %v10713_v52  ;;  %v5106_v21 = vpop.f32.mrb[141].mxu1 }
 0xbb1   :  { %v5349_v37 = vmul.f32 %v5106_v21, %v10714_v38  ;;  %v6465_v12 = vpop.f32.mrb[142].mxu1 }
 0xbb2   :  { %v5352_v27 = vmul.f32 %v6465_v12, %v10715_v8  ;;  %v5109_v0 = vpop.f32.mrb[143].mxu1 }
 0xbb3   :  { %v5410_v2 = vadd.f32 %v5409_v46, %v5349_v37  ;;  %v5350_v51 = vmul.f32 %v5109_v0, %v10716_v34  ;;  %v10728_v46 = vld [vmem:[#allocation23_spill] sm:$0xff]  ;;  %v10730_v37 = vld [vmem:[#allocation25_spill] sm:$0xff] }
 0xbb5   :  { %v5441_v39 = vadd.f32 %v5440_v5, %v5350_v51  ;;  %v5411_v7 = vadd.f32 %v5410_v2, %v5351_v9  ;;  %v10729_v9 = vld [vmem:[#allocation26_spill] sm:$0xff]  ;;  %v10732_v51 = vld [vmem:[#allocation27_spill] sm:$0xff] }
 0xbb7   :  { %v6468_v35 = vpop.f32.mrb[144].mxu1  ;;  %v5442_v32 = vadd.f32 %v5441_v39, %v5352_v27  ;;  %v10731_v27 = vld [vmem:[#allocation28_spill] sm:$0xff] }
 0xbb8   :  { %v5355_v50 = vmul.f32 %v6468_v35, %v10717_v29  ;;  %v5122_v40 = vpop.f32.mrb[145].mxu1 }
 0xbb9   :  { %v5353_v18 = vmul.f32 %v5122_v40, %v10718_v3  ;;  %v6469_v23 = vpop.f32.mrb[146].mxu1 }
 0xbba   :  { %v5356_v17 = vmul.f32 %v6469_v23, %v10719_v61  ;;  %v5125_v53 = vpop.f32.mrb[147].mxu1 }
 0xbbb   :  { %v5412_v44 = vadd.f32 %v5411_v7, %v5353_v18  ;;  %v5354_v20 = vmul.f32 %v5125_v53, %v10720_v1  ;;  %v10734_v18 = vld [vmem:[#allocation29_spill] sm:$0xff] }
 0xbbd   :  { %v5443_v41 = vadd.f32 %v5442_v32, %v5354_v20  ;;  %v5413_v47 = vadd.f32 %v5412_v44, %v5355_v50  ;;  %v10733_v50 = vld [vmem:[#allocation30_spill] sm:$0xff]  ;;  %v10736_v20 = vld [vmem:[#allocation31_spill] sm:$0xff] }
 0xbbf   :  { %v6472_v62 = vpop.f32.mrb[148].mxu1  ;;  %v5444_v43 = vadd.f32 %v5443_v41, %v5356_v17  ;;  %v10735_v17 = vld [vmem:[#allocation32_spill] sm:$0xff] }
 0xbc0   :  { %v5359_v58 = vmul.f32 %v6472_v62, %v10721_v36  ;;  %v5138_v25 = vpop.f32.mrb[149].mxu1 }
 0xbc1   :  { %v5357_v13 = vmul.f32 %v5138_v25, %v10722_v57  ;;  %v6473_v14 = vpop.f32.mrb[150].mxu1 }
 0xbc2   :  { %v5360_v4 = vmul.f32 %v6473_v14, %v10723_v59  ;;  %v5141_v15 = vpop.f32.mrb[151].mxu1 }
 0xbc3   :  { %v5414_v33 = vadd.f32 %v5413_v47, %v5357_v13  ;;  %v5358_v19 = vmul.f32 %v5141_v15, %v10724_v55  ;;  %v10738_v13 = vld [vmem:[#allocation33_spill] sm:$0xff] }
 0xbc5   :  { %v5445_v22 = vadd.f32 %v5444_v43, %v5358_v19  ;;  %v5415_v45 = vadd.f32 %v5414_v33, %v5359_v58  ;;  %v10737_v58 = vld [vmem:[#allocation34_spill] sm:$0xff]  ;;  %v10740_v19 = vld [vmem:[#allocation35_spill] sm:$0xff] }
 0xbc7   :  { %v5446_v30 = vadd.f32 %v5445_v22, %v5360_v4  ;;  %v10739_v4 = vld [vmem:[#allocation36_spill] sm:$0xff] }
 0xbca   :  { %v6476_v49 = vpop.f32.mrb[152].mxu1 }
 0xbcb   :  { %v5363_v60 = vmul.f32 %v6476_v49, %v10725_v10  ;;  %v5154_v11 = vpop.f32.mrb[153].mxu1 }
 0xbcc   :  { %v5361_v26 = vmul.f32 %v5154_v11, %v10726_v16  ;;  %v6477_v48 = vpop.f32.mrb[154].mxu1 }
 0xbcd   :  { %v5364_v56 = vmul.f32 %v6477_v48, %v10727_v6  ;;  %v5157_v63 = vpop.f32.mrb[155].mxu1 }
 0xbce   :  { %v5416_v31 = vadd.f32 %v5415_v45, %v5361_v26  ;;  %v5362_v28 = vmul.f32 %v5157_v63, %v10728_v46  ;;  %v10742_v26 = vld [vmem:[#allocation37_spill] sm:$0xff] }
 0xbd0   :  { %v5447_v24 = vadd.f32 %v5446_v30, %v5362_v28  ;;  %v5417_v5 = vadd.f32 %v5416_v31, %v5363_v60  ;;  %v10741_v60 = vld [vmem:[#allocation38_spill] sm:$0xff]  ;;  %v10744_v28 = vld [vmem:[#allocation39_spill] sm:$0xff] }
 0xbd2   :  { %v6480_v54 = vpop.f32.mrb[156].mxu1  ;;  %v5448_v52 = vadd.f32 %v5447_v24, %v5364_v56  ;;  %v10743_v56 = vld [vmem:[#allocation40_spill] sm:$0xff] }
 0xbd3   :  { %v5367_v21 = vmul.f32 %v6480_v54, %v10729_v9  ;;  %v5170_v38 = vpop.f32.mrb[157].mxu1 }
 0xbd4   :  { %v5365_v12 = vmul.f32 %v5170_v38, %v10730_v37  ;;  %v6481_v8 = vpop.f32.mrb[158].mxu1 }
 0xbd5   :  { %v5368_v0 = vmul.f32 %v6481_v8, %v10731_v27  ;;  %v5173_v2 = vpop.f32.mrb[159].mxu1 }
 0xbd6   :  { %v5418_v34 = vadd.f32 %v5417_v5, %v5365_v12  ;;  %v5366_v39 = vmul.f32 %v5173_v2, %v10732_v51  ;;  %v10746_v12 = vld [vmem:[#allocation41_spill] sm:$0xff] }
 0xbd8   :  { %v5449_v7 = vadd.f32 %v5448_v52, %v5366_v39  ;;  %v5419_v35 = vadd.f32 %v5418_v34, %v5367_v21  ;;  %v10745_v21 = vld [vmem:[#allocation42_spill] sm:$0xff]  ;;  %v10748_v39 = vld [vmem:[#allocation43_spill] sm:$0xff] }
 0xbda   :  { %v6484_v32 = vpop.f32.mrb[160].mxu1  ;;  %v5450_v29 = vadd.f32 %v5449_v7, %v5368_v0  ;;  %v10747_v0 = vld [vmem:[#allocation44_spill] sm:$0xff] }
 0xbdb   :  { %v5371_v40 = vmul.f32 %v6484_v32, %v10733_v50  ;;  %v5186_v3 = vpop.f32.mrb[161].mxu1 }
 0xbdc   :  { %v5369_v23 = vmul.f32 %v5186_v3, %v10734_v18  ;;  %v6485_v61 = vpop.f32.mrb[162].mxu1 }
 0xbdd   :  { %v5372_v53 = vmul.f32 %v6485_v61, %v10735_v17  ;;  %v5189_v44 = vpop.f32.mrb[163].mxu1 }
 0xbde   :  { %v5420_v1 = vadd.f32 %v5419_v35, %v5369_v23  ;;  %v5370_v41 = vmul.f32 %v5189_v44, %v10736_v20  ;;  %v10750_v23 = vld [vmem:[#allocation45_spill] sm:$0xff] }
 0xbe0   :  { %v5451_v47 = vadd.f32 %v5450_v29, %v5370_v41  ;;  %v5421_v62 = vadd.f32 %v5420_v1, %v5371_v40  ;;  %v10749_v40 = vld [vmem:[#allocation46_spill] sm:$0xff]  ;;  %v10752_v41 = vld [vmem:[#allocation47_spill] sm:$0xff] }
 0xbe2   :  { %v6488_v43 = vpop.f32.mrb[164].mxu1  ;;  %v5452_v36 = vadd.f32 %v5451_v47, %v5372_v53  ;;  %v10751_v53 = vld [vmem:[#allocation48_spill] sm:$0xff] }
 0xbe3   :  { %v5375_v25 = vmul.f32 %v6488_v43, %v10737_v58  ;;  %v5202_v57 = vpop.f32.mrb[165].mxu1 }
 0xbe4   :  { %v5373_v14 = vmul.f32 %v5202_v57, %v10738_v13  ;;  %v6489_v59 = vpop.f32.mrb[166].mxu1 }
 0xbe5   :  { %v5376_v15 = vmul.f32 %v6489_v59, %v10739_v4  ;;  %v5205_v33 = vpop.f32.mrb[167].mxu1 }
 0xbe6   :  { %v5422_v55 = vadd.f32 %v5421_v62, %v5373_v14  ;;  %v5374_v22 = vmul.f32 %v5205_v33, %v10740_v19  ;;  %v10754_v14 = vld [vmem:[#allocation49_spill] sm:$0xff] }
 0xbe8   :  { %v5453_v45 = vadd.f32 %v5452_v36, %v5374_v22  ;;  %v5423_v30 = vadd.f32 %v5422_v55, %v5375_v25  ;;  %v10753_v25 = vld [vmem:[#allocation50_spill] sm:$0xff]  ;;  %v10756_v22 = vld [vmem:[#allocation51_spill] sm:$0xff] }
 0xbea   :  { %v6492_v49 = vpop.f32.mrb[168].mxu1  ;;  %v5454_v10 = vadd.f32 %v5453_v45, %v5376_v15  ;;  %v10755_v15 = vld [vmem:[#allocation52_spill] sm:$0xff] }
 0xbeb   :  { %v5379_v11 = vmul.f32 %v6492_v49, %v10741_v60  ;;  %v5218_v16 = vpop.f32.mrb[169].mxu1 }
 0xbec   :  { %v5377_v48 = vmul.f32 %v5218_v16, %v10742_v26  ;;  %v6493_v6 = vpop.f32.mrb[170].mxu1 }
 0xbed   :  { %v5380_v63 = vmul.f32 %v6493_v6, %v10743_v56  ;;  %v5221_v31 = vpop.f32.mrb[171].mxu1 }
 0xbee   :  { %v5424_v46 = vadd.f32 %v5423_v30, %v5377_v48  ;;  %v5378_v24 = vmul.f32 %v5221_v31, %v10744_v28  ;;  %v10758_v48 = vld [vmem:[#allocation53_spill] sm:$0xff] }
 0xbf0   :  { %v5455_v5 = vadd.f32 %v5454_v10, %v5378_v24  ;;  %v5425_v54 = vadd.f32 %v5424_v46, %v5379_v11  ;;  %v10757_v11 = vld [vmem:[#allocation54_spill] sm:$0xff]  ;;  %v10760_v24 = vld [vmem:[#allocation55_spill] sm:$0xff] }
 0xbf2   :  { %v6496_v52 = vpop.f32.mrb[172].mxu1  ;;  %v5456_v9 = vadd.f32 %v5455_v5, %v5380_v63  ;;  %v10759_v63 = vld [vmem:[#allocation56_spill] sm:$0xff] }
 0xbf3   :  { %v5383_v38 = vmul.f32 %v6496_v52, %v10745_v21  ;;  %v5234_v37 = vpop.f32.mrb[173].mxu1 }
 0xbf4   :  { %v5381_v8 = vmul.f32 %v5234_v37, %v10746_v12  ;;  %v6497_v27 = vpop.f32.mrb[174].mxu1 }
 0xbf5   :  { %v5384_v2 = vmul.f32 %v6497_v27, %v10747_v0  ;;  %v5237_v34 = vpop.f32.mrb[175].mxu1 }
 0xbf6   :  { %v5426_v51 = vadd.f32 %v5425_v54, %v5381_v8  ;;  %v5382_v7 = vmul.f32 %v5237_v34, %v10748_v39  ;;  %v10762_v8 = vld [vmem:[#allocation57_spill] sm:$0xff] }
 0xbf8   :  { %v5457_v35 = vadd.f32 %v5456_v9, %v5382_v7  ;;  %v5427_v32 = vadd.f32 %v5426_v51, %v5383_v38  ;;  %v10761_v38 = vld [vmem:[#allocation58_spill] sm:$0xff]  ;;  %v10764_v7 = vld [vmem:[#allocation59_spill] sm:$0xff] }
 0xbfa   :  { %v6500_v29 = vpop.f32.mrb[176].mxu1  ;;  %v5458_v50 = vadd.f32 %v5457_v35, %v5384_v2  ;;  %v10763_v2 = vld [vmem:[#allocation60_spill] sm:$0xff] }
 0xbfb   :  { %v5387_v3 = vmul.f32 %v6500_v29, %v10749_v40  ;;  %v5250_v18 = vpop.f32.mrb[177].mxu1 }
 0xbfc   :  { %v5385_v61 = vmul.f32 %v5250_v18, %v10750_v23  ;;  %v6501_v17 = vpop.f32.mrb[178].mxu1 }
 0xbfd   :  { %v5388_v44 = vmul.f32 %v6501_v17, %v10751_v53  ;;  %v5253_v1 = vpop.f32.mrb[179].mxu1 }
 0xbfe   :  { %v5428_v20 = vadd.f32 %v5427_v32, %v5385_v61  ;;  %v5386_v47 = vmul.f32 %v5253_v1, %v10752_v41  ;;  %v10766_v61 = vld [vmem:[#allocation61_spill] sm:$0xff] }
 0xc00   :  { %v5459_v62 = vadd.f32 %v5458_v50, %v5386_v47  ;;  %v5429_v43 = vadd.f32 %v5428_v20, %v5387_v3  ;;  %v10765_v3 = vld [vmem:[#allocation62_spill] sm:$0xff]  ;;  %v10768_v47 = vld [vmem:[#allocation63_spill] sm:$0xff] }
 0xc02   :  { %v6504_v36 = vpop.f32.mrb[180].mxu1  ;;  %v5460_v58 = vadd.f32 %v5459_v62, %v5388_v44  ;;  %v10767_v44 = vld [vmem:[#allocation64_spill] sm:$0xff] }
 0xc03   :  { %v5391_v57 = vmul.f32 %v6504_v36, %v10753_v25  ;;  %v5266_v13 = vpop.f32.mrb[181].mxu1 }
 0xc04   :  { %v5389_v59 = vmul.f32 %v5266_v13, %v10754_v14  ;;  %v6505_v4 = vpop.f32.mrb[182].mxu1 }
 0xc05   :  { %v5392_v33 = vmul.f32 %v6505_v4, %v10755_v15  ;;  %v5269_v55 = vpop.f32.mrb[183].mxu1 }
 0xc06   :  { %v5430_v19 = vadd.f32 %v5429_v43, %v5389_v59  ;;  %v5390_v45 = vmul.f32 %v5269_v55, %v10756_v22  ;;  %v10770_v59 = vld [vmem:[#allocation65_spill] sm:$0xff] }
 0xc08   :  { %v5461_v30 = vadd.f32 %v5460_v58, %v5390_v45  ;;  %v5431_v49 = vadd.f32 %v5430_v19, %v5391_v57  ;;  %v10769_v57 = vld [vmem:[#allocation66_spill] sm:$0xff]  ;;  %v10772_v45 = vld [vmem:[#allocation67_spill] sm:$0xff] }
 0xc0a   :  { %v6508_v10 = vpop.f32.mrb[184].mxu1  ;;  %v5462_v60 = vadd.f32 %v5461_v30, %v5392_v33  ;;  %v10771_v33 = vld [vmem:[#allocation68_spill] sm:$0xff] }
 0xc0b   :  { %v5395_v16 = vmul.f32 %v6508_v10, %v10757_v11  ;;  %v5282_v26 = vpop.f32.mrb[185].mxu1 }
 0xc0c   :  { %v5393_v6 = vmul.f32 %v5282_v26, %v10758_v48  ;;  %v6509_v56 = vpop.f32.mrb[186].mxu1  ;;  %v10773_v48 = vld [vmem:[#allocation70_spill] sm:$0xff] }
 0xc0d   :  { %v5396_v31 = vmul.f32 %v6509_v56, %v10759_v63  ;;  %v5285_v46 = vpop.f32.mrb[187].mxu1 }
 0xc0e   :  { %v5432_v28 = vadd.f32 %v5431_v49, %v5393_v6  ;;  %v5394_v5 = vmul.f32 %v5285_v46, %v10760_v24 }
 0xc10   :  { %v5463_v54 = vadd.f32 %v5462_v60, %v5394_v5  ;;  %v5433_v52 = vadd.f32 %v5432_v28, %v5395_v16 }
 0xc12   :  { %v6512_v9 = vpop.f32.mrb[188].mxu1  ;;  %v5464_v21 = vadd.f32 %v5463_v54, %v5396_v31 }
 0xc13   :  { %v5399_v37 = vmul.f32 %v6512_v9, %v10761_v38  ;;  %v5298_v12 = vpop.f32.mrb[189].mxu1 }
 0xc14   :  { %v5397_v27 = vmul.f32 %v5298_v12, %v10762_v8  ;;  %v6513_v0 = vpop.f32.mrb[190].mxu1 }
 0xc15   :  { %v5400_v34 = vmul.f32 %v6513_v0, %v10763_v2  ;;  %v5301_v51 = vpop.f32.mrb[191].mxu1 }
 0xc16   :  { %v5434_v39 = vadd.f32 %v5433_v52, %v5397_v27  ;;  %v5398_v35 = vmul.f32 %v5301_v51, %v10764_v7 }
 0xc18   :  { %v5465_v32 = vadd.f32 %v5464_v21, %v5398_v35  ;;  %v5435_v29 = vadd.f32 %v5434_v39, %v5399_v37 }
 0xc1a   :  { %v6516_v50 = vpop.f32.mrb[192].mxu1  ;;  %v5466_v40 = vadd.f32 %v5465_v32, %v5400_v34 }
 0xc1b   :  { %v5403_v18 = vmul.f32 %v6516_v50, %v10765_v3  ;;  %v5314_v23 = vpop.f32.mrb[193].mxu1 }
 0xc1c   :  { %v5401_v17 = vmul.f32 %v5314_v23, %v10766_v61  ;;  %v6517_v53 = vpop.f32.mrb[194].mxu1 }
 0xc1d   :  { %v5404_v1 = vmul.f32 %v6517_v53, %v10767_v44  ;;  %v5317_v20 = vpop.f32.mrb[195].mxu1 }
 0xc1e   :  { %v5436_v41 = vadd.f32 %v5435_v29, %v5401_v17  ;;  %v5402_v62 = vmul.f32 %v5317_v20, %v10768_v47 }
 0xc20   :  { %v5467_v43 = vadd.f32 %v5466_v40, %v5402_v62  ;;  %v5437_v36 = vadd.f32 %v5436_v41, %v5403_v18 }
 0xc22   :  { %v5468_v58 = vadd.f32 %v5467_v43, %v5404_v1 }
 0xc60   :  { %v6520_v25 = vpop.f32.mrb[196].mxu1 }
 0xc61   :  { %v5407_v13 = vmul.f32 %v6520_v25, %v10769_v57  ;;  %v5330_v14 = vpop.f32.mrb[197].mxu1 }
 0xc62   :  { %v5405_v4 = vmul.f32 %v5330_v14, %v10770_v59  ;;  %v6521_v15 = vpop.f32.mrb[198].mxu1 }
 0xc63   :  { %v5408_v55 = vmul.f32 %v6521_v15, %v10771_v33  ;;  %v5333_v19 = vpop.f32.mrb[199].mxu1 }
 0xc64   :  { %v5438_v22 = vadd.f32 %v5437_v36, %v5405_v4  ;;  %v5406_v30 = vmul.f32 %v5333_v19, %v10772_v45 }
 0xc66   :  { %v5439_v49 = vadd.f32 %v5438_v22, %v5407_v13  ;;  %v5469_v10 = vadd.f32 %v5468_v58, %v5406_v30 }
 0xc68   :  { %v5470_v60 = vadd.f32 %v5469_v10, %v5408_v55  ;;  %v5471_v11 = vmul.f32 %v5439_v49, %v5439_v49 }
 0xc6a   :  { %v5472_v16 = vmul.f32 %v5470_v60, %v5470_v60 }
 0xc6c   :  { %v5473_v26 = vpack.c.bf16 %v5472_v16, %v5471_v11 }
 0xc6e   :  { %6539 = vmatmul.mubr.bf16.vlgmr.msra.gmra.mrb[200].mxu1 %v5473_v26 }
 0xc6f   :  { %6543 = vmatpush3.bf16.msra.mxu1 %v10773_v48  ;;  %6544 = vmatprep.mubr.msk.bf16.mxu1 %vm7172_vm2, %v10692_v42 }
 0xd41   :  { %v5508_v6 = vpop.f32.mrb[200].mxu1 }
 0xd42   :  { %7123 = vrsqrt.f32 %v5508_v6  ;;  %v6540_v56 = vpop.f32.mrb[201].mxu1  ;;  %vm5519_vm11 = vcmp.eq.f32.partialorder %v5508_v6, inf  ;;  %v5522_v5 = vand.u32 2147483648, %v5508_v6  ;;  %vm5521_vm12 = vcmp.eq.f32.partialorder %v5508_v6, 0.0 }
 0xd43   :  { %v5511_v63 = vpop.f32.mrb[202].mxu1  ;;  %v5515_v38 = vadd.f32 1.0, %v5508_v6 }
 0xd44   :  { %7125 = vrsqrt.f32 %v5511_v63  ;;  %v6541_v31 = vpop.f32.mrb[203].mxu1  ;;  %vm5526_vm13 = vcmp.eq.f32.partialorder %v5511_v63, inf  ;;  %v5529_v21 = vand.u32 2147483648, %v5511_v63  ;;  %vm5528_vm14 = vcmp.eq.f32.partialorder %v5511_v63, 0.0 }
 0xd45   :  { %v5516_v27 = vadd.f32 1.0, %v5511_v63 }
 0xd4c   :  { %v7124_v46 = vpop.eup %7123 }
 0xd4d   :  { %v5518_v28 = vmul.f32 %v7124_v46, %v5508_v6 }
 0xd4e   :  { %v7126_v24 = vpop.eup %7125 }
 0xd4f   :  { %v5520_v54 = vsel %vm5519_vm11, %v5508_v6, %v5518_v28  ;;  %v5525_v52 = vmul.f32 %v7126_v24, %v5511_v63 }
 0xd50   :  { %v5523_v9 = vsel %vm5521_vm12, %v5522_v5, %v5520_v54 }
 0xd51   :  { %v5531_v37 = vadd.f32 1e-08, %v5523_v9  ;;  %v5527_v42 = vsel %vm5526_vm13, %v5511_v63, %v5525_v52 }
 0xd52   :  { %v5530_v12 = vsel %vm5528_vm14, %v5529_v21, %v5527_v42 }
 0xd53   :  { %v5533_v8 = vmul.f32 %v5531_v37, %v5515_v38  ;;  %v5532_v0 = vadd.f32 1e-08, %v5530_v12 }
 0xd55   :  { %7127 = vrcp.f32 %v5533_v8  ;;  %v5534_v2 = vmul.f32 %v5532_v0, %v5516_v27 }
 0xd57   :  { %7129 = vrcp.f32 %v5534_v2 }
 0xd5f   :  { %v7128_v34 = vpop.eup %7127 }
 0xd60   :  { %v5537_v39 = vmul.f32 %v7128_v34, %v5508_v6 }
 0xd61   :  { %v7130_v51 = vpop.eup %7129 }
 0xd62   :  { %v5538_v7 = vmul.f32 %v7130_v51, %v5511_v63 }
 0xd64   :  { %v5539_v35 = vpack.c.bf16 %v5538_v7, %v5537_v39 }
 0xd66   :  { %6545 = vmatmul.mubr.msk.bf16.vlgmr.msra.gmra.mrb[204].mxu1 %vm137_vm1, %v5539_v35 }
 0xe39   :  { %v5577_v32 = vpop.f32.mrb[204].mxu1 }
 0xe3a   :  { %v5584_v29 = vmul.f32 %v5577_v32, %v5439_v49  ;;  %v6546_v50 = vpop.f32.mrb[205].mxu1 }
 0xe3b   :  { %v5580_v40 = vpop.f32.mrb[206].mxu1 }
 0xe3c   :  { %5586 = vst [vmem:[#allocation2] sm:$0xff] %v5584_v29  ;;  %v5585_v3 = vmul.f32 %v5580_v40, %v5470_v60  ;;  %v6547_v18 = vpop.f32.mrb[207].mxu1 }
 0xe3e   :  { %5587 = vst [vmem:[#allocation2 + $0x8] sm:$0xff] %v5585_v3 }
 0xe3f   :  { %7158 = shalt.err (!%p7155_p4)
}
 0xe40   :  { %s7159_s1 = scalar_lea.hbm %s9969_s4, 256 }
 0xe41   :  { %p7160_p5 = scmp.ne.s32.totalorder %s9969_s4, %s7159_s1  ;;  %p7163_p6 = scmp.lt.u32.totalorder %s7159_s1, %s9969_s4 }
 0xe43   :  { %p7165_p7 = pnand %p7163_p6, %p7160_p5 }
 0xe45   :  { %7168 = shalt.err (!%p7165_p7)
}
 0xe46   :  { %s7174_s13 = smov 128   ;;  %s7175_s0 = smov 8  }
 0xe47   :  { %5599 = dma.vmem_to_hbm [thread:$0]  %s5594_s5, 256, %s9969_s4, [#allocation3], %s7174_s13, %s7174_s13, %s7175_s0  }
 0xe48   :  { %7169 = dma.done.wait [#allocation3], 256  }
 0xe49   :  { %7170 = vsyncadd [#allocation3], 4294967040 }
 0xe4a   :  { %5603 = vsyncpa [#allocation3], 1 }

</bundles_post_ra>
